<compile_context>
chip_gen: v7x
topology: tpu7x:2x2x1
jax: 0.10.0
libtpu: 0.0.40
codegen_flags: <defaults>
</compile_context>

<pallas_src>
import functools

import jax
import jax.numpy as jnp
from jax import lax
from jax.experimental import pallas as pl
from jax.experimental.pallas import tpu as pltpu

BN_EPS = 1e-5


# ----------------------------------------------------------------------------
# Kernel A: conv3x3(+BN+ReLU) fused with convT2x2 stride2 (+BN+ReLU, sub-grid form)
# ----------------------------------------------------------------------------
def _stage_a_kernel(x_ref, w1_ref, s1_ref, b1_ref, wt1_ref, s2_ref, b2_ref,
                    o_ref, xpad_ref, patch_ref, *, H, W):
    # x_ref:    (1, Cin, H*W) f32    flattened NCHW image (row-major spatial)
    # w1_ref:   (c4, 9*Cin)   bf16   im2col conv3x3 weights
    # s1/b1:    (c4, 1)       f32    folded BN
    # wt1_ref:  (4*c4, c4)    bf16   convT 2x2 weights, row = (dy*2+dx)*c4 + co
    # s2/b2:    (4*c4, 1)     f32    folded BN (tiled over the 4 sub-grids)
    # o_ref:    (1, 4*c4, H*W) bf16  f sub-grids at half resolution
    # xpad_ref: (Cin, H*W+2W+2) f32  flat zero-padded scratch
    # patch_ref:(9*Cin, H*W)  bf16   im2col patch
    Cin = x_ref.shape[1]
    M = H * W
    OFF = W + 1

    # halo-only zeroing (data region is fully overwritten below)
    xpad_ref[:, 0:OFF] = jnp.zeros((Cin, OFF), jnp.float32)
    xpad_ref[:, OFF + M:OFF + M + OFF] = jnp.zeros((Cin, OFF), jnp.float32)
    xpad_ref[:, OFF:OFF + M] = x_ref[0]

    col = lax.broadcasted_iota(jnp.int32, (1, M), 1) % W
    not_first = col != 0          # taps that would wrap into previous row's last col
    not_last = col != (W - 1)     # taps that would wrap into next row's first col

    for a in range(3):
        for b in range(3):
            start = OFF + (a - 1) * W + (b - 1)
            v = xpad_ref[:, start:start + M]
            if b == 0:
                v = jnp.where(not_first, v, 0.0)
            elif b == 2:
                v = jnp.where(not_last, v, 0.0)
            patch_ref[(a * 3 + b) * Cin:(a * 3 + b + 1) * Cin, :] = v.astype(jnp.bfloat16)

    # conv3x3 as one bf16 im2col matmul (f32 accumulate) + folded BN + ReLU   (c4, M)
    h1 = jnp.dot(w1_ref[...], patch_ref[...], preferred_element_type=jnp.float32)
    h1 = jnp.maximum(h1 * s1_ref[...] + b1_ref[...], 0.0)

    # conv-transpose 2x2 stride 2 is pointwise in its input -> one matmul producing
    # the 4 (dy,dx) sub-grids stacked on the row axis.                        (4*c4, M)
    f = jnp.dot(wt1_ref[...], h1.astype(jnp.bfloat16),
                preferred_element_type=jnp.float32)
    f = jnp.maximum(f * s2_ref[...] + b2_ref[...], 0.0)
    o_ref[0] = f.astype(o_ref.dtype)


def stage_a(x_flat, w1_2d, s1, b1, wt1_all, s2a, b2a, *, H, W):
    N, Cin, M = x_flat.shape
    c4 = w1_2d.shape[0]
    kern = functools.partial(_stage_a_kernel, H=H, W=W)
    return pl.pallas_call(
        kern,
        out_shape=jax.ShapeDtypeStruct((N, 4 * c4, M), jnp.bfloat16),
        grid=(N,),
        in_specs=[
            pl.BlockSpec((1, Cin, M), lambda b: (b, 0, 0)),
            pl.BlockSpec((c4, 9 * Cin), lambda b: (0, 0)),
            pl.BlockSpec((c4, 1), lambda b: (0, 0)),
            pl.BlockSpec((c4, 1), lambda b: (0, 0)),
            pl.BlockSpec((4 * c4, c4), lambda b: (0, 0)),
            pl.BlockSpec((4 * c4, 1), lambda b: (0, 0)),
            pl.BlockSpec((4 * c4, 1), lambda b: (0, 0)),
        ],
        out_specs=pl.BlockSpec((1, 4 * c4, M), lambda b: (b, 0, 0)),
        scratch_shapes=[
            pltpu.VMEM((Cin, M + 2 * W + 2), jnp.float32),
            pltpu.VMEM((9 * Cin, M), jnp.bfloat16),
        ],
        compiler_params=pltpu.CompilerParams(
            dimension_semantics=("parallel",),
            vmem_limit_bytes=32 * 1024 * 1024,
        ),
    )(x_flat, w1_2d, s1, b1, wt1_all, s2a, b2a)


# ----------------------------------------------------------------------------
# Kernel B: convT2x2(+sigmoid)  +  [upsample x2 | concat | conv3x3+BN+ReLU] (polyphase,
#           shrink taps folded into the same MXU contraction)  +  1x1 conv + sigmoid
#           +  0.5*(base + cbn)       -> preds parity maps
# ----------------------------------------------------------------------------
def _stage_b_kernel(f_ref, wt2_ref, b3_ref, w34_ref, wsb_ref, s4_ref, b4_ref,
                    w4bd_ref, bias4_ref, o_ref,
                    fpad_ref, spad_ref, fpatch_ref, spatch_ref, *, Hf, Wf):
    # f_ref:    (1, c4, Hf*Wf) bf16  spatially-interleaved f, flattened row-major
    # wt2_ref:  (4, c4)        bf16  convT 2x2 weights (row = p*2+q), b3: (1,1) f32 bias
    # w34_ref:  (4*c4, 9*c4)   bf16  polyphase (upsample+conv3x3) f weights
    # wsb_ref:  (4*c4, 36)     bf16  block-diag shrink-tap weights (9 per parity)
    # s4/b4:    (4*c4, 1)      f32   folded BN (tiled over parities)
    # w4bd_ref: (4, 4*c4)      bf16  block-diag 1x1 conv; bias4: (1,1) f32
    # o_ref:    (1, 4, Hf*Wf)  f32   preds parity maps (row = p*2+q)
    c4 = f_ref.shape[1]
    M = Hf * Wf
    OFF = Wf + 1

    f2d = f_ref[0]                                               # (c4, M) bf16

    col = lax.broadcasted_iota(jnp.int32, (1, M), 1) % Wf
    not_first = col != 0
    not_last = col != (Wf - 1)

    # shrink parity maps: shrink[2u+p, 2v+q] = sigmoid(wt2[p,q] . f[u,v] + b3)
    shrink = jax.nn.sigmoid(
        jnp.dot(wt2_ref[...], f2d, preferred_element_type=jnp.float32)
        + b3_ref[...])                                           # (4, M) f32

    # halo-only zeroing + data copies into the padded scratches
    fpad_ref[:, 0:OFF] = jnp.zeros((c4, OFF), jnp.float32)
    fpad_ref[:, OFF + M:OFF + M + OFF] = jnp.zeros((c4, OFF), jnp.float32)
    fpad_ref[:, OFF:OFF + M] = f2d.astype(jnp.float32)
    spad_ref[:, 0:OFF] = jnp.zeros((4, OFF), jnp.float32)
    spad_ref[:, OFF + M:OFF + M + OFF] = jnp.zeros((4, OFF), jnp.float32)
    spad_ref[:, OFF:OFF + M] = shrink

    # im2col patch of f at half resolution (shared by the 4 output parities), bf16
    for r in range(3):
        for s in range(3):
            start = OFF + (r - 1) * Wf + (s - 1)
            v = fpad_ref[:, start:start + M]
            if s == 0:
                v = jnp.where(not_first, v, 0.0)
            elif s == 2:
                v = jnp.where(not_last, v, 0.0)
            fpatch_ref[(r * 3 + s) * c4:(r * 3 + s + 1) * c4, :] = v.astype(jnp.bfloat16)

    # 36 parity-specific shrink taps (one lane-dense (1, M) row each), contracted on the
    # MXU via the block-diagonal wsb weight (replaces the former 36-pass VALU loop).
    # shrink[2u+p+a-1, 2v+q+b-1] lives in parity map (pa, pb) shifted by (ra, rb).
    for p in range(2):
        for q in range(2):
            k = p * 2 + q
            for a in range(3):
                dr = p + a - 1
                pa, ra = dr % 2, dr // 2
                for b in range(3):
                    dc = q + b - 1
                    pb, rb = dc % 2, dc // 2
                    start = OFF + ra * Wf + rb
                    row = pa * 2 + pb
                    v = spad_ref[row:row + 1, start:start + M]   # (1, M)
                    if rb == -1:
                        v = jnp.where(not_first, v, 0.0)
                    elif rb == 1:
                        v = jnp.where(not_last, v, 0.0)
                    idx = k * 9 + a * 3 + b
                    spatch_ref[idx:idx + 1, :] = v

    # (nearest-upsample x2 -> conv3x3) over [shrink ; f] for all 4 parities at once
    pre = (jnp.dot(w34_ref[...], fpatch_ref[...], preferred_element_type=jnp.float32)
           + jnp.dot(wsb_ref[...], spatch_ref[...].astype(jnp.bfloat16),
                     preferred_element_type=jnp.float32))        # (4*c4, M)
    h2 = jnp.maximum(pre * s4_ref[...] + b4_ref[...], 0.0)       # (4*c4, M)

    # 1x1 conv (block-diagonal over parities) + sigmoid, then 0.5*(base + cbn)
    cbn = jax.nn.sigmoid(
        jnp.dot(w4bd_ref[...], h2.astype(jnp.bfloat16),
                preferred_element_type=jnp.float32) + bias4_ref[...])   # (4, M)
    o_ref[0] = (0.5 * (shrink + cbn)).astype(o_ref.dtype)


def stage_b(f_flat, wt2m, b3, w34, wsb, s4t, b4t, w4bd, bias4, *, Hf, Wf):
    N, c4, M = f_flat.shape
    kern = functools.partial(_stage_b_kernel, Hf=Hf, Wf=Wf)
    return pl.pallas_call(
        kern,
        out_shape=jax.ShapeDtypeStruct((N, 4, M), jnp.float32),
        grid=(N,),
        in_specs=[
            pl.BlockSpec((1, c4, M), lambda b: (b, 0, 0)),
            pl.BlockSpec((4, c4), lambda b: (0, 0)),
            pl.BlockSpec((1, 1), lambda b: (0, 0)),
            pl.BlockSpec((4 * c4, 9 * c4), lambda b: (0, 0)),
            pl.BlockSpec((4 * c4, 36), lambda b: (0, 0)),
            pl.BlockSpec((4 * c4, 1), lambda b: (0, 0)),
            pl.BlockSpec((4 * c4, 1), lambda b: (0, 0)),
            pl.BlockSpec((4, 4 * c4), lambda b: (0, 0)),
            pl.BlockSpec((1, 1), lambda b: (0, 0)),
        ],
        out_specs=pl.BlockSpec((1, 4, M), lambda b: (b, 0, 0)),
        scratch_shapes=[
            pltpu.VMEM((c4, M + 2 * Wf + 2), jnp.float32),
            pltpu.VMEM((4, M + 2 * Wf + 2), jnp.float32),
            pltpu.VMEM((9 * c4, M), jnp.bfloat16),
            pltpu.VMEM((36, M), jnp.float32),
        ],
        compiler_params=pltpu.CompilerParams(
            dimension_semantics=("parallel",),
            vmem_limit_bytes=32 * 1024 * 1024,
        ),
    )(f_flat, wt2m, b3, w34, wsb, s4t, b4t, w4bd, bias4)


# ----------------------------------------------------------------------------
# Parameters (eval-mode BatchNorm folded into scale/shift)
# ----------------------------------------------------------------------------
def init_params(in_ch, key):
    c4 = in_ch // 4
    ks = jax.random.split(key, 24)

    def rn(k, shape, s):
        return (s * jax.random.normal(k, shape)).astype(jnp.float32)

    def bn_fold(k0, k1, k2, k3, c):
        gamma = 1.0 + rn(k0, (c,), 0.1)
        beta = rn(k1, (c,), 0.1)
        mean = rn(k2, (c,), 0.1)
        var = 1.0 + jnp.abs(rn(k3, (c,), 0.1))
        scale = gamma / jnp.sqrt(var + BN_EPS)
        shift = beta - mean * scale
        return scale, shift

    p = {}
    p["w1"] = rn(ks[0], (3, 3, in_ch, c4), 0.3)          # Conv 3x3, no bias (cna)
    p["s1"], p["b1"] = bn_fold(ks[1], ks[2], ks[3], ks[4], c4)
    p["wt1"] = rn(ks[5], (2, 2, c4, c4), 0.3)            # ConvT 2x2 s2 (cna)
    p["s2"], p["b2"] = bn_fold(ks[6], ks[7], ks[8], ks[9], c4)
    p["wt2"] = rn(ks[10], (2, 2, c4, 1), 0.3)            # ConvT 2x2 s2 (ca: bias+sigmoid)
    p["b3"] = rn(ks[11], (1,), 0.1)
    p["w3"] = rn(ks[12], (3, 3, c4 + 1, c4), 0.3)        # LocalModule last_3 (cna)
    p["s4"], p["b4"] = bn_fold(ks[13], ks[14], ks[15], ks[16], c4)
    p["w4"] = rn(ks[17], (c4, 1), 0.3)                   # LocalModule last_1 (1x1 + bias)
    p["bias4"] = rn(ks[18], (1,), 0.1)
    return p


# ----------------------------------------------------------------------------
# Full PFHeadLocal forward (eval mode)
# ----------------------------------------------------------------------------
def pfhead_local_forward(x_nchw, p):
    N, Cin, H, W = x_nchw.shape
    c4 = p["w1"].shape[-1]
    Hf, Wf = 2 * H, 2 * W

    # --- kernel-layout weights (tiny; bf16 for MXU operands, BN params stay f32) ---
    w1_2d = (jnp.transpose(p["w1"], (3, 0, 1, 2))
             .reshape(c4, 9 * Cin).astype(jnp.bfloat16))
    s1 = p["s1"].reshape(c4, 1)
    b1 = p["b1"].reshape(c4, 1)
    wt1_all = (jnp.transpose(p["wt1"], (0, 1, 3, 2))
               .reshape(4 * c4, c4).astype(jnp.bfloat16))
    s2a = jnp.tile(p["s2"].reshape(1, c4), (4, 1)).reshape(4 * c4, 1)
    b2a = jnp.tile(p["b2"].reshape(1, c4), (4, 1)).reshape(4 * c4, 1)
    wt2m = p["wt2"][:, :, :, 0].reshape(4, c4).astype(jnp.bfloat16)
    b3 = p["b3"].reshape(1, 1)
    w3s = jnp.transpose(p["w3"][:, :, 0, :], (2, 0, 1)).reshape(c4, 9)
    # polyphase weights of (nearest-upsample x2 -> conv3x3) applied to the f channels
    m0 = jnp.array([[1., 0., 0.], [0., 1., 0.], [0., 1., 0.]], jnp.float32)
    m1 = jnp.array([[0., 1., 0.], [0., 1., 0.], [0., 0., 1.]], jnp.float32)
    w3f = p["w3"][:, :, 1:, :]                           # (a, b, ci, o)
    mats = []
    for mp in (m0, m1):
        for mq in (m0, m1):
            wpq = jnp.einsum("abco,ar,bs->orsc", w3f, mp, mq)
            mats.append(wpq.reshape(c4, 9 * c4))
    w34 = jnp.concatenate(mats, axis=0).astype(jnp.bfloat16)     # (4*c4, 9*c4)
    # block-diagonal shrink-tap weights: folds the former 36-pass VALU loop into the MXU
    wsb = jnp.zeros((4 * c4, 36), jnp.float32)
    for k in range(4):
        wsb = wsb.at[k * c4:(k + 1) * c4, k * 9:(k + 1) * 9].set(w3s)
    wsb = wsb.astype(jnp.bfloat16)
    s4t = jnp.tile(p["s4"].reshape(1, c4), (4, 1)).reshape(4 * c4, 1)
    b4t = jnp.tile(p["b4"].reshape(1, c4), (4, 1)).reshape(4 * c4, 1)
    # block-diagonal 1x1 conv (cbn head) over the 4 parities
    w4bd = jnp.zeros((4, 4 * c4), jnp.float32)
    for k in range(4):
        w4bd = w4bd.at[k, k * c4:(k + 1) * c4].set(p["w4"][:, 0])
    w4bd = w4bd.astype(jnp.bfloat16)
    bias4 = p["bias4"].reshape(1, 1)

    # --- stage A (fused conv3x3 + convT2x2), sub-grid bf16 output ---
    x_flat = x_nchw.reshape(N, Cin, H * W)               # free (contiguous)
    fsub = stage_a(x_flat, w1_2d, s1, b1, wt1_all, s2a, b2a, H=H, W=W)

    # --- XLA glue #1: interleave (dy,dx) sub-grids into spatial f (bf16, halved traffic)
    f_flat = (fsub.reshape(N, 2, 2, c4, H, W)
                  .transpose(0, 3, 4, 1, 5, 2)
                  .reshape(N, c4, Hf * Wf))

    # --- stage B (shrink + cbn branch + tail), parity-map output ---
    preds_par = stage_b(f_flat, wt2m, b3, w34, wsb, s4t, b4t, w4bd, bias4,
                        Hf=Hf, Wf=Wf)

    # --- XLA glue #2: interleave parity maps into NCHW preds ---
    preds = (preds_par.reshape(N, 2, 2, Hf, Wf)
                      .transpose(0, 3, 1, 4, 2)
                      .reshape(N, 1, 4 * H, 4 * W))
    return preds


# ----------------------------------------------------------------------------
# Pure-JAX reference (high precision) for correctness checking
# ----------------------------------------------------------------------------
def reference_forward(x_nchw, p):
    x = jnp.transpose(x_nchw, (0, 2, 3, 1))
    hp = lax.Precision.HIGHEST

    def conv3x3_ref(x, w, s, b):
        y = lax.conv_general_dilated(x, w, (1, 1), ((1, 1), (1, 1)),
                                     dimension_numbers=("NHWC", "HWIO", "NHWC"),
                                     precision=hp)
        return jnp.maximum(y * s + b, 0.0)

    def convt_ref(x, w, s, b, act):
        N, H, W, Cin = x.shape
        Cout = w.shape[-1]
        y = jnp.einsum("nhwc,yxco->nhywxo", x, w,
                       precision=hp).reshape(N, 2 * H, 2 * W, Cout)
        y = y * s + b
        return jnp.maximum(y, 0.0) if act == "relu" else jax.nn.sigmoid(y)

    h1 = conv3x3_ref(x, p["w1"], p["s1"], p["b1"])
    f = convt_ref(h1, p["wt1"], p["s2"], p["b2"], "relu")
    shrink = convt_ref(f, p["wt2"], 1.0, p["b3"], "sigmoid")
    f_up = jnp.repeat(jnp.repeat(f, 2, axis=1), 2, axis=2)
    cat = jnp.concatenate([shrink, f_up], axis=-1)
    h2 = conv3x3_ref(cat, p["w3"], p["s4"], p["b4"])
    cbn = jax.nn.sigmoid(jnp.einsum("nhwm,mo->nhwo", h2, p["w4"], precision=hp)
                         + p["bias4"])
    y = 0.5 * (shrink + cbn)
    return jnp.transpose(y, (0, 3, 1, 2))


if __name__ == "__main__":
    N, in_ch, H, W = 2, 16, 16, 16
    key = jax.random.PRNGKey(0)
    kx, kp = jax.random.split(key)
    x = jax.random.normal(kx, (N, in_ch, H, W), jnp.float32)   # NCHW, like PyTorch
    params = init_params(in_ch, kp)

    out = jax.block_until_ready(jax.jit(pfhead_local_forward)(x, params))
    assert out.shape == (N, 1, 4 * H, 4 * W), out.shape

    ref = jax.block_until_ready(jax.jit(reference_forward)(x, params))
    err = float(jnp.max(jnp.abs(out - ref)))
    # Tolerance accounts for explicit single-pass bf16 MXU operands (f32 accumulation,
    # f32 BN/sigmoid) vs the f32 HIGHEST-precision reference.
    if not err < 4e-2:
        raise AssertionError(f"mismatch vs reference, max abs err = {err}")

    print("KERNEL_OK")
</pallas_src>

<mosaic_0001>
module attributes {stable_mosaic.version = 11 : i64} {
  func.func @_stage_a_kernel(%arg0: i32, %arg1: memref<1x16x256xf32, #tpu.memory_space<vmem>>, %arg2: memref<4x144xbf16, #tpu.memory_space<vmem>>, %arg3: memref<4x1xf32, #tpu.memory_space<vmem>>, %arg4: memref<4x1xf32, #tpu.memory_space<vmem>>, %arg5: memref<16x4xbf16, #tpu.memory_space<vmem>>, %arg6: memref<16x1xf32, #tpu.memory_space<vmem>>, %arg7: memref<16x1xf32, #tpu.memory_space<vmem>>, %arg8: memref<1x16x256xbf16, #tpu.memory_space<vmem>>, %arg9: memref<16x290xf32, #tpu.memory_space<vmem>>, %arg10: memref<144x256xbf16, #tpu.memory_space<vmem>>) attributes {dimension_semantics = [#tpu.dimension_semantics<parallel>], iteration_bounds = array<i64: 2>, scalar_prefetch = 0 : i64, scratch_operands = 2 : i64, tpu.core_type = #tpu.core_type<tc>, window_params = [{transform_indices = @transform_0, window_bounds = array<i64: 1, 16, 256>}, {pipeline_mode = #tpu.pipeline_mode<synchronous>, transform_indices = @transform_1, window_bounds = array<i64: 4, 144>}, {pipeline_mode = #tpu.pipeline_mode<synchronous>, transform_indices = @transform_2, window_bounds = array<i64: 4, 1>}, {pipeline_mode = #tpu.pipeline_mode<synchronous>, transform_indices = @transform_3, window_bounds = array<i64: 4, 1>}, {pipeline_mode = #tpu.pipeline_mode<synchronous>, transform_indices = @transform_4, window_bounds = array<i64: 16, 4>}, {pipeline_mode = #tpu.pipeline_mode<synchronous>, transform_indices = @transform_5, window_bounds = array<i64: 16, 1>}, {pipeline_mode = #tpu.pipeline_mode<synchronous>, transform_indices = @transform_6, window_bounds = array<i64: 16, 1>}, {transform_indices = @transform_7, window_bounds = array<i64: 1, 16, 256>}]} {
    %cst = arith.constant 0.000000e+00 : f32
    %0 = vector.broadcast %cst : f32 to vector<16x17xf32>
    %c0 = arith.constant 0 : index
    %c0_0 = arith.constant 0 : index
    %1 = vector.load %arg9[%c0, %c0_0] : memref<16x290xf32, #tpu.memory_space<vmem>>, vector<16x17xf32>
    tpu.vector_store %arg9[%c0, %c0_0], %0 {strides = array<i32>} : memref<16x290xf32, #tpu.memory_space<vmem>>, vector<16x17xf32>,
    %cst_1 = arith.constant 0.000000e+00 : f32
    %2 = vector.broadcast %cst_1 : f32 to vector<16x17xf32>
    %c0_2 = arith.constant 0 : index
    %c273 = arith.constant 273 : index
    %3 = vector.load %arg9[%c0_2, %c273] : memref<16x290xf32, #tpu.memory_space<vmem>>, vector<16x17xf32>
    tpu.vector_store %arg9[%c0_2, %c273], %2 {strides = array<i32>} : memref<16x290xf32, #tpu.memory_space<vmem>>, vector<16x17xf32>,
    %c0_3 = arith.constant 0 : index
    %c0_4 = arith.constant 0 : index
    %c0_5 = arith.constant 0 : index
    %4 = vector.load %arg1[%c0_3, %c0_4, %c0_5] : memref<1x16x256xf32, #tpu.memory_space<vmem>>, vector<1x16x256xf32>
    %5 = vector.shape_cast %4 : vector<1x16x256xf32> to vector<16x256xf32>
    %c0_6 = arith.constant 0 : index
    %c17 = arith.constant 17 : index
    %6 = vector.load %arg9[%c0_6, %c17] : memref<16x290xf32, #tpu.memory_space<vmem>>, vector<16x256xf32>
    tpu.vector_store %arg9[%c0_6, %c17], %5 {strides = array<i32>} : memref<16x290xf32, #tpu.memory_space<vmem>>, vector<16x256xf32>,
    %7 = tpu.iota {dimensions = array<i32: 1>} : vector<1x256xi32>
    %c16_i32 = arith.constant 16 : i32
    %c0_i32 = arith.constant 0 : i32
    %8 = arith.cmpi eq, %c16_i32, %c0_i32 : i32
    %c1_i32 = arith.constant 1 : i32
    %9 = arith.select %8, %c1_i32, %c16_i32 : i32
    %10 = vector.broadcast %9 : i32 to vector<1x256xi32>
    %11 = arith.remsi %7, %10 : vector<1x256xi32>
    %c0_i32_7 = arith.constant 0 : i32
    %12 = vector.broadcast %c0_i32_7 : i32 to vector<1x256xi32>
    %13 = arith.cmpi ne, %11, %12 : vector<1x256xi32>
    %c0_i32_8 = arith.constant 0 : i32
    %14 = vector.broadcast %c0_i32_8 : i32 to vector<1x256xi32>
    %15 = arith.cmpi slt, %11, %14 : vector<1x256xi32>
    %c0_i32_9 = arith.constant 0 : i32
    %16 = arith.cmpi slt, %9, %c0_i32_9 : i32
    %17 = vector.broadcast %16 : i1 to vector<1x256xi1>
    %18 = vector.broadcast %17 : vector<1x256xi1> to vector<1x256xi1>
    %19 = arith.xori %15, %18 : vector<1x256xi1>
    %20 = arith.andi %19, %13 : vector<1x256xi1>
    %21 = vector.broadcast %9 : i32 to vector<1x256xi32>
    %22 = arith.addi %11, %21 : vector<1x256xi32>
    %23 = arith.select %20, %22, %11 : vector<1x256xi1>, vector<1x256xi32>
    %c0_i32_10 = arith.constant 0 : i32
    %24 = vector.broadcast %c0_i32_10 : i32 to vector<1x256xi32>
    %25 = arith.cmpi ne, %23, %24 : vector<1x256xi32>
    %c15_i32 = arith.constant 15 : i32
    %26 = vector.broadcast %c15_i32 : i32 to vector<1x256xi32>
    %27 = arith.cmpi ne, %23, %26 : vector<1x256xi32>
    %c0_11 = arith.constant 0 : index
    %c0_12 = arith.constant 0 : index
    %28 = vector.load %arg9[%c0_11, %c0_12] : memref<16x290xf32, #tpu.memory_space<vmem>>, vector<16x256xf32>
    %cst_13 = arith.constant 0.000000e+00 : f32
    %29 = vector.shape_cast %25 : vector<1x256xi1> to vector<1x256xi1>
    %30 = vector.broadcast %29 : vector<1x256xi1> to vector<16x256xi1>
    %31 = vector.broadcast %cst_13 : f32 to vector<16x256xf32>
    %32 = arith.select %30, %28, %31 : vector<16x256xi1>, vector<16x256xf32>
    %33 = arith.truncf %32 : vector<16x256xf32> to vector<16x256xbf16>
    %c0_14 = arith.constant 0 : index
    %c0_15 = arith.constant 0 : index
    %34 = vector.load %arg10[%c0_14, %c0_15] : memref<144x256xbf16, #tpu.memory_space<vmem>>, vector<16x256xbf16>
    tpu.vector_store %arg10[%c0_14, %c0_15], %33 {strides = array<i32>} : memref<144x256xbf16, #tpu.memory_space<vmem>>, vector<16x256xbf16>,
    %c0_16 = arith.constant 0 : index
    %c1 = arith.constant 1 : index
    %35 = vector.load %arg9[%c0_16, %c1] : memref<16x290xf32, #tpu.memory_space<vmem>>, vector<16x256xf32>
    %36 = arith.truncf %35 : vector<16x256xf32> to vector<16x256xbf16>
    %c16 = arith.constant 16 : index
    %c0_17 = arith.constant 0 : index
    %37 = vector.load %arg10[%c16, %c0_17] : memref<144x256xbf16, #tpu.memory_space<vmem>>, vector<16x256xbf16>
    tpu.vector_store %arg10[%c16, %c0_17], %36 {strides = array<i32>} : memref<144x256xbf16, #tpu.memory_space<vmem>>, vector<16x256xbf16>,
    %c0_18 = arith.constant 0 : index
    %c2 = arith.constant 2 : index
    %38 = vector.load %arg9[%c0_18, %c2] : memref<16x290xf32, #tpu.memory_space<vmem>>, vector<16x256xf32>
    %cst_19 = arith.constant 0.000000e+00 : f32
    %39 = vector.shape_cast %27 : vector<1x256xi1> to vector<1x256xi1>
    %40 = vector.broadcast %39 : vector<1x256xi1> to vector<16x256xi1>
    %41 = vector.broadcast %cst_19 : f32 to vector<16x256xf32>
    %42 = arith.select %40, %38, %41 : vector<16x256xi1>, vector<16x256xf32>
    %43 = arith.truncf %42 : vector<16x256xf32> to vector<16x256xbf16>
    %c32 = arith.constant 32 : index
    %c0_20 = arith.constant 0 : index
    %44 = vector.load %arg10[%c32, %c0_20] : memref<144x256xbf16, #tpu.memory_space<vmem>>, vector<16x256xbf16>
    tpu.vector_store %arg10[%c32, %c0_20], %43 {strides = array<i32>} : memref<144x256xbf16, #tpu.memory_space<vmem>>, vector<16x256xbf16>,
    %c0_21 = arith.constant 0 : index
    %c16_22 = arith.constant 16 : index
    %45 = vector.load %arg9[%c0_21, %c16_22] : memref<16x290xf32, #tpu.memory_space<vmem>>, vector<16x256xf32>
    %cst_23 = arith.constant 0.000000e+00 : f32
    %46 = vector.shape_cast %25 : vector<1x256xi1> to vector<1x256xi1>
    %47 = vector.broadcast %46 : vector<1x256xi1> to vector<16x256xi1>
    %48 = vector.broadcast %cst_23 : f32 to vector<16x256xf32>
    %49 = arith.select %47, %45, %48 : vector<16x256xi1>, vector<16x256xf32>
    %50 = arith.truncf %49 : vector<16x256xf32> to vector<16x256xbf16>
    %c48 = arith.constant 48 : index
    %c0_24 = arith.constant 0 : index
    %51 = vector.load %arg10[%c48, %c0_24] : memref<144x256xbf16, #tpu.memory_space<vmem>>, vector<16x256xbf16>
    tpu.vector_store %arg10[%c48, %c0_24], %50 {strides = array<i32>} : memref<144x256xbf16, #tpu.memory_space<vmem>>, vector<16x256xbf16>,
    %c0_25 = arith.constant 0 : index
    %c17_26 = arith.constant 17 : index
    %52 = vector.load %arg9[%c0_25, %c17_26] : memref<16x290xf32, #tpu.memory_space<vmem>>, vector<16x256xf32>
    %53 = arith.truncf %52 : vector<16x256xf32> to vector<16x256xbf16>
    %c64 = arith.constant 64 : index
    %c0_27 = arith.constant 0 : index
    %54 = vector.load %arg10[%c64, %c0_27] : memref<144x256xbf16, #tpu.memory_space<vmem>>, vector<16x256xbf16>
    tpu.vector_store %arg10[%c64, %c0_27], %53 {strides = array<i32>} : memref<144x256xbf16, #tpu.memory_space<vmem>>, vector<16x256xbf16>,
    %c0_28 = arith.constant 0 : index
    %c18 = arith.constant 18 : index
    %55 = vector.load %arg9[%c0_28, %c18] : memref<16x290xf32, #tpu.memory_space<vmem>>, vector<16x256xf32>
    %cst_29 = arith.constant 0.000000e+00 : f32
    %56 = vector.shape_cast %27 : vector<1x256xi1> to vector<1x256xi1>
    %57 = vector.broadcast %56 : vector<1x256xi1> to vector<16x256xi1>
    %58 = vector.broadcast %cst_29 : f32 to vector<16x256xf32>
    %59 = arith.select %57, %55, %58 : vector<16x256xi1>, vector<16x256xf32>
    %60 = arith.truncf %59 : vector<16x256xf32> to vector<16x256xbf16>
    %c80 = arith.constant 80 : index
    %c0_30 = arith.constant 0 : index
    %61 = vector.load %arg10[%c80, %c0_30] : memref<144x256xbf16, #tpu.memory_space<vmem>>, vector<16x256xbf16>
    tpu.vector_store %arg10[%c80, %c0_30], %60 {strides = array<i32>} : memref<144x256xbf16, #tpu.memory_space<vmem>>, vector<16x256xbf16>,
    %c0_31 = arith.constant 0 : index
    %c32_32 = arith.constant 32 : index
    %62 = vector.load %arg9[%c0_31, %c32_32] : memref<16x290xf32, #tpu.memory_space<vmem>>, vector<16x256xf32>
    %cst_33 = arith.constant 0.000000e+00 : f32
    %63 = vector.shape_cast %25 : vector<1x256xi1> to vector<1x256xi1>
    %64 = vector.broadcast %63 : vector<1x256xi1> to vector<16x256xi1>
    %65 = vector.broadcast %cst_33 : f32 to vector<16x256xf32>
    %66 = arith.select %64, %62, %65 : vector<16x256xi1>, vector<16x256xf32>
    %67 = arith.truncf %66 : vector<16x256xf32> to vector<16x256xbf16>
    %c96 = arith.constant 96 : index
    %c0_34 = arith.constant 0 : index
    %68 = vector.load %arg10[%c96, %c0_34] : memref<144x256xbf16, #tpu.memory_space<vmem>>, vector<16x256xbf16>
    tpu.vector_store %arg10[%c96, %c0_34], %67 {strides = array<i32>} : memref<144x256xbf16, #tpu.memory_space<vmem>>, vector<16x256xbf16>,
    %c0_35 = arith.constant 0 : index
    %c33 = arith.constant 33 : index
    %69 = vector.load %arg9[%c0_35, %c33] : memref<16x290xf32, #tpu.memory_space<vmem>>, vector<16x256xf32>
    %70 = arith.truncf %69 : vector<16x256xf32> to vector<16x256xbf16>
    %c112 = arith.constant 112 : index
    %c0_36 = arith.constant 0 : index
    %71 = vector.load %arg10[%c112, %c0_36] : memref<144x256xbf16, #tpu.memory_space<vmem>>, vector<16x256xbf16>
    tpu.vector_store %arg10[%c112, %c0_36], %70 {strides = array<i32>} : memref<144x256xbf16, #tpu.memory_space<vmem>>, vector<16x256xbf16>,
    %c0_37 = arith.constant 0 : index
    %c34 = arith.constant 34 : index
    %72 = vector.load %arg9[%c0_37, %c34] : memref<16x290xf32, #tpu.memory_space<vmem>>, vector<16x256xf32>
    %cst_38 = arith.constant 0.000000e+00 : f32
    %73 = vector.shape_cast %27 : vector<1x256xi1> to vector<1x256xi1>
    %74 = vector.broadcast %73 : vector<1x256xi1> to vector<16x256xi1>
    %75 = vector.broadcast %cst_38 : f32 to vector<16x256xf32>
    %76 = arith.select %74, %72, %75 : vector<16x256xi1>, vector<16x256xf32>
    %77 = arith.truncf %76 : vector<16x256xf32> to vector<16x256xbf16>
    %c128 = arith.constant 128 : index
    %c0_39 = arith.constant 0 : index
    %78 = vector.load %arg10[%c128, %c0_39] : memref<144x256xbf16, #tpu.memory_space<vmem>>, vector<16x256xbf16>
    tpu.vector_store %arg10[%c128, %c0_39], %77 {strides = array<i32>} : memref<144x256xbf16, #tpu.memory_space<vmem>>, vector<16x256xbf16>,
    %c0_40 = arith.constant 0 : index
    %c0_41 = arith.constant 0 : index
    %79 = vector.load %arg2[%c0_40, %c0_41] : memref<4x144xbf16, #tpu.memory_space<vmem>>, vector<4x144xbf16>
    %c0_42 = arith.constant 0 : index
    %c0_43 = arith.constant 0 : index
    %80 = vector.load %arg10[%c0_42, %c0_43] : memref<144x256xbf16, #tpu.memory_space<vmem>>, vector<144x256xbf16>
    %cst_44 = arith.constant dense<0.000000e+00> : vector<4x256xf32>
    %81 = tpu.matmul %79, %80, %cst_44 {dimension_numbers = #tpu.dot_dimension_numbers<[1], [0], [0], [1], [0, 0, 1, 1], [], []>} : vector<4x144xbf16>, vector<144x256xbf16>, vector<4x256xf32> -> vector<4x256xf32>
    %c0_45 = arith.constant 0 : index
    %c0_46 = arith.constant 0 : index
    %82 = vector.load %arg3[%c0_45, %c0_46] : memref<4x1xf32, #tpu.memory_space<vmem>>, vector<4x1xf32>
    %83 = vector.broadcast %82 : vector<4x1xf32> to vector<4x256xf32>
    %84 = arith.mulf %81, %83 : vector<4x256xf32>
    %c0_47 = arith.constant 0 : index
    %c0_48 = arith.constant 0 : index
    %85 = vector.load %arg4[%c0_47, %c0_48] : memref<4x1xf32, #tpu.memory_space<vmem>>, vector<4x1xf32>
    %86 = vector.broadcast %85 : vector<4x1xf32> to vector<4x256xf32>
    %87 = arith.addf %84, %86 : vector<4x256xf32>
    %cst_49 = arith.constant 0.000000e+00 : f32
    %88 = vector.broadcast %cst_49 : f32 to vector<4x256xf32>
    %89 = arith.maximumf %87, %88 : vector<4x256xf32>
    %c0_50 = arith.constant 0 : index
    %c0_51 = arith.constant 0 : index
    %90 = vector.load %arg5[%c0_50, %c0_51] : memref<16x4xbf16, #tpu.memory_space<vmem>>, vector<16x4xbf16>
    %91 = arith.truncf %89 : vector<4x256xf32> to vector<4x256xbf16>
    %cst_52 = arith.constant dense<0.000000e+00> : vector<16x256xf32>
    %92 = tpu.matmul %90, %91, %cst_52 {dimension_numbers = #tpu.dot_dimension_numbers<[1], [0], [0], [1], [0, 0, 1, 1], [], []>} : vector<16x4xbf16>, vector<4x256xbf16>, vector<16x256xf32> -> vector<16x256xf32>
    %c0_53 = arith.constant 0 : index
    %c0_54 = arith.constant 0 : index
    %93 = vector.load %arg6[%c0_53, %c0_54] : memref<16x1xf32, #tpu.memory_space<vmem>>, vector<16x1xf32>
    %94 = vector.broadcast %93 : vector<16x1xf32> to vector<16x256xf32>
    %95 = arith.mulf %92, %94 : vector<16x256xf32>
    %c0_55 = arith.constant 0 : index
    %c0_56 = arith.constant 0 : index
    %96 = vector.load %arg7[%c0_55, %c0_56] : memref<16x1xf32, #tpu.memory_space<vmem>>, vector<16x1xf32>
    %97 = vector.broadcast %96 : vector<16x1xf32> to vector<16x256xf32>
    %98 = arith.addf %95, %97 : vector<16x256xf32>
    %cst_57 = arith.constant 0.000000e+00 : f32
    %99 = vector.broadcast %cst_57 : f32 to vector<16x256xf32>
    %100 = arith.maximumf %98, %99 : vector<16x256xf32>
    %101 = arith.truncf %100 : vector<16x256xf32> to vector<16x256xbf16>
    %c0_58 = arith.constant 0 : index
    %c0_59 = arith.constant 0 : index
    %c0_60 = arith.constant 0 : index
    %102 = vector.load %arg8[%c0_58, %c0_59, %c0_60] : memref<1x16x256xbf16, #tpu.memory_space<vmem>>, vector<1x16x256xbf16>
    %103 = vector.shape_cast %102 : vector<1x16x256xbf16> to vector<16x256xbf16>
    %104 = vector.shape_cast %101 : vector<16x256xbf16> to vector<1x16x256xbf16>
    tpu.vector_store %arg8[%c0_58, %c0_59, %c0_60], %104 {strides = array<i32>} : memref<1x16x256xbf16, #tpu.memory_space<vmem>>, vector<1x16x256xbf16>,
    return
  }
  func.func @transform_0(%arg0: i32) -> (i32, i32, i32) {
    %c0_i32 = arith.constant 0 : i32
    %c0_i32_0 = arith.constant 0 : i32
    %c0_i32_1 = arith.constant 0 : i32
    return %arg0, %c0_i32, %c0_i32_0 : i32, i32, i32
  }
  func.func @transform_1(%arg0: i32) -> (i32, i32) {
    %c0_i32 = arith.constant 0 : i32
    %c0_i32_0 = arith.constant 0 : i32
    %c0_i32_1 = arith.constant 0 : i32
    return %c0_i32, %c0_i32_0 : i32, i32
  }
  func.func @transform_2(%arg0: i32) -> (i32, i32) {
    %c0_i32 = arith.constant 0 : i32
    %c0_i32_0 = arith.constant 0 : i32
    %c0_i32_1 = arith.constant 0 : i32
    return %c0_i32, %c0_i32_0 : i32, i32
  }
  func.func @transform_3(%arg0: i32) -> (i32, i32) {
    %c0_i32 = arith.constant 0 : i32
    %c0_i32_0 = arith.constant 0 : i32
    %c0_i32_1 = arith.constant 0 : i32
    return %c0_i32, %c0_i32_0 : i32, i32
  }
  func.func @transform_4(%arg0: i32) -> (i32, i32) {
    %c0_i32 = arith.constant 0 : i32
    %c0_i32_0 = arith.constant 0 : i32
    %c0_i32_1 = arith.constant 0 : i32
    return %c0_i32, %c0_i32_0 : i32, i32
  }
  func.func @transform_5(%arg0: i32) -> (i32, i32) {
    %c0_i32 = arith.constant 0 : i32
    %c0_i32_0 = arith.constant 0 : i32
    %c0_i32_1 = arith.constant 0 : i32
    return %c0_i32, %c0_i32_0 : i32, i32
  }
  func.func @transform_6(%arg0: i32) -> (i32, i32) {
    %c0_i32 = arith.constant 0 : i32
    %c0_i32_0 = arith.constant 0 : i32
    %c0_i32_1 = arith.constant 0 : i32
    return %c0_i32, %c0_i32_0 : i32, i32
  }
  func.func @transform_7(%arg0: i32) -> (i32, i32, i32) {
    %c0_i32 = arith.constant 0 : i32
    %c0_i32_0 = arith.constant 0 : i32
    %c0_i32_1 = arith.constant 0 : i32
    return %arg0, %c0_i32, %c0_i32_0 : i32, i32, i32
  }
}

module attributes {stable_mosaic.version = 11 : i64} {
  func.func @_stage_b_kernel(%arg0: i32, %arg1: memref<1x4x1024xbf16, #tpu.memory_space<vmem>>, %arg2: memref<4x4xbf16, #tpu.memory_space<vmem>>, %arg3: memref<1x1xf32, #tpu.memory_space<vmem>>, %arg4: memref<16x36xbf16, #tpu.memory_space<vmem>>, %arg5: memref<16x36xbf16, #tpu.memory_space<vmem>>, %arg6: memref<16x1xf32, #tpu.memory_space<vmem>>, %arg7: memref<16x1xf32, #tpu.memory_space<vmem>>, %arg8: memref<4x16xbf16, #tpu.memory_space<vmem>>, %arg9: memref<1x1xf32, #tpu.memory_space<vmem>>, %arg10: memref<1x4x1024xf32, #tpu.memory_space<vmem>>, %arg11: memref<4x1090xf32, #tpu.memory_space<vmem>>, %arg12: memref<4x1090xf32, #tpu.memory_space<vmem>>, %arg13: memref<36x1024xbf16, #tpu.memory_space<vmem>>, %arg14: memref<36x1024xf32, #tpu.memory_space<vmem>>) attributes {dimension_semantics = [#tpu.dimension_semantics<parallel>], iteration_bounds = array<i64: 2>, scalar_prefetch = 0 : i64, scratch_operands = 4 : i64, tpu.core_type = #tpu.core_type<tc>, window_params = [{transform_indices = @transform_0, window_bounds = array<i64: 1, 4, 1024>}, {pipeline_mode = #tpu.pipeline_mode<synchronous>, transform_indices = @transform_1, window_bounds = array<i64: 4, 4>}, {pipeline_mode = #tpu.pipeline_mode<synchronous>, transform_indices = @transform_2, window_bounds = array<i64: 1, 1>}, {pipeline_mode = #tpu.pipeline_mode<synchronous>, transform_indices = @transform_3, window_bounds = array<i64: 16, 36>}, {pipeline_mode = #tpu.pipeline_mode<synchronous>, transform_indices = @transform_4, window_bounds = array<i64: 16, 36>}, {pipeline_mode = #tpu.pipeline_mode<synchronous>, transform_indices = @transform_5, window_bounds = array<i64: 16, 1>}, {pipeline_mode = #tpu.pipeline_mode<synchronous>, transform_indices = @transform_6, window_bounds = array<i64: 16, 1>}, {pipeline_mode = #tpu.pipeline_mode<synchronous>, transform_indices = @transform_7, window_bounds = array<i64: 4, 16>}, {pipeline_mode = #tpu.pipeline_mode<synchronous>, transform_indices = @transform_8, window_bounds = array<i64: 1, 1>}, {transform_indices = @transform_9, window_bounds = array<i64: 1, 4, 1024>}]} {
    %c0 = arith.constant 0 : index
    %c0_0 = arith.constant 0 : index
    %c0_1 = arith.constant 0 : index
    %0 = vector.load %arg1[%c0, %c0_0, %c0_1] : memref<1x4x1024xbf16, #tpu.memory_space<vmem>>, vector<1x4x1024xbf16>
    %1 = vector.shape_cast %0 : vector<1x4x1024xbf16> to vector<4x1024xbf16>
    %2 = tpu.iota {dimensions = array<i32: 1>} : vector<1x1024xi32>
    %c32_i32 = arith.constant 32 : i32
    %c0_i32 = arith.constant 0 : i32
    %3 = arith.cmpi eq, %c32_i32, %c0_i32 : i32
    %c1_i32 = arith.constant 1 : i32
    %4 = arith.select %3, %c1_i32, %c32_i32 : i32
    %5 = vector.broadcast %4 : i32 to vector<1x1024xi32>
    %6 = arith.remsi %2, %5 : vector<1x1024xi32>
    %c0_i32_2 = arith.constant 0 : i32
    %7 = vector.broadcast %c0_i32_2 : i32 to vector<1x1024xi32>
    %8 = arith.cmpi ne, %6, %7 : vector<1x1024xi32>
    %c0_i32_3 = arith.constant 0 : i32
    %9 = vector.broadcast %c0_i32_3 : i32 to vector<1x1024xi32>
    %10 = arith.cmpi slt, %6, %9 : vector<1x1024xi32>
    %c0_i32_4 = arith.constant 0 : i32
    %11 = arith.cmpi slt, %4, %c0_i32_4 : i32
    %12 = vector.broadcast %11 : i1 to vector<1x1024xi1>
    %13 = vector.broadcast %12 : vector<1x1024xi1> to vector<1x1024xi1>
    %14 = arith.xori %10, %13 : vector<1x1024xi1>
    %15 = arith.andi %14, %8 : vector<1x1024xi1>
    %16 = vector.broadcast %4 : i32 to vector<1x1024xi32>
    %17 = arith.addi %6, %16 : vector<1x1024xi32>
    %18 = arith.select %15, %17, %6 : vector<1x1024xi1>, vector<1x1024xi32>
    %c0_i32_5 = arith.constant 0 : i32
    %19 = vector.broadcast %c0_i32_5 : i32 to vector<1x1024xi32>
    %20 = arith.cmpi ne, %18, %19 : vector<1x1024xi32>
    %c31_i32 = arith.constant 31 : i32
    %21 = vector.broadcast %c31_i32 : i32 to vector<1x1024xi32>
    %22 = arith.cmpi ne, %18, %21 : vector<1x1024xi32>
    %c0_6 = arith.constant 0 : index
    %c0_7 = arith.constant 0 : index
    %23 = vector.load %arg2[%c0_6, %c0_7] : memref<4x4xbf16, #tpu.memory_space<vmem>>, vector<4x4xbf16>
    %cst = arith.constant dense<0.000000e+00> : vector<4x1024xf32>
    %24 = tpu.matmul %23, %1, %cst {dimension_numbers = #tpu.dot_dimension_numbers<[1], [0], [0], [1], [0, 0, 1, 1], [], []>} : vector<4x4xbf16>, vector<4x1024xbf16>, vector<4x1024xf32> -> vector<4x1024xf32>
    %c0_8 = arith.constant 0 : index
    %c0_9 = arith.constant 0 : index
    %25 = vector.load %arg3[%c0_8, %c0_9] : memref<1x1xf32, #tpu.memory_space<vmem>>, vector<1x1xf32>
    %26 = vector.broadcast %25 : vector<1x1xf32> to vector<4x1024xf32>
    %27 = arith.addf %24, %26 : vector<4x1024xf32>
    %28 = arith.negf %27 : vector<4x1024xf32>
    %29 = math.exp %28 : vector<4x1024xf32>
    %cst_10 = arith.constant 1.000000e+00 : f32
    %30 = vector.broadcast %cst_10 : f32 to vector<4x1024xf32>
    %31 = arith.addf %30, %29 : vector<4x1024xf32>
    %32 = arith.divf %30, %31 : vector<4x1024xf32>
    %cst_11 = arith.constant 0.000000e+00 : f32
    %33 = vector.broadcast %cst_11 : f32 to vector<4x33xf32>
    %c0_12 = arith.constant 0 : index
    %c0_13 = arith.constant 0 : index
    %34 = vector.load %arg11[%c0_12, %c0_13] : memref<4x1090xf32, #tpu.memory_space<vmem>>, vector<4x33xf32>
    tpu.vector_store %arg11[%c0_12, %c0_13], %33 {strides = array<i32>} : memref<4x1090xf32, #tpu.memory_space<vmem>>, vector<4x33xf32>,
    %cst_14 = arith.constant 0.000000e+00 : f32
    %35 = vector.broadcast %cst_14 : f32 to vector<4x33xf32>
    %c0_15 = arith.constant 0 : index
    %c1057 = arith.constant 1057 : index
    %36 = vector.load %arg11[%c0_15, %c1057] : memref<4x1090xf32, #tpu.memory_space<vmem>>, vector<4x33xf32>
    tpu.vector_store %arg11[%c0_15, %c1057], %35 {strides = array<i32>} : memref<4x1090xf32, #tpu.memory_space<vmem>>, vector<4x33xf32>,
    %37 = arith.extf %1 : vector<4x1024xbf16> to vector<4x1024xf32>
    %c0_16 = arith.constant 0 : index
    %c33 = arith.constant 33 : index
    %38 = vector.load %arg11[%c0_16, %c33] : memref<4x1090xf32, #tpu.memory_space<vmem>>, vector<4x1024xf32>
    tpu.vector_store %arg11[%c0_16, %c33], %37 {strides = array<i32>} : memref<4x1090xf32, #tpu.memory_space<vmem>>, vector<4x1024xf32>,
    %cst_17 = arith.constant 0.000000e+00 : f32
    %39 = vector.broadcast %cst_17 : f32 to vector<4x33xf32>
    %c0_18 = arith.constant 0 : index
    %c0_19 = arith.constant 0 : index
    %40 = vector.load %arg12[%c0_18, %c0_19] : memref<4x1090xf32, #tpu.memory_space<vmem>>, vector<4x33xf32>
    tpu.vector_store %arg12[%c0_18, %c0_19], %39 {strides = array<i32>} : memref<4x1090xf32, #tpu.memory_space<vmem>>, vector<4x33xf32>,
    %cst_20 = arith.constant 0.000000e+00 : f32
    %41 = vector.broadcast %cst_20 : f32 to vector<4x33xf32>
    %c0_21 = arith.constant 0 : index
    %c1057_22 = arith.constant 1057 : index
    %42 = vector.load %arg12[%c0_21, %c1057_22] : memref<4x1090xf32, #tpu.memory_space<vmem>>, vector<4x33xf32>
    tpu.vector_store %arg12[%c0_21, %c1057_22], %41 {strides = array<i32>} : memref<4x1090xf32, #tpu.memory_space<vmem>>, vector<4x33xf32>,
    %c0_23 = arith.constant 0 : index
    %c33_24 = arith.constant 33 : index
    %43 = vector.load %arg12[%c0_23, %c33_24] : memref<4x1090xf32, #tpu.memory_space<vmem>>, vector<4x1024xf32>
    tpu.vector_store %arg12[%c0_23, %c33_24], %32 {strides = array<i32>} : memref<4x1090xf32, #tpu.memory_space<vmem>>, vector<4x1024xf32>,
    %c0_25 = arith.constant 0 : index
    %c0_26 = arith.constant 0 : index
    %44 = vector.load %arg11[%c0_25, %c0_26] : memref<4x1090xf32, #tpu.memory_space<vmem>>, vector<4x1024xf32>
    %cst_27 = arith.constant 0.000000e+00 : f32
    %45 = vector.shape_cast %20 : vector<1x1024xi1> to vector<1x1024xi1>
    %46 = vector.broadcast %45 : vector<1x1024xi1> to vector<4x1024xi1>
    %47 = vector.broadcast %cst_27 : f32 to vector<4x1024xf32>
    %48 = arith.select %46, %44, %47 : vector<4x1024xi1>, vector<4x1024xf32>
    %49 = arith.truncf %48 : vector<4x1024xf32> to vector<4x1024xbf16>
    %c0_28 = arith.constant 0 : index
    %c0_29 = arith.constant 0 : index
    %50 = vector.load %arg13[%c0_28, %c0_29] : memref<36x1024xbf16, #tpu.memory_space<vmem>>, vector<4x1024xbf16>
    tpu.vector_store %arg13[%c0_28, %c0_29], %49 {strides = array<i32>} : memref<36x1024xbf16, #tpu.memory_space<vmem>>, vector<4x1024xbf16>,
    %c0_30 = arith.constant 0 : index
    %c1 = arith.constant 1 : index
    %51 = vector.load %arg11[%c0_30, %c1] : memref<4x1090xf32, #tpu.memory_space<vmem>>, vector<4x1024xf32>
    %52 = arith.truncf %51 : vector<4x1024xf32> to vector<4x1024xbf16>
    %c4 = arith.constant 4 : index
    %c0_31 = arith.constant 0 : index
    %53 = vector.load %arg13[%c4, %c0_31] : memref<36x1024xbf16, #tpu.memory_space<vmem>>, vector<4x1024xbf16>
    tpu.vector_store %arg13[%c4, %c0_31], %52 {strides = array<i32>} : memref<36x1024xbf16, #tpu.memory_space<vmem>>, vector<4x1024xbf16>,
    %c0_32 = arith.constant 0 : index
    %c2 = arith.constant 2 : index
    %54 = vector.load %arg11[%c0_32, %c2] : memref<4x1090xf32, #tpu.memory_space<vmem>>, vector<4x1024xf32>
    %cst_33 = arith.constant 0.000000e+00 : f32
    %55 = vector.shape_cast %22 : vector<1x1024xi1> to vector<1x1024xi1>
    %56 = vector.broadcast %55 : vector<1x1024xi1> to vector<4x1024xi1>
    %57 = vector.broadcast %cst_33 : f32 to vector<4x1024xf32>
    %58 = arith.select %56, %54, %57 : vector<4x1024xi1>, vector<4x1024xf32>
    %59 = arith.truncf %58 : vector<4x1024xf32> to vector<4x1024xbf16>
    %c8 = arith.constant 8 : index
    %c0_34 = arith.constant 0 : index
    %60 = vector.load %arg13[%c8, %c0_34] : memref<36x1024xbf16, #tpu.memory_space<vmem>>, vector<4x1024xbf16>
    tpu.vector_store %arg13[%c8, %c0_34], %59 {strides = array<i32>} : memref<36x1024xbf16, #tpu.memory_space<vmem>>, vector<4x1024xbf16>,
    %c0_35 = arith.constant 0 : index
    %c32 = arith.constant 32 : index
    %61 = vector.load %arg11[%c0_35, %c32] : memref<4x1090xf32, #tpu.memory_space<vmem>>, vector<4x1024xf32>
    %cst_36 = arith.constant 0.000000e+00 : f32
    %62 = vector.shape_cast %20 : vector<1x1024xi1> to vector<1x1024xi1>
    %63 = vector.broadcast %62 : vector<1x1024xi1> to vector<4x1024xi1>
    %64 = vector.broadcast %cst_36 : f32 to vector<4x1024xf32>
    %65 = arith.select %63, %61, %64 : vector<4x1024xi1>, vector<4x1024xf32>
    %66 = arith.truncf %65 : vector<4x1024xf32> to vector<4x1024xbf16>
    %c12 = arith.constant 12 : index
    %c0_37 = arith.constant 0 : index
    %67 = vector.load %arg13[%c12, %c0_37] : memref<36x1024xbf16, #tpu.memory_space<vmem>>, vector<4x1024xbf16>
    tpu.vector_store %arg13[%c12, %c0_37], %66 {strides = array<i32>} : memref<36x1024xbf16, #tpu.memory_space<vmem>>, vector<4x1024xbf16>,
    %c0_38 = arith.constant 0 : index
    %c33_39 = arith.constant 33 : index
    %68 = vector.load %arg11[%c0_38, %c33_39] : memref<4x1090xf32, #tpu.memory_space<vmem>>, vector<4x1024xf32>
    %69 = arith.truncf %68 : vector<4x1024xf32> to vector<4x1024xbf16>
    %c16 = arith.constant 16 : index
    %c0_40 = arith.constant 0 : index
    %70 = vector.load %arg13[%c16, %c0_40] : memref<36x1024xbf16, #tpu.memory_space<vmem>>, vector<4x1024xbf16>
    tpu.vector_store %arg13[%c16, %c0_40], %69 {strides = array<i32>} : memref<36x1024xbf16, #tpu.memory_space<vmem>>, vector<4x1024xbf16>,
    %c0_41 = arith.constant 0 : index
    %c34 = arith.constant 34 : index
    %71 = vector.load %arg11[%c0_41, %c34] : memref<4x1090xf32, #tpu.memory_space<vmem>>, vector<4x1024xf32>
    %cst_42 = arith.constant 0.000000e+00 : f32
    %72 = vector.shape_cast %22 : vector<1x1024xi1> to vector<1x1024xi1>
    %73 = vector.broadcast %72 : vector<1x1024xi1> to vector<4x1024xi1>
    %74 = vector.broadcast %cst_42 : f32 to vector<4x1024xf32>
    %75 = arith.select %73, %71, %74 : vector<4x1024xi1>, vector<4x1024xf32>
    %76 = arith.truncf %75 : vector<4x1024xf32> to vector<4x1024xbf16>
    %c20 = arith.constant 20 : index
    %c0_43 = arith.constant 0 : index
    %77 = vector.load %arg13[%c20, %c0_43] : memref<36x1024xbf16, #tpu.memory_space<vmem>>, vector<4x1024xbf16>
    tpu.vector_store %arg13[%c20, %c0_43], %76 {strides = array<i32>} : memref<36x1024xbf16, #tpu.memory_space<vmem>>, vector<4x1024xbf16>,
    %c0_44 = arith.constant 0 : index
    %c64 = arith.constant 64 : index
    %78 = vector.load %arg11[%c0_44, %c64] : memref<4x1090xf32, #tpu.memory_space<vmem>>, vector<4x1024xf32>
    %cst_45 = arith.constant 0.000000e+00 : f32
    %79 = vector.shape_cast %20 : vector<1x1024xi1> to vector<1x1024xi1>
    %80 = vector.broadcast %79 : vector<1x1024xi1> to vector<4x1024xi1>
    %81 = vector.broadcast %cst_45 : f32 to vector<4x1024xf32>
    %82 = arith.select %80, %78, %81 : vector<4x1024xi1>, vector<4x1024xf32>
    %83 = arith.truncf %82 : vector<4x1024xf32> to vector<4x1024xbf16>
    %c24 = arith.constant 24 : index
    %c0_46 = arith.constant 0 : index
    %84 = vector.load %arg13[%c24, %c0_46] : memref<36x1024xbf16, #tpu.memory_space<vmem>>, vector<4x1024xbf16>
    tpu.vector_store %arg13[%c24, %c0_46], %83 {strides = array<i32>} : memref<36x1024xbf16, #tpu.memory_space<vmem>>, vector<4x1024xbf16>,
    %c0_47 = arith.constant 0 : index
    %c65 = arith.constant 65 : index
    %85 = vector.load %arg11[%c0_47, %c65] : memref<4x1090xf32, #tpu.memory_space<vmem>>, vector<4x1024xf32>
    %86 = arith.truncf %85 : vector<4x1024xf32> to vector<4x1024xbf16>
    %c28 = arith.constant 28 : index
    %c0_48 = arith.constant 0 : index
    %87 = vector.load %arg13[%c28, %c0_48] : memref<36x1024xbf16, #tpu.memory_space<vmem>>, vector<4x1024xbf16>
    tpu.vector_store %arg13[%c28, %c0_48], %86 {strides = array<i32>} : memref<36x1024xbf16, #tpu.memory_space<vmem>>, vector<4x1024xbf16>,
    %c0_49 = arith.constant 0 : index
    %c66 = arith.constant 66 : index
    %88 = vector.load %arg11[%c0_49, %c66] : memref<4x1090xf32, #tpu.memory_space<vmem>>, vector<4x1024xf32>
    %cst_50 = arith.constant 0.000000e+00 : f32
    %89 = vector.shape_cast %22 : vector<1x1024xi1> to vector<1x1024xi1>
    %90 = vector.broadcast %89 : vector<1x1024xi1> to vector<4x1024xi1>
    %91 = vector.broadcast %cst_50 : f32 to vector<4x1024xf32>
    %92 = arith.select %90, %88, %91 : vector<4x1024xi1>, vector<4x1024xf32>
    %93 = arith.truncf %92 : vector<4x1024xf32> to vector<4x1024xbf16>
    %c32_51 = arith.constant 32 : index
    %c0_52 = arith.constant 0 : index
    %94 = vector.load %arg13[%c32_51, %c0_52] : memref<36x1024xbf16, #tpu.memory_space<vmem>>, vector<4x1024xbf16>
    tpu.vector_store %arg13[%c32_51, %c0_52], %93 {strides = array<i32>} : memref<36x1024xbf16, #tpu.memory_space<vmem>>, vector<4x1024xbf16>,
    %c3 = arith.constant 3 : index
    %c0_53 = arith.constant 0 : index
    %95 = vector.load %arg12[%c3, %c0_53] : memref<4x1090xf32, #tpu.memory_space<vmem>>, vector<1x1024xf32>
    %cst_54 = arith.constant 0.000000e+00 : f32
    %96 = vector.broadcast %cst_54 : f32 to vector<1x1024xf32>
    %97 = arith.select %20, %95, %96 : vector<1x1024xi1>, vector<1x1024xf32>
    %c0_55 = arith.constant 0 : index
    %c0_56 = arith.constant 0 : index
    %98 = vector.load %arg14[%c0_55, %c0_56] : memref<36x1024xf32, #tpu.memory_space<vmem>>, vector<1x1024xf32>
    tpu.vector_store %arg14[%c0_55, %c0_56], %97 {strides = array<i32>} : memref<36x1024xf32, #tpu.memory_space<vmem>>, vector<1x1024xf32>,
    %c2_57 = arith.constant 2 : index
    %c1_58 = arith.constant 1 : index
    %99 = vector.load %arg12[%c2_57, %c1_58] : memref<4x1090xf32, #tpu.memory_space<vmem>>, vector<1x1024xf32>
    %c1_59 = arith.constant 1 : index
    %c0_60 = arith.constant 0 : index
    %100 = vector.load %arg14[%c1_59, %c0_60] : memref<36x1024xf32, #tpu.memory_space<vmem>>, vector<1x1024xf32>
    tpu.vector_store %arg14[%c1_59, %c0_60], %99 {strides = array<i32>} : memref<36x1024xf32, #tpu.memory_space<vmem>>, vector<1x1024xf32>,
    %c3_61 = arith.constant 3 : index
    %c1_62 = arith.constant 1 : index
    %101 = vector.load %arg12[%c3_61, %c1_62] : memref<4x1090xf32, #tpu.memory_space<vmem>>, vector<1x1024xf32>
    %c2_63 = arith.constant 2 : index
    %c0_64 = arith.constant 0 : index
    %102 = vector.load %arg14[%c2_63, %c0_64] : memref<36x1024xf32, #tpu.memory_space<vmem>>, vector<1x1024xf32>
    tpu.vector_store %arg14[%c2_63, %c0_64], %101 {strides = array<i32>} : memref<36x1024xf32, #tpu.memory_space<vmem>>, vector<1x1024xf32>,
    %c1_65 = arith.constant 1 : index
    %c32_66 = arith.constant 32 : index
    %103 = vector.load %arg12[%c1_65, %c32_66] : memref<4x1090xf32, #tpu.memory_space<vmem>>, vector<1x1024xf32>
    %cst_67 = arith.constant 0.000000e+00 : f32
    %104 = vector.broadcast %cst_67 : f32 to vector<1x1024xf32>
    %105 = arith.select %20, %103, %104 : vector<1x1024xi1>, vector<1x1024xf32>
    %c3_68 = arith.constant 3 : index
    %c0_69 = arith.constant 0 : index
    %106 = vector.load %arg14[%c3_68, %c0_69] : memref<36x1024xf32, #tpu.memory_space<vmem>>, vector<1x1024xf32>
    tpu.vector_store %arg14[%c3_68, %c0_69], %105 {strides = array<i32>} : memref<36x1024xf32, #tpu.memory_space<vmem>>, vector<1x1024xf32>,
    %c0_70 = arith.constant 0 : index
    %c33_71 = arith.constant 33 : index
    %107 = vector.load %arg12[%c0_70, %c33_71] : memref<4x1090xf32, #tpu.memory_space<vmem>>, vector<1x1024xf32>
    %c4_72 = arith.constant 4 : index
    %c0_73 = arith.constant 0 : index
    %108 = vector.load %arg14[%c4_72, %c0_73] : memref<36x1024xf32, #tpu.memory_space<vmem>>, vector<1x1024xf32>
    tpu.vector_store %arg14[%c4_72, %c0_73], %107 {strides = array<i32>} : memref<36x1024xf32, #tpu.memory_space<vmem>>, vector<1x1024xf32>,
    %c1_74 = arith.constant 1 : index
    %c33_75 = arith.constant 33 : index
    %109 = vector.load %arg12[%c1_74, %c33_75] : memref<4x1090xf32, #tpu.memory_space<vmem>>, vector<1x1024xf32>
    %c5 = arith.constant 5 : index
    %c0_76 = arith.constant 0 : index
    %110 = vector.load %arg14[%c5, %c0_76] : memref<36x1024xf32, #tpu.memory_space<vmem>>, vector<1x1024xf32>
    tpu.vector_store %arg14[%c5, %c0_76], %109 {strides = array<i32>} : memref<36x1024xf32, #tpu.memory_space<vmem>>, vector<1x1024xf32>,
    %c3_77 = arith.constant 3 : index
    %c32_78 = arith.constant 32 : index
    %111 = vector.load %arg12[%c3_77, %c32_78] : memref<4x1090xf32, #tpu.memory_space<vmem>>, vector<1x1024xf32>
    %cst_79 = arith.constant 0.000000e+00 : f32
    %112 = vector.broadcast %cst_79 : f32 to vector<1x1024xf32>
    %113 = arith.select %20, %111, %112 : vector<1x1024xi1>, vector<1x1024xf32>
    %c6 = arith.constant 6 : index
    %c0_80 = arith.constant 0 : index
    %114 = vector.load %arg14[%c6, %c0_80] : memref<36x1024xf32, #tpu.memory_space<vmem>>, vector<1x1024xf32>
    tpu.vector_store %arg14[%c6, %c0_80], %113 {strides = array<i32>} : memref<36x1024xf32, #tpu.memory_space<vmem>>, vector<1x1024xf32>,
    %c2_81 = arith.constant 2 : index
    %c33_82 = arith.constant 33 : index
    %115 = vector.load %arg12[%c2_81, %c33_82] : memref<4x1090xf32, #tpu.memory_space<vmem>>, vector<1x1024xf32>
    %c7 = arith.constant 7 : index
    %c0_83 = arith.constant 0 : index
    %116 = vector.load %arg14[%c7, %c0_83] : memref<36x1024xf32, #tpu.memory_space<vmem>>, vector<1x1024xf32>
    tpu.vector_store %arg14[%c7, %c0_83], %115 {strides = array<i32>} : memref<36x1024xf32, #tpu.memory_space<vmem>>, vector<1x1024xf32>,
    %c3_84 = arith.constant 3 : index
    %c33_85 = arith.constant 33 : index
    %117 = vector.load %arg12[%c3_84, %c33_85] : memref<4x1090xf32, #tpu.memory_space<vmem>>, vector<1x1024xf32>
    %c8_86 = arith.constant 8 : index
    %c0_87 = arith.constant 0 : index
    %118 = vector.load %arg14[%c8_86, %c0_87] : memref<36x1024xf32, #tpu.memory_space<vmem>>, vector<1x1024xf32>
    tpu.vector_store %arg14[%c8_86, %c0_87], %117 {strides = array<i32>} : memref<36x1024xf32, #tpu.memory_space<vmem>>, vector<1x1024xf32>,
    %c2_88 = arith.constant 2 : index
    %c1_89 = arith.constant 1 : index
    %119 = vector.load %arg12[%c2_88, %c1_89] : memref<4x1090xf32, #tpu.memory_space<vmem>>, vector<1x1024xf32>
    %c9 = arith.constant 9 : index
    %c0_90 = arith.constant 0 : index
    %120 = vector.load %arg14[%c9, %c0_90] : memref<36x1024xf32, #tpu.memory_space<vmem>>, vector<1x1024xf32>
    tpu.vector_store %arg14[%c9, %c0_90], %119 {strides = array<i32>} : memref<36x1024xf32, #tpu.memory_space<vmem>>, vector<1x1024xf32>,
    %c3_91 = arith.constant 3 : index
    %c1_92 = arith.constant 1 : index
    %121 = vector.load %arg12[%c3_91, %c1_92] : memref<4x1090xf32, #tpu.memory_space<vmem>>, vector<1x1024xf32>
    %c10 = arith.constant 10 : index
    %c0_93 = arith.constant 0 : index
    %122 = vector.load %arg14[%c10, %c0_93] : memref<36x1024xf32, #tpu.memory_space<vmem>>, vector<1x1024xf32>
    tpu.vector_store %arg14[%c10, %c0_93], %121 {strides = array<i32>} : memref<36x1024xf32, #tpu.memory_space<vmem>>, vector<1x1024xf32>,
    %c2_94 = arith.constant 2 : index
    %c2_95 = arith.constant 2 : index
    %123 = vector.load %arg12[%c2_94, %c2_95] : memref<4x1090xf32, #tpu.memory_space<vmem>>, vector<1x1024xf32>
    %cst_96 = arith.constant 0.000000e+00 : f32
    %124 = vector.broadcast %cst_96 : f32 to vector<1x1024xf32>
    %125 = arith.select %22, %123, %124 : vector<1x1024xi1>, vector<1x1024xf32>
    %c11 = arith.constant 11 : index
    %c0_97 = arith.constant 0 : index
    %126 = vector.load %arg14[%c11, %c0_97] : memref<36x1024xf32, #tpu.memory_space<vmem>>, vector<1x1024xf32>
    tpu.vector_store %arg14[%c11, %c0_97], %125 {strides = array<i32>} : memref<36x1024xf32, #tpu.memory_space<vmem>>, vector<1x1024xf32>,
    %c0_98 = arith.constant 0 : index
    %c33_99 = arith.constant 33 : index
    %127 = vector.load %arg12[%c0_98, %c33_99] : memref<4x1090xf32, #tpu.memory_space<vmem>>, vector<1x1024xf32>
    %c12_100 = arith.constant 12 : index
    %c0_101 = arith.constant 0 : index
    %128 = vector.load %arg14[%c12_100, %c0_101] : memref<36x1024xf32, #tpu.memory_space<vmem>>, vector<1x1024xf32>
    tpu.vector_store %arg14[%c12_100, %c0_101], %127 {strides = array<i32>} : memref<36x1024xf32, #tpu.memory_space<vmem>>, vector<1x1024xf32>,
    %c1_102 = arith.constant 1 : index
    %c33_103 = arith.constant 33 : index
    %129 = vector.load %arg12[%c1_102, %c33_103] : memref<4x1090xf32, #tpu.memory_space<vmem>>, vector<1x1024xf32>
    %c13 = arith.constant 13 : index
    %c0_104 = arith.constant 0 : index
    %130 = vector.load %arg14[%c13, %c0_104] : memref<36x1024xf32, #tpu.memory_space<vmem>>, vector<1x1024xf32>
    tpu.vector_store %arg14[%c13, %c0_104], %129 {strides = array<i32>} : memref<36x1024xf32, #tpu.memory_space<vmem>>, vector<1x1024xf32>,
    %c0_105 = arith.constant 0 : index
    %c34_106 = arith.constant 34 : index
    %131 = vector.load %arg12[%c0_105, %c34_106] : memref<4x1090xf32, #tpu.memory_space<vmem>>, vector<1x1024xf32>
    %cst_107 = arith.constant 0.000000e+00 : f32
    %132 = vector.broadcast %cst_107 : f32 to vector<1x1024xf32>
    %133 = arith.select %22, %131, %132 : vector<1x1024xi1>, vector<1x1024xf32>
    %c14 = arith.constant 14 : index
    %c0_108 = arith.constant 0 : index
    %134 = vector.load %arg14[%c14, %c0_108] : memref<36x1024xf32, #tpu.memory_space<vmem>>, vector<1x1024xf32>
    tpu.vector_store %arg14[%c14, %c0_108], %133 {strides = array<i32>} : memref<36x1024xf32, #tpu.memory_space<vmem>>, vector<1x1024xf32>,
    %c2_109 = arith.constant 2 : index
    %c33_110 = arith.constant 33 : index
    %135 = vector.load %arg12[%c2_109, %c33_110] : memref<4x1090xf32, #tpu.memory_space<vmem>>, vector<1x1024xf32>
    %c15 = arith.constant 15 : index
    %c0_111 = arith.constant 0 : index
    %136 = vector.load %arg14[%c15, %c0_111] : memref<36x1024xf32, #tpu.memory_space<vmem>>, vector<1x1024xf32>
    tpu.vector_store %arg14[%c15, %c0_111], %135 {strides = array<i32>} : memref<36x1024xf32, #tpu.memory_space<vmem>>, vector<1x1024xf32>,
    %c3_112 = arith.constant 3 : index
    %c33_113 = arith.constant 33 : index
    %137 = vector.load %arg12[%c3_112, %c33_113] : memref<4x1090xf32, #tpu.memory_space<vmem>>, vector<1x1024xf32>
    %c16_114 = arith.constant 16 : index
    %c0_115 = arith.constant 0 : index
    %138 = vector.load %arg14[%c16_114, %c0_115] : memref<36x1024xf32, #tpu.memory_space<vmem>>, vector<1x1024xf32>
    tpu.vector_store %arg14[%c16_114, %c0_115], %137 {strides = array<i32>} : memref<36x1024xf32, #tpu.memory_space<vmem>>, vector<1x1024xf32>,
    %c2_116 = arith.constant 2 : index
    %c34_117 = arith.constant 34 : index
    %139 = vector.load %arg12[%c2_116, %c34_117] : memref<4x1090xf32, #tpu.memory_space<vmem>>, vector<1x1024xf32>
    %cst_118 = arith.constant 0.000000e+00 : f32
    %140 = vector.broadcast %cst_118 : f32 to vector<1x1024xf32>
    %141 = arith.select %22, %139, %140 : vector<1x1024xi1>, vector<1x1024xf32>
    %c17 = arith.constant 17 : index
    %c0_119 = arith.constant 0 : index
    %142 = vector.load %arg14[%c17, %c0_119] : memref<36x1024xf32, #tpu.memory_space<vmem>>, vector<1x1024xf32>
    tpu.vector_store %arg14[%c17, %c0_119], %141 {strides = array<i32>} : memref<36x1024xf32, #tpu.memory_space<vmem>>, vector<1x1024xf32>,
    %c1_120 = arith.constant 1 : index
    %c32_121 = arith.constant 32 : index
    %143 = vector.load %arg12[%c1_120, %c32_121] : memref<4x1090xf32, #tpu.memory_space<vmem>>, vector<1x1024xf32>
    %cst_122 = arith.constant 0.000000e+00 : f32
    %144 = vector.broadcast %cst_122 : f32 to vector<1x1024xf32>
    %145 = arith.select %20, %143, %144 : vector<1x1024xi1>, vector<1x1024xf32>
    %c18 = arith.constant 18 : index
    %c0_123 = arith.constant 0 : index
    %146 = vector.load %arg14[%c18, %c0_123] : memref<36x1024xf32, #tpu.memory_space<vmem>>, vector<1x1024xf32>
    tpu.vector_store %arg14[%c18, %c0_123], %145 {strides = array<i32>} : memref<36x1024xf32, #tpu.memory_space<vmem>>, vector<1x1024xf32>,
    %c0_124 = arith.constant 0 : index
    %c33_125 = arith.constant 33 : index
    %147 = vector.load %arg12[%c0_124, %c33_125] : memref<4x1090xf32, #tpu.memory_space<vmem>>, vector<1x1024xf32>
    %c19 = arith.constant 19 : index
    %c0_126 = arith.constant 0 : index
    %148 = vector.load %arg14[%c19, %c0_126] : memref<36x1024xf32, #tpu.memory_space<vmem>>, vector<1x1024xf32>
    tpu.vector_store %arg14[%c19, %c0_126], %147 {strides = array<i32>} : memref<36x1024xf32, #tpu.memory_space<vmem>>, vector<1x1024xf32>,
    %c1_127 = arith.constant 1 : index
    %c33_128 = arith.constant 33 : index
    %149 = vector.load %arg12[%c1_127, %c33_128] : memref<4x1090xf32, #tpu.memory_space<vmem>>, vector<1x1024xf32>
    %c20_129 = arith.constant 20 : index
    %c0_130 = arith.constant 0 : index
    %150 = vector.load %arg14[%c20_129, %c0_130] : memref<36x1024xf32, #tpu.memory_space<vmem>>, vector<1x1024xf32>
    tpu.vector_store %arg14[%c20_129, %c0_130], %149 {strides = array<i32>} : memref<36x1024xf32, #tpu.memory_space<vmem>>, vector<1x1024xf32>,
    %c3_131 = arith.constant 3 : index
    %c32_132 = arith.constant 32 : index
    %151 = vector.load %arg12[%c3_131, %c32_132] : memref<4x1090xf32, #tpu.memory_space<vmem>>, vector<1x1024xf32>
    %cst_133 = arith.constant 0.000000e+00 : f32
    %152 = vector.broadcast %cst_133 : f32 to vector<1x1024xf32>
    %153 = arith.select %20, %151, %152 : vector<1x1024xi1>, vector<1x1024xf32>
    %c21 = arith.constant 21 : index
    %c0_134 = arith.constant 0 : index
    %154 = vector.load %arg14[%c21, %c0_134] : memref<36x1024xf32, #tpu.memory_space<vmem>>, vector<1x1024xf32>
    tpu.vector_store %arg14[%c21, %c0_134], %153 {strides = array<i32>} : memref<36x1024xf32, #tpu.memory_space<vmem>>, vector<1x1024xf32>,
    %c2_135 = arith.constant 2 : index
    %c33_136 = arith.constant 33 : index
    %155 = vector.load %arg12[%c2_135, %c33_136] : memref<4x1090xf32, #tpu.memory_space<vmem>>, vector<1x1024xf32>
    %c22 = arith.constant 22 : index
    %c0_137 = arith.constant 0 : index
    %156 = vector.load %arg14[%c22, %c0_137] : memref<36x1024xf32, #tpu.memory_space<vmem>>, vector<1x1024xf32>
    tpu.vector_store %arg14[%c22, %c0_137], %155 {strides = array<i32>} : memref<36x1024xf32, #tpu.memory_space<vmem>>, vector<1x1024xf32>,
    %c3_138 = arith.constant 3 : index
    %c33_139 = arith.constant 33 : index
    %157 = vector.load %arg12[%c3_138, %c33_139] : memref<4x1090xf32, #tpu.memory_space<vmem>>, vector<1x1024xf32>
    %c23 = arith.constant 23 : index
    %c0_140 = arith.constant 0 : index
    %158 = vector.load %arg14[%c23, %c0_140] : memref<36x1024xf32, #tpu.memory_space<vmem>>, vector<1x1024xf32>
    tpu.vector_store %arg14[%c23, %c0_140], %157 {strides = array<i32>} : memref<36x1024xf32, #tpu.memory_space<vmem>>, vector<1x1024xf32>,
    %c1_141 = arith.constant 1 : index
    %c64_142 = arith.constant 64 : index
    %159 = vector.load %arg12[%c1_141, %c64_142] : memref<4x1090xf32, #tpu.memory_space<vmem>>, vector<1x1024xf32>
    %cst_143 = arith.constant 0.000000e+00 : f32
    %160 = vector.broadcast %cst_143 : f32 to vector<1x1024xf32>
    %161 = arith.select %20, %159, %160 : vector<1x1024xi1>, vector<1x1024xf32>
    %c24_144 = arith.constant 24 : index
    %c0_145 = arith.constant 0 : index
    %162 = vector.load %arg14[%c24_144, %c0_145] : memref<36x1024xf32, #tpu.memory_space<vmem>>, vector<1x1024xf32>
    tpu.vector_store %arg14[%c24_144, %c0_145], %161 {strides = array<i32>} : memref<36x1024xf32, #tpu.memory_space<vmem>>, vector<1x1024xf32>,
    %c0_146 = arith.constant 0 : index
    %c65_147 = arith.constant 65 : index
    %163 = vector.load %arg12[%c0_146, %c65_147] : memref<4x1090xf32, #tpu.memory_space<vmem>>, vector<1x1024xf32>
    %c25 = arith.constant 25 : index
    %c0_148 = arith.constant 0 : index
    %164 = vector.load %arg14[%c25, %c0_148] : memref<36x1024xf32, #tpu.memory_space<vmem>>, vector<1x1024xf32>
    tpu.vector_store %arg14[%c25, %c0_148], %163 {strides = array<i32>} : memref<36x1024xf32, #tpu.memory_space<vmem>>, vector<1x1024xf32>,
    %c1_149 = arith.constant 1 : index
    %c65_150 = arith.constant 65 : index
    %165 = vector.load %arg12[%c1_149, %c65_150] : memref<4x1090xf32, #tpu.memory_space<vmem>>, vector<1x1024xf32>
    %c26 = arith.constant 26 : index
    %c0_151 = arith.constant 0 : index
    %166 = vector.load %arg14[%c26, %c0_151] : memref<36x1024xf32, #tpu.memory_space<vmem>>, vector<1x1024xf32>
    tpu.vector_store %arg14[%c26, %c0_151], %165 {strides = array<i32>} : memref<36x1024xf32, #tpu.memory_space<vmem>>, vector<1x1024xf32>,
    %c0_152 = arith.constant 0 : index
    %c33_153 = arith.constant 33 : index
    %167 = vector.load %arg12[%c0_152, %c33_153] : memref<4x1090xf32, #tpu.memory_space<vmem>>, vector<1x1024xf32>
    %c27 = arith.constant 27 : index
    %c0_154 = arith.constant 0 : index
    %168 = vector.load %arg14[%c27, %c0_154] : memref<36x1024xf32, #tpu.memory_space<vmem>>, vector<1x1024xf32>
    tpu.vector_store %arg14[%c27, %c0_154], %167 {strides = array<i32>} : memref<36x1024xf32, #tpu.memory_space<vmem>>, vector<1x1024xf32>,
    %c1_155 = arith.constant 1 : index
    %c33_156 = arith.constant 33 : index
    %169 = vector.load %arg12[%c1_155, %c33_156] : memref<4x1090xf32, #tpu.memory_space<vmem>>, vector<1x1024xf32>
    %c28_157 = arith.constant 28 : index
    %c0_158 = arith.constant 0 : index
    %170 = vector.load %arg14[%c28_157, %c0_158] : memref<36x1024xf32, #tpu.memory_space<vmem>>, vector<1x1024xf32>
    tpu.vector_store %arg14[%c28_157, %c0_158], %169 {strides = array<i32>} : memref<36x1024xf32, #tpu.memory_space<vmem>>, vector<1x1024xf32>,
    %c0_159 = arith.constant 0 : index
    %c34_160 = arith.constant 34 : index
    %171 = vector.load %arg12[%c0_159, %c34_160] : memref<4x1090xf32, #tpu.memory_space<vmem>>, vector<1x1024xf32>
    %cst_161 = arith.constant 0.000000e+00 : f32
    %172 = vector.broadcast %cst_161 : f32 to vector<1x1024xf32>
    %173 = arith.select %22, %171, %172 : vector<1x1024xi1>, vector<1x1024xf32>
    %c29 = arith.constant 29 : index
    %c0_162 = arith.constant 0 : index
    %174 = vector.load %arg14[%c29, %c0_162] : memref<36x1024xf32, #tpu.memory_space<vmem>>, vector<1x1024xf32>
    tpu.vector_store %arg14[%c29, %c0_162], %173 {strides = array<i32>} : memref<36x1024xf32, #tpu.memory_space<vmem>>, vector<1x1024xf32>,
    %c2_163 = arith.constant 2 : index
    %c33_164 = arith.constant 33 : index
    %175 = vector.load %arg12[%c2_163, %c33_164] : memref<4x1090xf32, #tpu.memory_space<vmem>>, vector<1x1024xf32>
    %c30 = arith.constant 30 : index
    %c0_165 = arith.constant 0 : index
    %176 = vector.load %arg14[%c30, %c0_165] : memref<36x1024xf32, #tpu.memory_space<vmem>>, vector<1x1024xf32>
    tpu.vector_store %arg14[%c30, %c0_165], %175 {strides = array<i32>} : memref<36x1024xf32, #tpu.memory_space<vmem>>, vector<1x1024xf32>,
    %c3_166 = arith.constant 3 : index
    %c33_167 = arith.constant 33 : index
    %177 = vector.load %arg12[%c3_166, %c33_167] : memref<4x1090xf32, #tpu.memory_space<vmem>>, vector<1x1024xf32>
    %c31 = arith.constant 31 : index
    %c0_168 = arith.constant 0 : index
    %178 = vector.load %arg14[%c31, %c0_168] : memref<36x1024xf32, #tpu.memory_space<vmem>>, vector<1x1024xf32>
    tpu.vector_store %arg14[%c31, %c0_168], %177 {strides = array<i32>} : memref<36x1024xf32, #tpu.memory_space<vmem>>, vector<1x1024xf32>,
    %c2_169 = arith.constant 2 : index
    %c34_170 = arith.constant 34 : index
    %179 = vector.load %arg12[%c2_169, %c34_170] : memref<4x1090xf32, #tpu.memory_space<vmem>>, vector<1x1024xf32>
    %cst_171 = arith.constant 0.000000e+00 : f32
    %180 = vector.broadcast %cst_171 : f32 to vector<1x1024xf32>
    %181 = arith.select %22, %179, %180 : vector<1x1024xi1>, vector<1x1024xf32>
    %c32_172 = arith.constant 32 : index
    %c0_173 = arith.constant 0 : index
    %182 = vector.load %arg14[%c32_172, %c0_173] : memref<36x1024xf32, #tpu.memory_space<vmem>>, vector<1x1024xf32>
    tpu.vector_store %arg14[%c32_172, %c0_173], %181 {strides = array<i32>} : memref<36x1024xf32, #tpu.memory_space<vmem>>, vector<1x1024xf32>,
    %c0_174 = arith.constant 0 : index
    %c65_175 = arith.constant 65 : index
    %183 = vector.load %arg12[%c0_174, %c65_175] : memref<4x1090xf32, #tpu.memory_space<vmem>>, vector<1x1024xf32>
    %c33_176 = arith.constant 33 : index
    %c0_177 = arith.constant 0 : index
    %184 = vector.load %arg14[%c33_176, %c0_177] : memref<36x1024xf32, #tpu.memory_space<vmem>>, vector<1x1024xf32>
    tpu.vector_store %arg14[%c33_176, %c0_177], %183 {strides = array<i32>} : memref<36x1024xf32, #tpu.memory_space<vmem>>, vector<1x1024xf32>,
    %c1_178 = arith.constant 1 : index
    %c65_179 = arith.constant 65 : index
    %185 = vector.load %arg12[%c1_178, %c65_179] : memref<4x1090xf32, #tpu.memory_space<vmem>>, vector<1x1024xf32>
    %c34_180 = arith.constant 34 : index
    %c0_181 = arith.constant 0 : index
    %186 = vector.load %arg14[%c34_180, %c0_181] : memref<36x1024xf32, #tpu.memory_space<vmem>>, vector<1x1024xf32>
    tpu.vector_store %arg14[%c34_180, %c0_181], %185 {strides = array<i32>} : memref<36x1024xf32, #tpu.memory_space<vmem>>, vector<1x1024xf32>,
    %c0_182 = arith.constant 0 : index
    %c66_183 = arith.constant 66 : index
    %187 = vector.load %arg12[%c0_182, %c66_183] : memref<4x1090xf32, #tpu.memory_space<vmem>>, vector<1x1024xf32>
    %cst_184 = arith.constant 0.000000e+00 : f32
    %188 = vector.broadcast %cst_184 : f32 to vector<1x1024xf32>
    %189 = arith.select %22, %187, %188 : vector<1x1024xi1>, vector<1x1024xf32>
    %c35 = arith.constant 35 : index
    %c0_185 = arith.constant 0 : index
    %190 = vector.load %arg14[%c35, %c0_185] : memref<36x1024xf32, #tpu.memory_space<vmem>>, vector<1x1024xf32>
    tpu.vector_store %arg14[%c35, %c0_185], %189 {strides = array<i32>} : memref<36x1024xf32, #tpu.memory_space<vmem>>, vector<1x1024xf32>,
    %c0_186 = arith.constant 0 : index
    %c0_187 = arith.constant 0 : index
    %191 = vector.load %arg4[%c0_186, %c0_187] : memref<16x36xbf16, #tpu.memory_space<vmem>>, vector<16x36xbf16>
    %c0_188 = arith.constant 0 : index
    %c0_189 = arith.constant 0 : index
    %192 = vector.load %arg13[%c0_188, %c0_189] : memref<36x1024xbf16, #tpu.memory_space<vmem>>, vector<36x1024xbf16>
    %cst_190 = arith.constant dense<0.000000e+00> : vector<16x1024xf32>
    %193 = tpu.matmul %191, %192, %cst_190 {dimension_numbers = #tpu.dot_dimension_numbers<[1], [0], [0], [1], [0, 0, 1, 1], [], []>} : vector<16x36xbf16>, vector<36x1024xbf16>, vector<16x1024xf32> -> vector<16x1024xf32>
    %c0_191 = arith.constant 0 : index
    %c0_192 = arith.constant 0 : index
    %194 = vector.load %arg5[%c0_191, %c0_192] : memref<16x36xbf16, #tpu.memory_space<vmem>>, vector<16x36xbf16>
    %c0_193 = arith.constant 0 : index
    %c0_194 = arith.constant 0 : index
    %195 = vector.load %arg14[%c0_193, %c0_194] : memref<36x1024xf32, #tpu.memory_space<vmem>>, vector<36x1024xf32>
    %196 = arith.truncf %195 : vector<36x1024xf32> to vector<36x1024xbf16>
    %cst_195 = arith.constant dense<0.000000e+00> : vector<16x1024xf32>
    %197 = tpu.matmul %194, %196, %cst_195 {dimension_numbers = #tpu.dot_dimension_numbers<[1], [0], [0], [1], [0, 0, 1, 1], [], []>} : vector<16x36xbf16>, vector<36x1024xbf16>, vector<16x1024xf32> -> vector<16x1024xf32>
    %198 = arith.addf %193, %197 : vector<16x1024xf32>
    %c0_196 = arith.constant 0 : index
    %c0_197 = arith.constant 0 : index
    %199 = vector.load %arg6[%c0_196, %c0_197] : memref<16x1xf32, #tpu.memory_space<vmem>>, vector<16x1xf32>
    %200 = vector.broadcast %199 : vector<16x1xf32> to vector<16x1024xf32>
    %201 = arith.mulf %198, %200 : vector<16x1024xf32>
    %c0_198 = arith.constant 0 : index
    %c0_199 = arith.constant 0 : index
    %202 = vector.load %arg7[%c0_198, %c0_199] : memref<16x1xf32, #tpu.memory_space<vmem>>, vector<16x1xf32>
    %203 = vector.broadcast %202 : vector<16x1xf32> to vector<16x1024xf32>
    %204 = arith.addf %201, %203 : vector<16x1024xf32>
    %cst_200 = arith.constant 0.000000e+00 : f32
    %205 = vector.broadcast %cst_200 : f32 to vector<16x1024xf32>
    %206 = arith.maximumf %204, %205 : vector<16x1024xf32>
    %c0_201 = arith.constant 0 : index
    %c0_202 = arith.constant 0 : index
    %207 = vector.load %arg8[%c0_201, %c0_202] : memref<4x16xbf16, #tpu.memory_space<vmem>>, vector<4x16xbf16>
    %208 = arith.truncf %206 : vector<16x1024xf32> to vector<16x1024xbf16>
    %cst_203 = arith.constant dense<0.000000e+00> : vector<4x1024xf32>
    %209 = tpu.matmul %207, %208, %cst_203 {dimension_numbers = #tpu.dot_dimension_numbers<[1], [0], [0], [1], [0, 0, 1, 1], [], []>} : vector<4x16xbf16>, vector<16x1024xbf16>, vector<4x1024xf32> -> vector<4x1024xf32>
    %c0_204 = arith.constant 0 : index
    %c0_205 = arith.constant 0 : index
    %210 = vector.load %arg9[%c0_204, %c0_205] : memref<1x1xf32, #tpu.memory_space<vmem>>, vector<1x1xf32>
    %211 = vector.broadcast %210 : vector<1x1xf32> to vector<4x1024xf32>
    %212 = arith.addf %209, %211 : vector<4x1024xf32>
    %213 = arith.negf %212 : vector<4x1024xf32>
    %214 = math.exp %213 : vector<4x1024xf32>
    %cst_206 = arith.constant 1.000000e+00 : f32
    %215 = vector.broadcast %cst_206 : f32 to vector<4x1024xf32>
    %216 = arith.addf %215, %214 : vector<4x1024xf32>
    %217 = arith.divf %215, %216 : vector<4x1024xf32>
    %218 = arith.addf %32, %217 : vector<4x1024xf32>
    %cst_207 = arith.constant 5.000000e-01 : f32
    %219 = vector.broadcast %cst_207 : f32 to vector<4x1024xf32>
    %220 = arith.mulf %219, %218 : vector<4x1024xf32>
    %c0_208 = arith.constant 0 : index
    %c0_209 = arith.constant 0 : index
    %c0_210 = arith.constant 0 : index
    %221 = vector.load %arg10[%c0_208, %c0_209, %c0_210] : memref<1x4x1024xf32, #tpu.memory_space<vmem>>, vector<1x4x1024xf32>
    %222 = vector.shape_cast %221 : vector<1x4x1024xf32> to vector<4x1024xf32>
    %223 = vector.shape_cast %220 : vector<4x1024xf32> to vector<1x4x1024xf32>
    tpu.vector_store %arg10[%c0_208, %c0_209, %c0_210], %223 {strides = array<i32>} : memref<1x4x1024xf32, #tpu.memory_space<vmem>>, vector<1x4x1024xf32>,
    return
  }
  func.func @transform_0(%arg0: i32) -> (i32, i32, i32) {
    %c0_i32 = arith.constant 0 : i32
    %c0_i32_0 = arith.constant 0 : i32
    %c0_i32_1 = arith.constant 0 : i32
    return %arg0, %c0_i32, %c0_i32_0 : i32, i32, i32
  }
  func.func @transform_1(%arg0: i32) -> (i32, i32) {
    %c0_i32 = arith.constant 0 : i32
    %c0_i32_0 = arith.constant 0 : i32
    %c0_i32_1 = arith.constant 0 : i32
    return %c0_i32, %c0_i32_0 : i32, i32
  }
  func.func @transform_2(%arg0: i32) -> (i32, i32) {
    %c0_i32 = arith.constant 0 : i32
    %c0_i32_0 = arith.constant 0 : i32
    %c0_i32_1 = arith.constant 0 : i32
    return %c0_i32, %c0_i32_0 : i32, i32
  }
  func.func @transform_3(%arg0: i32) -> (i32, i32) {
    %c0_i32 = arith.constant 0 : i32
    %c0_i32_0 = arith.constant 0 : i32
    %c0_i32_1 = arith.constant 0 : i32
    return %c0_i32, %c0_i32_0 : i32, i32
  }
  func.func @transform_4(%arg0: i32) -> (i32, i32) {
    %c0_i32 = arith.constant 0 : i32
    %c0_i32_0 = arith.constant 0 : i32
    %c0_i32_1 = arith.constant 0 : i32
    return %c0_i32, %c0_i32_0 : i32, i32
  }
  func.func @transform_5(%arg0: i32) -> (i32, i32) {
    %c0_i32 = arith.constant 0 : i32
    %c0_i32_0 = arith.constant 0 : i32
    %c0_i32_1 = arith.constant 0 : i32
    return %c0_i32, %c0_i32_0 : i32, i32
  }
  func.func @transform_6(%arg0: i32) -> (i32, i32) {
    %c0_i32 = arith.constant 0 : i32
    %c0_i32_0 = arith.constant 0 : i32
    %c0_i32_1 = arith.constant 0 : i32
    return %c0_i32, %c0_i32_0 : i32, i32
  }
  func.func @transform_7(%arg0: i32) -> (i32, i32) {
    %c0_i32 = arith.constant 0 : i32
    %c0_i32_0 = arith.constant 0 : i32
    %c0_i32_1 = arith.constant 0 : i32
    return %c0_i32, %c0_i32_0 : i32, i32
  }
  func.func @transform_8(%arg0: i32) -> (i32, i32) {
    %c0_i32 = arith.constant 0 : i32
    %c0_i32_0 = arith.constant 0 : i32
    %c0_i32_1 = arith.constant 0 : i32
    return %c0_i32, %c0_i32_0 : i32, i32
  }
  func.func @transform_9(%arg0: i32) -> (i32, i32, i32) {
    %c0_i32 = arith.constant 0 : i32
    %c0_i32_0 = arith.constant 0 : i32
    %c0_i32_1 = arith.constant 0 : i32
    return %arg0, %c0_i32, %c0_i32_0 : i32, i32, i32
  }
}

</mosaic_0001>

<bundles_post_ra>
// kernel: tile.22
= control target key start
LH: loop header
LB: loop body
LE: loop exit
PB: predicated region body
PF: predicated region fallthrough
CT: control target
= control target key end

     0   :  { %2 = vsyncpa [#allocation1], 0  ;;  %s44_s6 = smov [#allocation0]   ;;  %s70_s0 = inlined_call_operand.hbm [shape: f32[4], index: 0, kind: input, shape index: {}]   ;;  %s71_s1 = inlined_call_operand.vmem [shape: f32[4,1,1,4], index: 1, kind: output, shape index: {}]  }
   0x1   :  { %s9_s7 = sshll.u32 %s44_s6, 4  ;;  %s20_s10 = scalar_lea.hbm %s70_s0, 16  ;;  %s10_s7 = int_to_ptr.vmem [resolvable:$true] %s9_s7 }
   0x2   :  { %p21_p0 = scmp.ne.s32.totalorder %s70_s0, %s20_s10  ;;  %p24_p1 = scmp.lt.u32.totalorder %s20_s10, %s70_s0 }
   0x4   :  { %p26_p2 = pnand %p24_p1, %p21_p0 }
   0x6   :  { %29 = shalt.err (!%p26_p2)
}
   0x7   :  { %s30_s15 = scalar_lea.vmem %s10_s7, 16  ;;  %s34_s16 = scalar_lea.vmem %s10_s7, 32 }
   0x8   :  { %p31_p3 = scmp.ne.s32.totalorder %s10_s7, %s30_s15  ;;  %p35_p4 = scmp.lt.s32.totalorder %s10_s7, %s10_s7 }
   0x9   :  { %p36_p5 = scmp.lt.s32.totalorder %s34_s16, %s30_s15 }
   0xb   :  { %p37_p6 = por %p36_p5, %p35_p4 }
   0xd   :  { %p38_p7 = pnand %p37_p6, %p31_p3 }
   0xf   :  { %41 = shalt.err (!%p38_p7)
}
  0x10   :  { %12 = dma.hbm_to_vmem [thread:$0]  %s70_s0, 16, %s10_s7, [#allocation1]  }
  0x11   :  { %42 = dma.done.wait [#allocation1], 16  }
  0x12   :  { %43 = vsyncadd [#allocation1], 4294967280  ;;  %v16_v0 = vld [vmem:[#allocation0] ss:$0 sm:$0xff] }
  0x13   :  { %17 = vst [vmem:[%s71_s1] sm:$0xf] %v16_v0 }
  0x14   :  { %18 = vsyncpa [#allocation1], 1 }

// kernel: tile.2
= control target key start
LH: loop header
LB: loop body
LE: loop exit
PB: predicated region body
PF: predicated region fallthrough
CT: control target
= control target key end

     0   :  { %s34_s8 = smov 125   ;;  %vm7_vm0 = vcmask 7168   ;;  %s35_s11 = smov 126   ;;  %s61_s0 = inlined_call_operand.vmem [shape: f32[4,1,1,4], index: 0, kind: input, shape index: {}]   ;;  %s62_s1 = inlined_call_operand.vmem [shape: f32[16,1], index: 1, kind: output, shape index: {}]  }
   0x1   :  { %v4_v0 = vld [vmem:[%s61_s0] sm:$0xf]  ;;  %s33_s0 = smov 127  }
   0x2   :  { %5 = vst [vmem:[#allocation0] sm:$0xf] %v4_v0 }
   0x9   :  { %v9_v1 = vld [vmem:[#allocation0] sm:$0xf]  }
   0xa   :  { %v21_v2 = vld [vmem:[#allocation0] sm:$0xf]   ;;  %10 = vrot.lane.b32.xlu0 %v9_v1, %s33_s0 }
   0xb   :  { %22 = vrot.lane.b32.xlu1 %v21_v2, %s34_s8  ;;  %v6_v3 = vld [vmem:[#allocation0] sm:$0xf]  }
   0xc   :  { %v15_v4 = vld [vmem:[#allocation0] sm:$0xf]   ;;  %8 = vst.msk [vmem:[%s62_s1] ss:$4 sm:$0xf] %vm7_vm0, %v6_v3  }
   0xe   :  { %16 = vrot.lane.b32.xlu0 %v15_v4, %s35_s11 }
  0x7c   :  { %v11_v5 = vpop.permute.xlu0 %10  }
  0x7d   :  { %v23_v6 = vpop.permute.xlu1 %22   ;;  %27 = vst.msk [vmem:[%s62_s1 + $0x1] ss:$4 sm:$0xf] %vm7_vm0, %v11_v5  }
  0x7e   :  { %29 = vst.msk [vmem:[%s62_s1 + $0x3] ss:$4 sm:$0xf] %vm7_vm0, %v23_v6  }
  0x80   :  { %v17_v7 = vpop.permute.xlu0 %16  }
  0x81   :  { %28 = vst.msk [vmem:[%s62_s1 + $0x2] ss:$4 sm:$0xf] %vm7_vm0, %v17_v7  }

// kernel: pfhead_local_forward.2
= control target key start
LH: loop header
LB: loop body
LE: loop exit
PB: predicated region body
PF: predicated region fallthrough
CT: control target
= control target key end

     0   :  { %s1122_s24 = smov 0   ;;  %s1245_s0 = inlined_call_operand.vmem [shape: f32[2,16,256], index: 0, kind: input, shape index: {}]   ;;  %s1246_s1 = inlined_call_operand.vmem [shape: bf16[4,144], index: 1, kind: input, shape index: {}]   ;;  %s1247_s2 = inlined_call_operand.vmem [shape: f32[4,1], index: 2, kind: input, shape index: {}]   ;;  %s1248_s3 = inlined_call_operand.vmem [shape: f32[4,1], index: 3, kind: input, shape index: {}]   ;;  %s1249_s4 = inlined_call_operand.vmem [shape: bf16[16,4], index: 4, kind: input, shape index: {}]   ;;  %s1250_s5 = inlined_call_operand.vmem [shape: f32[16,1], index: 5, kind: input, shape index: {}]   ;;  %s1251_s6 = inlined_call_operand.vmem [shape: f32[16,1], index: 6, kind: input, shape index: {}]   ;;  %s1252_s7 = inlined_call_operand.vmem [shape: bf16[2,16,256], index: 7, kind: output, shape index: {}]  }
   0x1 LB: > { %s908_s25 = sadd.s32 4294967295, %s1069_s24   ;;  %p912_p0 = scmp.ge.s32.totalorder %s1069_s24, 1  ;;  %s1069_s24 = sphi %s1122_s24, %s17_s24  }
   0x2   : > { %p237_p1 = scmp.lt.s32.totalorder %s1069_s24, 3 }
   0x4   : > { %p238_p2 = pnand %p912_p0, %p237_p1 }
   0x5   : > { %p269_p3 = scmp.lt.s32.totalorder (!%p238_p2), %s908_s25, 1  ;;  %vm280_vm0 = vcmask (!%p238_p2), 138240   ;;  %vm283_vm1 = vcmask (!%p238_p2), 277640   ;;  %v1071_v0 = vmov (!%p238_p2), 0.0   ;;  %s1072_s30 = smov (!%p238_p2), 17   ;;  %v317_v5 = vlaneseq (!%p238_p2)  ;;  %v804_v33 = vld [vmem:[%s1250_s5 + $0x8] sm:$0xff] (!%p238_p2) }
   0x6   : > { %241 = sbr.rel (%p238_p2) target bundleno = 759 (0x2f7), region = 48  ;;  %282 = vst.msk [vmem:[#allocation2 + $0x18] sm:$0xff] (!%p238_p2), %vm280_vm0, %v1071_v0  ;;  %281 = vst.msk [vmem:[#allocation2] sm:$0xff] (!%p238_p2), %vm280_vm0, %v1071_v0  ;;  %vm310_vm2 = vcmask (!%p238_p2), 1047688   ;;  %s1073_s8 = smov (!%p238_p2), 112   ;;  %vm677_vm7 = vcmask (!%p238_p2), 130048  }
   0x7   : > { %285 = vst.msk [vmem:[#allocation2 + $0x28] sm:$0xff] (!%p238_p2), %vm283_vm1, %v1071_v0  ;;  %284 = vst.msk [vmem:[#allocation2 + $0x10] sm:$0xff] (!%p238_p2), %vm283_vm1, %v1071_v0  ;;  %v1138_v6 = vand.u32 (!%p238_p2), 127, %v317_v5  ;;  %s1074_s9 = smov (!%p238_p2), 126   ;;  %s1075_s10 = smov (!%p238_p2), 127   ;;  %v1081_v30 = vmov (!%p238_p2), 0  }
   0x8   : > { %s1076_s11 = smov (!%p238_p2), 111   ;;  %s1077_s12 = smov (!%p238_p2), 110   ;;  %v1168_v28 = vld.sshfl [vmem:[%s1246_s1] sm:$0x33 pattern:$0x76325410] (!%p238_p2)  ;;  %1060 = vset.pattern.permute.xlu0 (!%p238_p2), %v1081_v30  ;;  %1061 = vset.pattern.permute.xlu1 (!%p238_p2), %v1081_v30 }
   0x9   : > { %v1141_v7 = vadd.s32 (!%p238_p2), 128, %v1138_v6  ;;  %v324_v11 = vand.u32 (!%p238_p2), 15, %v1138_v6  ;;  %s1078_s13 = smov (!%p238_p2), 96   ;;  %s1079_s14 = smov (!%p238_p2), 95   ;;  %v675_v29 = vcombine.high (!%p238_p2), %v1168_v28, %v1168_v28  ;;  %792 = vmatprep.mubr.bf16.mxu1 (!%p238_p2), %v1081_v30  ;;  %v722_v31 = vld [vmem:[%s1247_s2] sm:$0xf] (!%p238_p2) }
   0xa   : > { %s1080_s17 = smov (!%p238_p2), 94   ;;  %v730_v32 = vld [vmem:[%s1248_s3] sm:$0xf] (!%p238_p2)  ;;  %v820_v35 = vld [vmem:[%s1251_s6 + $0x8] sm:$0xff] (!%p238_p2)  ;;  %vm417_vm8 = vcmask (!%p238_p2), 1031168   ;;  %vm382_vm9 = vcmask (!%p238_p2), 1039360  }
   0xb   : > { %v331_v8 = vand.u32 (!%p238_p2), 15, %v1141_v7  ;;  %vm344_vm5 = vcmp.ne.s32.totalorder (!%p238_p2), %v324_v11, 0  ;;  %918 = vmatprep.mubr.msk.bf16.mxu0 (!%p238_p2), %vm677_vm7, %v675_v29  ;;  %v803_v34 = vld [vmem:[%s1250_s5] sm:$0xff] (!%p238_p2)  ;;  %vm458_vm11 = vcmask (!%p238_p2), 916480   ;;  %vm346_vm13 = vcmp.ne.s32.totalorder (!%p238_p2), %v324_v11, 15 }
   0xc   : > { %vm1159_vm6 = vmpackc.low (!%p238_p2), %vm344_vm5, %vm344_vm5  ;;  %v819_v36 = vld [vmem:[%s1251_s6] sm:$0xff] (!%p238_p2)  ;;  %vm524_vm15 = vcmask (!%p238_p2), 900096   ;;  %vm565_vm1 = vcmask (!%p238_p2), 785408   ;;  %vm749_vm5 = vcmask (!%p238_p2), 31744  }
   0xd   : > { %s1262_s25 = smov (!%p269_p3, %s908_s25), 1  ;;  %vm345_vm3 = vcmp.ne.s32.totalorder %v331_v8, 0  ;;  %vm347_vm10 = vcmp.ne.s32.totalorder %v331_v8, 15  ;;  %vm1206_vm14 = vmpackc.low %vm346_vm13, %vm346_vm13 }
   0xe   : > { %s926_s26 = sshll.u32 %s1262_s25, 5  ;;  %vm1151_vm4 = vmpackc.low %vm345_vm3, %vm345_vm3  ;;  %vm631_vm3 = vcmask 769024  }
   0xf   : > { %s273_s29 = scalar_lea.vmem %s1245_s0, %s926_s26  ;;  %vm1194_vm12 = vmpackc.low %vm347_vm10, %vm347_vm10 }
  0x10   : > { %v288_v1 = vld [vmem:[%s273_s29 + $0x10] sm:$0xff]  ;;  %v286_v2 = vld [vmem:[%s273_s29] sm:$0xff]  ;;  %v289_v3 = vld [vmem:[%s273_s29 + $0x18] sm:$0xff] }
  0x11   : > { %298 = vrot.lane.b32.xlu1 %v288_v1, %s1072_s30  ;;  %294 = vrot.lane.b32.xlu0 %v286_v2, %s1072_s30  ;;  %v287_v4 = vld [vmem:[%s273_s29 + $0x8] sm:$0xff] }
  0x15   : > { %300 = vrot.lane.b32.xlu1 %v289_v3, %s1072_s30  ;;  %296 = vrot.lane.b32.xlu0 %v287_v4, %s1072_s30 }
  0x83   : > { %v299_v9 = vpop.permute.xlu1 %298  ;;  %v295_v10 = vpop.permute.xlu0 %294 }
  0x84   : > { %314 = vst.msk [vmem:[#allocation2 + $0x18] sm:$0xff] %vm310_vm2, %v299_v9  ;;  %311 = vst.msk [vmem:[#allocation2] sm:$0xff] %vm310_vm2, %v295_v10  ;;  %vm600_vm2 = vcmask 777216  }
  0x87   : > { %v301_v12 = vpop.permute.xlu1 %300  ;;  %v297_v13 = vpop.permute.xlu0 %296 }
  0x88   : > { %v303_v14 = vsel %vm280_vm0, %v299_v9, %v301_v12  ;;  %316 = vst.msk [vmem:[#allocation2 + $0x28] sm:$0xff] %vm280_vm0, %v301_v12  ;;  %v302_v15 = vsel %vm280_vm0, %v295_v10, %v297_v13  ;;  %313 = vst.msk [vmem:[#allocation2 + $0x10] sm:$0xff] %vm280_vm0, %v297_v13  ;;  %vm493_vm0 = vcmask 908288  }
  0x89   : > { %v931_v17 = vpack.c.bf16 %v303_v14, %v302_v15 }
  0x8b   : > { %v434_v18 = vld [vmem:[#allocation2] sm:$0xff]  ;;  %v437_v19 = vld [vmem:[#allocation2 + $0x18] sm:$0xff]  ;;  %932 = vmatprep.subr.msk.bf16.mxu0 %vm1151_vm4, %v931_v17 }
  0x8c   : > { %v990_v20 = vpack.i.bf16 %v437_v19, %v434_v18  ;;  %v934_v22 = vpack.c.bf16 %v437_v19, %v434_v18 }
  0x8e   : > { %991 = vrot.lane.b32.xlu0 %v990_v20, %s1073_s8  ;;  %986 = vrot.lane.b32.xlu1 %v990_v20, %s1074_s9 }
  0x8f   : > { %v394_v23 = vld [vmem:[#allocation2 + $0x28] sm:$0xff]  ;;  %v391_v24 = vld [vmem:[#allocation2 + $0x10] sm:$0xff]  ;;  %935 = vmatpush1.bf16.msk.msra.mxu0 %vm1159_vm6, %v934_v22 }
  0x90   : > { %v1000_v25 = vpack.i.bf16 %v394_v23, %v303_v14  ;;  %v995_v26 = vpack.i.bf16 %v391_v24, %v302_v15  ;;  %v372_v27 = vpack.c.bf16 %v394_v23, %v391_v24 }
  0x92   : > { %1001 = vrot.lane.b32.xlu0 %v1000_v25, %s1074_s9  ;;  %996 = vrot.lane.b32.xlu1 %v995_v26, %s1074_s9 }
  0x96   : > { %1006 = vrot.lane.b32.xlu0 %v995_v26, %s1073_s8  ;;  %1011 = vrot.lane.b32.xlu1 %v1000_v25, %s1073_s8 }
  0x9a   : > { %376 = vrot.lane.b32.xlu0 %v934_v22, %s1075_s10  ;;  %380 = vrot.lane.b32.xlu1 %v372_v27, %s1075_s10 }
  0x9e   : > { %487 = vrot.lane.b32.xlu1 %v934_v22, %s1076_s11  ;;  %378 = vrot.lane.b32.xlu0 %v931_v17, %s1075_s10 }
  0xa2   : > { %1021 = vrot.lane.b32.xlu1 %v1000_v25, %s1077_s12  ;;  %491 = vrot.lane.b32.xlu0 %v372_v27, %s1076_s11 }
  0xa6   : > { %1031 = vrot.lane.b32.xlu1 %v995_v26, %s1078_s13  ;;  %1016 = vrot.lane.b32.xlu0 %v995_v26, %s1077_s12 }
  0xaa   : > { %489 = vrot.lane.b32.xlu1 %v931_v17, %s1076_s11  ;;  %1026 = vrot.lane.b32.xlu0 %v990_v20, %s1077_s12  ;;  %s927_s11 = sshll.u32 %s1262_s25, 4 }
  0xae   : > { %1041 = vrot.lane.b32.xlu1 %v990_v20, %s1078_s13  ;;  %1036 = vrot.lane.b32.xlu0 %v1000_v25, %s1078_s13 }
  0xb2   : > { %598 = vrot.lane.b32.xlu1 %v372_v27, %s1079_s14  ;;  %594 = vrot.lane.b32.xlu0 %v934_v22, %s1079_s14 }
  0xb6   : > { %1046 = vrot.lane.b32.xlu1 %v995_v26, %s1080_s17  ;;  %596 = vrot.lane.b32.xlu0 %v931_v17, %s1079_s14  ;;  %s278_s14 = scalar_lea.vmem %s1252_s7, %s927_s11 }
  0xba   : > { %1056 = vrot.lane.b32.xlu1 %v990_v20, %s1080_s17  ;;  %1051 = vrot.lane.b32.xlu0 %v1000_v25, %s1080_s17 }
  0xbe   : > { %725 = vperm.xlu0 %1060, %v722_v31   ;;  %733 = vperm.xlu1 %1061, %v730_v32  }
  0xc2   : > { %812 = vperm.xlu0 %1060, %v804_v33   ;;  %807 = vperm.xlu1 %1061, %v803_v34  }
  0xc6   : > { %828 = vperm.xlu0 %1060, %v820_v35   ;;  %823 = vperm.xlu1 %1061, %v819_v36  }
 0x100   : > { %v987_v37 = vpop.permute.xlu1 %986  ;;  %v992_v38 = vpop.permute.xlu0 %991 }
 0x101   : > { %v989_v55 = vunpack.i.h.bf16 %v987_v37  ;;  %v988_v56 = vunpack.i.l.bf16 %v987_v37  ;;  %v994_v3 = vunpack.i.h.bf16 %v992_v38  ;;  %v993_v4 = vunpack.i.l.bf16 %v992_v38 }
 0x104   : > { %v997_v39 = vpop.permute.xlu1 %996  ;;  %v1002_v40 = vpop.permute.xlu0 %1001 }
 0x105   : > { %v999_v43 = vunpack.i.h.bf16 %v997_v39  ;;  %v998_v44 = vunpack.i.l.bf16 %v997_v39  ;;  %v1004_v45 = vunpack.i.h.bf16 %v1002_v40  ;;  %v1003_v46 = vunpack.i.l.bf16 %v1002_v40 }
 0x107   : > { %v419_v49 = vsel %vm417_vm8, %v998_v44, %v999_v43  ;;  %v421_v50 = vsel %vm417_vm8, %v1003_v46, %v1004_v45  ;;  %v418_v62 = vsel %vm417_vm8, %v988_v56, %v998_v44  ;;  %v420_v63 = vsel %vm417_vm8, %v989_v55, %v1003_v46 }
 0x108   : > { %v1012_v41 = vpop.permute.xlu1 %1011  ;;  %v1007_v42 = vpop.permute.xlu0 %1006  ;;  %v937_v0 = vpack.c.bf16 %v421_v50, %v419_v49  ;;  %v940_v8 = vpack.c.bf16 %v420_v63, %v418_v62 }
 0x109   : > { %v1014_v51 = vunpack.i.h.bf16 %v1012_v41  ;;  %v1013_v52 = vunpack.i.l.bf16 %v1012_v41  ;;  %v1009_v53 = vunpack.i.h.bf16 %v1007_v42  ;;  %v1008_v54 = vunpack.i.l.bf16 %v1007_v42 }
 0x10b   : > { %v462_v1 = vsel %vm458_vm11, %v1013_v52, %v1014_v51  ;;  %v460_v2 = vsel %vm458_vm11, %v1008_v54, %v1009_v53  ;;  %v461_v9 = vsel %vm458_vm11, %v994_v3, %v1013_v52  ;;  %v459_v10 = vsel %vm458_vm11, %v993_v4, %v1008_v54 }
 0x10c   : > { %v381_v47 = vpop.permute.xlu1 %380  ;;  %v377_v48 = vpop.permute.xlu0 %376  ;;  %v943_v11 = vpack.c.bf16 %v462_v1, %v460_v2  ;;  %v946_v17 = vpack.c.bf16 %v461_v9, %v459_v10 }
 0x110   : > { %v488_v57 = vpop.permute.xlu1 %487  ;;  %v379_v58 = vpop.permute.xlu0 %378 }
 0x111   : > { %v384_v59 = vsel %vm382_vm9, %v379_v58, %v381_v47  ;;  %v383_v60 = vsel %vm382_vm9, %v377_v48, %v379_v58 }
 0x112   : > { %683 = vmatprep.subr.bf16.mxu0 %v384_v59 }
 0x113   : > { %684 = vmatpush1.bf16.msra.mxu0 %v383_v60 }
 0x114   : > { %v1022_v5 = vpop.permute.xlu1 %1021  ;;  %v492_v7 = vpop.permute.xlu0 %491  ;;  %938 = vmatprep.subr.msk.bf16.mxu0 %vm1194_vm12, %v937_v0 }
 0x115   : > { %v1024_v12 = vunpack.i.h.bf16 %v1022_v5  ;;  %v1023_v13 = vunpack.i.l.bf16 %v1022_v5 }
 0x117   : > { %941 = vmatpush1.bf16.msk.msra.mxu0 %vm1206_vm14, %v940_v8  ;;  %v528_v22 = vsel %vm524_vm15, %v1023_v13, %v1024_v12 }
 0x118   : > { %v1032_v14 = vpop.permute.xlu1 %1031  ;;  %v1017_v15 = vpop.permute.xlu0 %1016  ;;  %944 = vmatprep.subr.msk.bf16.mxu0 %vm1151_vm4, %v943_v11 }
 0x119   : > { %v1019_v18 = vunpack.i.h.bf16 %v1017_v15  ;;  %v1018_v19 = vunpack.i.l.bf16 %v1017_v15  ;;  %v1034_v31 = vunpack.i.h.bf16 %v1032_v14  ;;  %v1033_v32 = vunpack.i.l.bf16 %v1032_v14 }
 0x11b   : > { %v526_v20 = vsel %vm524_vm15, %v1018_v19, %v1019_v18  ;;  %947 = vmatpush1.bf16.msk.msra.mxu0 %vm1159_vm6, %v946_v17  ;;  %v567_v42 = vsel %vm565_vm1, %v1033_v32, %v1034_v31 }
 0x11c   : > { %v490_v23 = vpop.permute.xlu1 %489  ;;  %v1027_v24 = vpop.permute.xlu0 %1026  ;;  %v949_v30 = vpack.c.bf16 %v528_v22, %v526_v20 }
 0x11d   : > { %v1029_v25 = vunpack.i.h.bf16 %v1027_v24  ;;  %v1028_v26 = vunpack.i.l.bf16 %v1027_v24  ;;  %v495_v27 = vsel %vm493_vm0, %v490_v23, %v492_v7  ;;  %v494_v29 = vsel %vm493_vm0, %v488_v57, %v490_v23 }
 0x11e   : > { %689 = vmatprep.subr.bf16.mxu0 %v495_v27 }
 0x11f   : > { %v527_v33 = vsel %vm524_vm15, %v1029_v25, %v1023_v13  ;;  %v525_v34 = vsel %vm524_vm15, %v1028_v26, %v1018_v19  ;;  %690 = vmatpush1.bf16.msra.mxu0 %v494_v29 }
 0x120   : > { %v952_v35 = vpack.c.bf16 %v527_v33, %v525_v34  ;;  %v1042_v36 = vpop.permute.xlu1 %1041  ;;  %v1037_v37 = vpop.permute.xlu0 %1036  ;;  %950 = vmatprep.subr.msk.bf16.mxu0 %vm1194_vm12, %v949_v30 }
 0x121   : > { %v1044_v38 = vunpack.i.h.bf16 %v1042_v36  ;;  %v1043_v39 = vunpack.i.l.bf16 %v1042_v36  ;;  %v1039_v40 = vunpack.i.h.bf16 %v1037_v37  ;;  %v1038_v41 = vunpack.i.l.bf16 %v1037_v37 }
 0x123   : > { %v566_v43 = vsel %vm565_vm1, %v1043_v39, %v1033_v32  ;;  %v568_v44 = vsel %vm565_vm1, %v1044_v38, %v1038_v41  ;;  %v569_v45 = vsel %vm565_vm1, %v1038_v41, %v1039_v40  ;;  %953 = vmatpush1.bf16.msk.msra.mxu0 %vm1206_vm14, %v952_v35 }
 0x124   : > { %v955_v46 = vpack.c.bf16 %v569_v45, %v567_v42  ;;  %v958_v47 = vpack.c.bf16 %v568_v44, %v566_v43  ;;  %v599_v48 = vpop.permute.xlu1 %598  ;;  %v595_v49 = vpop.permute.xlu0 %594 }
 0x126   : > { %956 = vmatprep.subr.msk.bf16.mxu0 %vm1151_vm4, %v955_v46  ;;  %vm753_vm4 = vcmask 1041408  }
 0x127   : > { %959 = vmatpush1.bf16.msk.msra.mxu0 %vm1159_vm6, %v958_v47 }
 0x128   : > { %v1047_v50 = vpop.permute.xlu1 %1046  ;;  %v597_v51 = vpop.permute.xlu0 %596 }
 0x129   : > { %v602_v52 = vsel %vm600_vm2, %v597_v51, %v599_v48  ;;  %v601_v53 = vsel %vm600_vm2, %v595_v49, %v597_v51  ;;  %v1049_v54 = vunpack.i.h.bf16 %v1047_v50  ;;  %v1048_v55 = vunpack.i.l.bf16 %v1047_v50 }
 0x12a   : > { %695 = vmatprep.subr.bf16.mxu0 %v602_v52 }
 0x12b   : > { %696 = vmatpush1.bf16.msra.mxu0 %v601_v53  ;;  %v633_v62 = vsel %vm631_vm3, %v1048_v55, %v1049_v54 }
 0x12c   : > { %v1057_v56 = vpop.permute.xlu1 %1056  ;;  %v1052_v57 = vpop.permute.xlu0 %1051 }
 0x12d   : > { %v1059_v58 = vunpack.i.h.bf16 %v1057_v56  ;;  %v1058_v59 = vunpack.i.l.bf16 %v1057_v56  ;;  %v1054_v60 = vunpack.i.h.bf16 %v1052_v57  ;;  %v1053_v16 = vunpack.i.l.bf16 %v1052_v57 }
 0x12f   : > { %v632_v63 = vsel %vm631_vm3, %v1058_v59, %v1048_v55  ;;  %v634_v0 = vsel %vm631_vm3, %v1059_v58, %v1053_v16  ;;  %v635_v21 = vsel %vm631_vm3, %v1053_v16, %v1054_v60 }
 0x130   : > { %v961_v1 = vpack.c.bf16 %v635_v21, %v633_v62  ;;  %v964_v2 = vpack.c.bf16 %v634_v0, %v632_v63 }
 0x132   : > { %962 = vmatprep.subr.msk.bf16.mxu0 %vm1194_vm12, %v961_v1 }
 0x133   : > { %965 = vmatpush1.bf16.msk.msra.mxu0 %vm1206_vm14, %v964_v2 }
 0x136   : > { %714 = vmatmul.mubr.bf16.vlgmr.msra.gmra.mrb[0].mxu0 %v1168_v28  ;;  %v1062_v28 = vld [vmem:[%s1249_s4] sm:$0xff]  }
 0x13d   : > { %v726_v3 = vpop.permute.xlu0 %725  ;;  %v734_v8 = vpop.permute.xlu1 %733 }
 0x141   : > { %v808_v6 = vpop.permute.xlu1 %807  ;;  %v813_v19 = vpop.permute.xlu0 %812 }
 0x145   : > { %v824_v24 = vpop.permute.xlu1 %823  ;;  %v829_v31 = vpop.permute.xlu0 %828 }
 0x209   : > { %v715_v4 = vpop.f32.mrb[0].mxu0 }
 0x20a   : > { %v728_v5 = vmul.f32 %v726_v3, %v715_v4  ;;  %v717_v7 = vpop.f32.mrb[1].mxu0 }
 0x20b   : > { %v729_v9 = vmul.f32 %v726_v3, %v717_v7  ;;  %v719_v10 = vpop.f32.mrb[2].mxu0 }
 0x20c   : > { %v736_v11 = vadd.f32 %v734_v8, %v728_v5  ;;  %v720_v12 = vpop.f32.mrb[3].mxu0 }
 0x20d   : > { %v737_v13 = vadd.f32 %v734_v8, %v729_v9 }
 0x20e   : > { %v738_v14 = vmax.f32 %v736_v11, 0.0 }
 0x20f   : > { %v739_v15 = vmax.f32 %v737_v13, 0.0 }
 0x210   : > { %v742_v61 = vpack.c.bf16 %v738_v14, %v738_v14 }
 0x211   : > { %v743_v17 = vpack.c.bf16 %v739_v15, %v739_v15 }
 0x212   : > { %v755_v18 = vsel %vm753_vm4, %v742_v61, 0 }
 0x213   : > { %920 = vmatprep.subr.msk.bf16.mxu1 %vm753_vm4, %v743_v17 }
 0x214   : > { %761 = vmatpush1.bf16.msra.mxu1 %v755_v18 }
 0x217   : > { %921 = vmatmul.mubr.msk.bf16.vlgmr.msra.gmra.mrb[0].mxu1 %vm749_vm5, %v1062_v28 }
 0x2ea   : > { %v794_v20 = vpop.f32.mrb[0].mxu1 }
 0x2eb   : > { %v815_v22 = vmul.f32 %v808_v6, %v794_v20  ;;  %v796_v23 = vpop.f32.mrb[1].mxu1 }
 0x2ec   : > { %v816_v25 = vmul.f32 %v808_v6, %v796_v23  ;;  %v798_v26 = vpop.f32.mrb[2].mxu1 }
 0x2ed   : > { %v831_v27 = vadd.f32 %v824_v24, %v815_v22  ;;  %v817_v29 = vmul.f32 %v813_v19, %v798_v26  ;;  %v800_v30 = vpop.f32.mrb[3].mxu1 }
 0x2ee   : > { %v832_v32 = vadd.f32 %v824_v24, %v816_v25  ;;  %v818_v33 = vmul.f32 %v813_v19, %v800_v30 }
 0x2ef   : > { %v835_v34 = vmax.f32 %v831_v27, 0.0  ;;  %v833_v35 = vadd.f32 %v829_v31, %v817_v29 }
 0x2f0   : > { %v836_v36 = vmax.f32 %v832_v32, 0.0  ;;  %v834_v37 = vadd.f32 %v829_v31, %v818_v33 }
 0x2f1   : > { %v837_v38 = vmax.f32 %v833_v35, 0.0 }
 0x2f2   : > { %v928_v39 = vpack.c.bf16 %v836_v36, %v835_v34  ;;  %v838_v40 = vmax.f32 %v834_v37, 0.0 }
 0x2f4   : > { %851 = vst [vmem:[%s278_s14] sm:$0xff] %v928_v39  ;;  %v929_v41 = vpack.c.bf16 %v838_v40, %v837_v38 }
 0x2f6   : > { %852 = vst [vmem:[%s278_s14 + $0x8] sm:$0xff] %v929_v41 }
 0x2f7 PF: > { %s17_s24 = sadd.s32 1, %s1069_s24  }
 0x2f8   : > { %p14_p4 = scmp.ge.s32.totalorder %s17_s24, 4  }
 0x2fa   :  { %16 = sbr.rel (!%p14_p4) target bundleno = 1 (0x1), region = 78 }

// kernel: pfhead_local_forward.3
= control target key start
LH: loop header
LB: loop body
LE: loop exit
PB: predicated region body
PF: predicated region fallthrough
CT: control target
= control target key end

     0   :  { %s5204_s13 = smov 0   ;;  %s6705_s0 = inlined_call_operand.vmem [shape: bf16[2,4,1024], index: 0, kind: input, shape index: {}]   ;;  %s6706_s1 = inlined_call_operand.vmem [shape: bf16[4,4], index: 1, kind: input, shape index: {}]   ;;  %s6707_s2 = inlined_call_operand.<no memory space> [shape: f32[1,1], index: 2, kind: input, shape index: {}]   ;;  %s6708_s3 = inlined_call_operand.vmem [shape: bf16[16,36], index: 3, kind: input, shape index: {}]   ;;  %s6709_s4 = inlined_call_operand.vmem [shape: bf16[16,36], index: 4, kind: input, shape index: {}]   ;;  %s6710_s5 = inlined_call_operand.vmem [shape: f32[16,1], index: 5, kind: input, shape index: {}]   ;;  %s6711_s6 = inlined_call_operand.vmem [shape: f32[16,1], index: 6, kind: input, shape index: {}]   ;;  %s6712_s7 = inlined_call_operand.vmem [shape: bf16[4,16], index: 7, kind: input, shape index: {}]   ;;  %s6713_s9 = inlined_call_operand.vmem [shape: f32[2,4,1024], index: 9, kind: output, shape index: {}]   ;;  %s6714_s8 = inlined_call_operand.<no memory space> [shape: f32[1,1], index: 8, kind: input, shape index: {}]  }
   0x1   :  { %v14_v0 = vstv %s6707_s2  ;;  %v16_v1 = vstv %s6714_s8 }
   0x2   :  { %15 = vst [vmem:[#allocation6] sm:$0x1] %v14_v0  ;;  %17 = vst [vmem:[#allocation7] sm:$0x1] %v16_v1 }
   0x3 LB: > { %s4730_s14 = sadd.s32 4294967295, %s5133_s13   ;;  %p4734_p0 = scmp.ge.s32.totalorder %s5133_s13, 1  ;;  %s5133_s13 = sphi %s5204_s13, %s23_s13  }
   0x4   : > { %p291_p1 = scmp.lt.s32.totalorder %s5133_s13, 3 }
   0x6   : > { %p292_p2 = pnand %p4734_p0, %p291_p1 }
   0x8   : > { %295 = sbr.rel (%p292_p2) target bundleno = 1362 (0x552), region = 56 }
   0xf   : > { %v4739_v2 = vld [vmem:[#allocation6] ss:$0 sm:$0xff]  ;;  %p327_p3 = scmp.lt.s32.totalorder %s4730_s14, 1  ;;  %v340_v3 = vlaneseq  ;;  %v6733_v4 = vmov 0   ;;  %v5136_v5 = vmov 1983009808  }
  0x10   : > { %4930 = vset.pattern.permute.xlu0 %v6733_v4  ;;  %v476_v6 = vunpack.c.l.s4 %v5136_v5  ;;  %569 = vmatprep.mubr.bf16.mxu0 %v6733_v4  ;;  %vm6716_vm0 = vcmask 265216   ;;  %v5137_v9 = vmov 0.0   ;;  %vm751_vm1 = vcmask 535816   ;;  %s5138_s17 = smov 33   ;;  %v461_v30 = vld [vmem:[%s6706_s1] sm:$0x3] }
  0x11   : > { %469 = vperm.xlu0 %4930, %v4739_v2   ;;  %s6975_s14 = smov (!%p327_p3, %s4730_s14), 1  ;;  %v5217_v7 = vshrl.u32 %v340_v3, 7  ;;  %610 = vmatprep.mubr.bf16.mxu1 %v6733_v4  ;;  %750 = vst.msk [vmem:[#allocation2] sm:$0xf] %vm6716_vm0, %v5137_v9  ;;  %795 = vst.msk [vmem:[#allocation3] sm:$0xf] %vm6716_vm0, %v5137_v9 }
  0x12   : > { %v477_v8 = vunpack.c.0.s8 %v476_v6  ;;  %5041 = vset.pattern.permute.xlu1 %v6733_v4  ;;  %s4852_s2 = sshll.u32 %s6975_s14, 4  ;;  %vm6715_vm2 = vcmask 1041408   ;;  %752 = vst.msk [vmem:[#allocation2 + $0x20] sm:$0xf] %vm751_vm1, %v5137_v9  ;;  %796 = vst.msk [vmem:[#allocation3 + $0x20] sm:$0xf] %vm751_vm1, %v5137_v9 }
  0x13   : > { %s331_s16 = scalar_lea.vmem %s6705_s0, %s4852_s2  ;;  %vm508_vm3 = vcmask 31744   ;;  %vm787_vm4 = vcmask 1043720   ;;  %vm788_vm5 = vcmask 1047556   ;;  %vm6717_vm6 = vcmask 269312   ;;  %s5139_s20 = smov 94  }
  0x14   : > { %v480_v10 = vsub.s32 %v477_v8, %v5217_v7  ;;  %v338_v11 = vld [vmem:[%s331_s16] sm:$0xff]  ;;  %v339_v12 = vld [vmem:[%s331_s16 + $0x8] sm:$0xff]  ;;  %vm6719_vm7 = vcmask 1043456   ;;  %vm5249_vm8 = vmor %vm788_vm5, %vm787_vm4  ;;  %v5264_v45 = vand.u32 127, %v340_v3  ;;  %s5140_s21 = smov 96   ;;  %s5141_s22 = smov 64  }
  0x15   : > { %v753_v14 = vunpack.c.l.bf16 %v338_v11  ;;  %v754_v15 = vunpack.c.h.bf16 %v338_v11  ;;  %v474_v16 = vcombine.high %v338_v11, %v338_v11  ;;  %v755_v17 = vunpack.c.l.bf16 %v339_v12  ;;  %s5142_s23 = smov 126   ;;  %s5143_s24 = smov 95  }
  0x16   : > { %v481_v13 = vrot.slane %v338_v11, %v480_v10  ;;  %v756_v18 = vunpack.c.h.bf16 %v339_v12  ;;  %v498_v19 = vrot.slane %v339_v12, %v480_v10  ;;  %v491_v20 = vcombine.high %v339_v12, %v339_v12  ;;  %s5144_s25 = smov 127   ;;  %s5146_s26 = smov 63  }
  0x17   : > { %v4931_v22 = vpack.i.bf16 %v754_v15, %v753_v14  ;;  %v488_v24 = vrot.slane %v474_v16, %v480_v10  ;;  %v5267_v50 = vadd.s32 128, %v5264_v45  ;;  %v5275_v54 = vadd.s32 256, %v5264_v45  ;;  %s5147_s27 = smov 62  }
  0x18   : > { %v489_v21 = vcombine.high %v481_v13, %v481_v13  ;;  %v514_v23 = vsel %vm6715_vm2, %v481_v13, 0  ;;  %v4936_v25 = vpack.i.bf16 %v756_v18, %v755_v17  ;;  %v506_v26 = vcombine.high %v498_v19, %v498_v19 }
  0x19   : > { %v505_v27 = vrot.slane %v491_v20, %v480_v10  ;;  %4932 = vrot.lane.b32.xlu1 %v4931_v22, %s5138_s17  ;;  %v490_v28 = vcombine.high %v488_v24, %v488_v24  ;;  %v520_v29 = vsel %vm6715_vm2, %v488_v24, 0  ;;  %v526_v32 = vsel %vm6715_vm2, %v498_v19, 0 }
  0x1a   : > { %4740 = vmatprep.subr.msk.bf16.mxu0 %vm6715_vm2, %v489_v21  ;;  %4937 = vrot.lane.b32.xlu0 %v4936_v25, %s5138_s17  ;;  %v5278_v55 = vadd.s32 384, %v5264_v45  ;;  %v353_v59 = vand.u32 31, %v5264_v45  ;;  %v5293_v61 = vadd.s32 512, %v5264_v45  ;;  %v360_v62 = vand.u32 31, %v5267_v50 }
  0x1b   : > { %538 = vmatpush1.bf16.msra.mxu0 %v514_v23  ;;  %v507_v31 = vcombine.high %v505_v27, %v505_v27  ;;  %4742 = vmatprep.subr.msk.bf16.mxu1 %vm6715_vm2, %v490_v28  ;;  %v532_v33 = vsel %vm6715_vm2, %v505_v27, 0  ;;  %v367_v63 = vand.u32 31, %v5275_v54  ;;  %v5305_v3 = vadd.s32 640, %v5264_v45 }
  0x1c   : > { %4744 = vmatprep.subr.msk.bf16.mxu0 %vm6715_vm2, %v506_v26  ;;  %579 = vmatpush1.bf16.msra.mxu1 %v520_v29  ;;  %v374_v0 = vand.u32 31, %v5278_v55  ;;  %vm5309_vm9 = vcmp.ne.s32.totalorder %v353_v59, 0  ;;  %v6739_v9 = vand.u32 31, %v5293_v61  ;;  %vm5316_vm10 = vcmp.ne.s32.totalorder %v360_v62, 0 }
  0x1d   : > { %4746 = vmatprep.subr.msk.bf16.mxu1 %vm6715_vm2, %v507_v31  ;;  %vm5322_vm11 = vcmp.ne.s32.totalorder %v367_v63, 0  ;;  %v6741_v17 = vand.u32 31, %v5305_v3  ;;  %v6775_v19 = vmov 0  ;;  %v5354_v25 = vadd.s32 768, %v5264_v45 }
  0x1e   : > { %4741 = vmatmul.mubr.msk.bf16.vlgmr.msra.gmra.mrb[0].mxu0 %vm508_vm3, %v461_v30  ;;  %vm5328_vm12 = vcmp.ne.s32.totalorder %v374_v0, 0  ;;  %vm5341_vm13 = vcmp.ne.s32.totalorder %v6739_v9, 0  ;;  %v6777_v26 = vmov 0  ;;  %v5363_v28 = vadd.s32 896, %v5264_v45 }
  0x1f   : > { %620 = vmatpush1.bf16.msra.mxu0 %v526_v32  ;;  %651 = vmatprep.mubr.bf16.mxu0 %v6733_v4  ;;  %v6776_v19 = vsel %vm5341_vm13, 4294967295, %v6775_v19  ;;  %vm5358_vm14 = vcmp.ne.s32.totalorder %v6741_v17, 0  ;;  %v6740_v32 = vand.u32 31, %v5354_v25  ;;  %vm5442_vm4 = vcmp.ne.s32.totalorder %v353_v59, 31 }
  0x20   : > { %4743 = vmatmul.mubr.msk.bf16.vlgmr.msra.gmra.mrb[0].mxu1 %vm508_vm3, %v461_v30  ;;  %v6778_v26 = vsel %vm5358_vm14, 4294967295, %v6777_v26  ;;  %vm6721_vm5 = vcmask 769024   ;;  %vm6722_vm2 = vcmask 1031168  }
  0x21   : > { %661 = vmatpush1.bf16.msra.mxu1 %v532_v33  ;;  %692 = vmatprep.mubr.bf16.mxu1 %v6733_v4  ;;  %vm5377_vm15 = vcmp.ne.s32.totalorder %v6740_v32, 0 }
  0x26   : > { %4745 = vmatmul.mubr.msk.bf16.vlgmr.msra.gmra.mrb[4].mxu0 %vm508_vm3, %v461_v30 }
  0x27   : > { %3888 = vmatprep.mubr.bf16.mxu0 %v6733_v4 }
  0x28   : > { %4747 = vmatmul.mubr.msk.bf16.vlgmr.msra.gmra.mrb[4].mxu1 %vm508_vm3, %v461_v30  ;;  %vm6718_vm3 = vcmask 785408  }
  0x29   : > { %3931 = vmatprep.mubr.bf16.mxu1 %v6733_v4 }
  0x8b   : > { %v4933_v34 = vpop.permute.xlu1 %4932 }
  0x8c   : > { %v4935_v35 = vunpack.i.h.bf16 %v4933_v34  ;;  %v4934_v36 = vunpack.i.l.bf16 %v4933_v34  ;;  %v6742_v34 = vand.u32 31, %v5363_v28 }
  0x8e   : > { %v770_v38 = vrot.slane %v4935_v35, 4  ;;  %v769_v39 = vrot.slane %v4934_v36, 4  ;;  %vm5383_vm1 = vcmp.ne.s32.totalorder %v6742_v34, 0 }
  0x90   : > { %v5253_v40 = vpop.permute.xlu0 %469  ;;  %v774_v41 = vsel %vm6717_vm6, %v769_v39, %v4934_v36  ;;  %v776_v42 = vsel %vm6719_vm7, %v769_v39, %v770_v38 }
  0x91   : > { %v5258_v43 = vsel %vm6717_vm6, %v776_v42, %v4935_v35  ;;  %790 = vst.msk [vmem:[#allocation2] sm:$0xff] %vm5249_vm8, %v774_v41  ;;  %v6779_v35 = vmov 0 }
  0x92   : > { %791 = vst [vmem:[#allocation2 + $0x8] sm:$0xff] %v5258_v43  ;;  %v1121_v1 = vcombine.high %v5258_v43, %v5258_v43  ;;  %v6780_v35 = vsel %vm5377_vm15, 4294967295, %v6779_v35 }
  0x94   : > { %v4938_v44 = vpop.permute.xlu0 %4937  ;;  %v4961_v15 = vpack.i.bf16 %v1121_v1, %v5258_v43  ;;  %v4872_v42 = vpack.c.bf16 %v1121_v1, %v5258_v43 }
  0x95   : > { %v4940_v46 = vunpack.i.h.bf16 %v4938_v44  ;;  %v4939_v47 = vunpack.i.l.bf16 %v4938_v44 }
  0x96   : > { %v964_v43 = vrot.slane %v4872_v42, 6 }
  0x97   : > { %v772_v48 = vrot.slane %v4940_v46, 4  ;;  %v771_v49 = vrot.slane %v4939_v47, 4 }
  0x98   : > { %v5272_v53 = vld [vmem:[#allocation2] sm:$0xff] }
  0x99   : > { %794 = vst.msk [vmem:[#allocation2 + $0x20] sm:$0xf] %vm6716_vm0, %v772_v48  ;;  %v778_v51 = vsel %vm6719_vm7, %v770_v38, %v771_v49  ;;  %v780_v52 = vsel %vm6719_vm7, %v771_v49, %v772_v48  ;;  %v5286_v58 = vcombine.high %v5272_v53, %v5272_v53  ;;  %v838_v6 = vld [vmem:[#allocation2] sm:$0xff]  ;;  %v839_v8 = vld [vmem:[#allocation2 + $0x8] sm:$0xff]  ;;  %v6781_v38 = vmov 0 }
  0x9a   : > { %v5281_v56 = vsel %vm6717_vm6, %v778_v51, %v4939_v47  ;;  %v781_v57 = vsel %vm6717_vm6, %v780_v52, %v4940_v46  ;;  %v862_v10 = vcombine.high %v838_v6, %v838_v6  ;;  %v863_v14 = vcombine.high %v839_v8, %v839_v8 }
  0x9b   : > { %792 = vst [vmem:[#allocation2 + $0x10] sm:$0xff] %v5281_v56  ;;  %793 = vst [vmem:[#allocation2 + $0x18] sm:$0xff] %v781_v57  ;;  %v4951_v60 = vpack.i.bf16 %v5286_v58, %v5272_v53  ;;  %v1122_v2 = vcombine.high %v5281_v56, %v5281_v56  ;;  %v870_v18 = vsel %vm5309_vm9, %v838_v6, 0.0  ;;  %v872_v23 = vsel %vm5322_vm11, %v839_v8, 0.0 }
  0x9c   : > { %v871_v20 = vsel %vm5316_vm10, %v862_v10, 0.0  ;;  %v873_v24 = vsel %vm5328_vm12, %v863_v14, 0.0  ;;  %v6782_v38 = vsel %vm5383_vm1, 4294967295, %v6781_v38  ;;  %v4871_v44 = vpack.c.bf16 %v5286_v58, %v5272_v53 }
  0x9d   : > { %4952 = vrot.lane.b32.xlu1 %v4951_v60, %s5139_s20  ;;  %4942 = vrot.lane.b32.xlu0 %v4951_v60, %s5140_s21  ;;  %v4966_v16 = vpack.i.bf16 %v1122_v2, %v5281_v56  ;;  %v4854_v22 = vpack.c.bf16 %v871_v20, %v870_v18  ;;  %v4855_v27 = vpack.c.bf16 %v873_v24, %v872_v23  ;;  %vm5452_vm0 = vcmp.ne.s32.totalorder %v360_v62, 31 }
  0x9e   : > { %v4873_v48 = vpack.c.bf16 %v1122_v2, %v5281_v56  ;;  %v963_v49 = vrot.slane %v4871_v44, 6  ;;  %vm5463_vm6 = vcmp.ne.s32.totalorder %v367_v63, 31  ;;  %vm5487_vm7 = vcmp.ne.s32.totalorder %v374_v0, 31 }
  0x9f   : > { %910 = vst [vmem:[#allocation4] sm:$0x33] %v4854_v22  ;;  %911 = vst [vmem:[#allocation4 + $0x8] sm:$0x33] %v4855_v27 }
  0xa0   : > { %v965_v51 = vrot.slane %v4873_v48, 6 }
  0xa1   : > { %4957 = vrot.lane.b32.xlu1 %v4951_v60, %s5141_s22  ;;  %4947 = vrot.lane.b32.xlu0 %v4951_v60, %s5142_s23 }
  0xa2   : > { %v840_v21 = vld [vmem:[#allocation2 + $0x10] sm:$0xff]  ;;  %v841_v36 = vld [vmem:[#allocation2 + $0x18] sm:$0xff] }
  0xa3   : > { %v864_v29 = vcombine.high %v840_v21, %v840_v21  ;;  %v874_v30 = vsel %vm5341_vm13, %v840_v21, 0.0  ;;  %v865_v39 = vcombine.high %v841_v36, %v841_v36  ;;  %v876_v41 = vsel %vm5377_vm15, %v841_v36, 0.0 }
  0xa5   : > { %4962 = vrot.lane.b32.xlu1 %v4961_v15, %s5140_s21  ;;  %4967 = vrot.lane.b32.xlu0 %v4966_v16, %s5140_s21  ;;  %v875_v31 = vsel %vm5358_vm14, %v864_v29, 0.0  ;;  %v877_v46 = vsel %vm5383_vm1, %v865_v39, 0.0 }
  0xa6   : > { %v4856_v33 = vpack.c.bf16 %v875_v31, %v874_v30  ;;  %v4857_v47 = vpack.c.bf16 %v877_v46, %v876_v41 }
  0xa8   : > { %912 = vst [vmem:[#allocation4 + $0x10] sm:$0x33] %v4856_v33  ;;  %913 = vst [vmem:[#allocation4 + $0x18] sm:$0x33] %v4857_v47 }
  0xa9   : > { %4972 = vrot.lane.b32.xlu1 %v4961_v15, %s5142_s23  ;;  %4977 = vrot.lane.b32.xlu0 %v4966_v16, %s5142_s23 }
  0xad   : > { %4987 = vrot.lane.b32.xlu1 %v4966_v16, %s5139_s20  ;;  %4982 = vrot.lane.b32.xlu0 %v4961_v15, %s5139_s20 }
  0xb1   : > { %4997 = vrot.lane.b32.xlu1 %v4966_v16, %s5141_s22  ;;  %4992 = vrot.lane.b32.xlu0 %v4961_v15, %s5141_s22 }
  0xb5   : > { %1258 = vrot.lane.b32.xlu1 %v4872_v42, %s5143_s24  ;;  %1256 = vrot.lane.b32.xlu0 %v4871_v44, %s5143_s24 }
  0xb9   : > { %1260 = vrot.lane.b32.xlu0 %v4873_v48, %s5143_s24  ;;  %968 = vrot.lane.b32.xlu1 %v963_v49, %s5144_s25 }
  0xbd   : > { %970 = vrot.lane.b32.xlu0 %v964_v43, %s5144_s25  ;;  %972 = vrot.lane.b32.xlu1 %v965_v51, %s5144_s25 }
  0xf1   : > { %v571_v52 = vpop.f32.mrb[0].mxu0 }
  0xf2   : > { %v572_v53 = vadd.f32 %v571_v52, %v5253_v40  ;;  %v573_v57 = vpop.f32.mrb[1].mxu0 }
  0xf3   : > { %v574_v58 = vadd.f32 %v573_v57, %v5253_v40  ;;  %v612_v60 = vpop.f32.mrb[0].mxu1  ;;  %v575_v56 = vpop.f32.mrb[2].mxu0 }
  0xf4   : > { %v4748_v1 = vmul.f32 -1.442695, %v572_v53  ;;  %v613_v2 = vadd.f32 %v612_v60, %v5253_v40  ;;  %v614_v6 = vpop.f32.mrb[1].mxu1  ;;  %v576_v8 = vpop.f32.mrb[3].mxu0 }
  0xf5   : > { %v4749_v10 = vmul.f32 -1.442695, %v574_v58  ;;  %v615_v14 = vadd.f32 %v614_v6, %v5253_v40  ;;  %v616_v15 = vpop.f32.mrb[2].mxu1 }
  0xf6   : > { %5063 = vpow2.f32 %v4748_v1  ;;  %v4750_v16 = vmul.f32 -1.442695, %v613_v2  ;;  %v617_v18 = vpop.f32.mrb[3].mxu1 }
  0xf7   : > { %5065 = vpow2.f32 %v4749_v10  ;;  %v4751_v20 = vmul.f32 -1.442695, %v615_v14 }
  0xf8   : > { %5067 = vpow2.f32 %v4750_v16 }
  0xf9   : > { %5069 = vpow2.f32 %v4751_v20  ;;  %v653_v21 = vpop.f32.mrb[4].mxu0 }
  0xfa   : > { %v654_v22 = vadd.f32 %v653_v21, %v5253_v40  ;;  %v655_v23 = vpop.f32.mrb[5].mxu0 }
  0xfb   : > { %v656_v24 = vadd.f32 %v655_v23, %v5253_v40  ;;  %v694_v27 = vpop.f32.mrb[4].mxu1  ;;  %v657_v29 = vpop.f32.mrb[6].mxu0 }
  0xfc   : > { %v4752_v30 = vmul.f32 -1.442695, %v654_v22  ;;  %v695_v31 = vadd.f32 %v694_v27, %v5253_v40  ;;  %v696_v33 = vpop.f32.mrb[5].mxu1  ;;  %v658_v36 = vpop.f32.mrb[7].mxu0 }
  0xfd   : > { %v4753_v39 = vmul.f32 -1.442695, %v656_v24  ;;  %v697_v41 = vadd.f32 %v696_v33, %v5253_v40  ;;  %v698_v42 = vpop.f32.mrb[6].mxu1 }
  0xfe   : > { %5071 = vpow2.f32 %v4752_v30  ;;  %v4754_v44 = vmul.f32 -1.442695, %v695_v31  ;;  %v699_v46 = vpop.f32.mrb[7].mxu1 }
  0xff   : > { %5073 = vpow2.f32 %v4753_v39  ;;  %v4755_v47 = vmul.f32 -1.442695, %v697_v41 }
 0x100   : > { %v5064_v48 = vpop.eup %5063  ;;  %5075 = vpow2.f32 %v4754_v44 }
 0x101   : > { %v5066_v49 = vpop.eup %5065  ;;  %v725_v43 = vadd.f32 1.0, %v5064_v48  ;;  %5077 = vpow2.f32 %v4755_v47  ;;  %v6788_v47 = vmov 0 }
 0x102   : > { %v5068_v51 = vpop.eup %5067  ;;  %v726_v52 = vadd.f32 1.0, %v5066_v49  ;;  %v6789_v47 = vsel %vm5442_vm4, 4294967295, %v6788_v47 }
 0x103   : > { %v5070_v53 = vpop.eup %5069  ;;  %5079 = vrcp.f32 %v725_v43  ;;  %v727_v57 = vadd.f32 1.0, %v5068_v51 }
 0x104   : > { %5081 = vrcp.f32 %v726_v52  ;;  %v728_v58 = vadd.f32 1.0, %v5070_v53 }
 0x105   : > { %5083 = vrcp.f32 %v727_v57 }
 0x106   : > { %5085 = vrcp.f32 %v728_v58  ;;  %v6792_v58 = vmov 0 }
 0x107   : > { %v6793_v58 = vsel %vm5463_vm6, 4294967295, %v6792_v58 }
 0x108   : > { %v5072_v40 = vpop.eup %5071 }
 0x109   : > { %v5074_v60 = vpop.eup %5073  ;;  %v729_v56 = vadd.f32 1.0, %v5072_v40 }
 0x10a   : > { %v5076_v1 = vpop.eup %5075  ;;  %v730_v2 = vadd.f32 1.0, %v5074_v60 }
 0x10b   : > { %v5078_v6 = vpop.eup %5077  ;;  %5087 = vrcp.f32 %v729_v56  ;;  %v731_v8 = vadd.f32 1.0, %v5076_v1 }
 0x10c   : > { %5089 = vrcp.f32 %v730_v2  ;;  %v732_v10 = vadd.f32 1.0, %v5078_v6 }
 0x10d   : > { %v5411_v14 = vpop.eup %5079  ;;  %5091 = vrcp.f32 %v731_v8 }
 0x10e   : > { %v5413_v15 = vpop.eup %5081  ;;  %5093 = vrcp.f32 %v732_v10 }
 0x10f   : > { %v5415_v16 = vpop.eup %5083  ;;  %v805_v18 = vcombine.low %v5411_v14, %v5413_v15  ;;  %v5421_v21 = vpop.permute.xlu1 %4952 }
 0x110   : > { %v5419_v20 = vpop.eup %5085  ;;  %v4943_v22 = vpop.permute.xlu0 %4942  ;;  %v4955_v45 = vunpack.i.h.bf16 %v5421_v21  ;;  %v4954_v56 = vunpack.i.l.bf16 %v5421_v21 }
 0x111   : > { %6783 = vst [vmem:[#allocation8_spill] sm:$0xff] %v5419_v20  ;;  %809 = vrot.lane.b32.xlu0 %v805_v18, %s5138_s17  ;;  %v806_v23 = vcombine.low %v5415_v16, %v5419_v20  ;;  %v4945_v24 = vunpack.i.h.bf16 %v4943_v22  ;;  %v4944_v27 = vunpack.i.l.bf16 %v4943_v22 }
 0x113   : > { %811 = vrot.lane.b32.xlu1 %v806_v23, %s5138_s17  ;;  %v5427_v29 = vpop.permute.xlu1 %4957  ;;  %v1143_v39 = vsel %vm6718_vm3, %v4944_v27, %v4945_v24  ;;  %v6794_v23 = vmov 0 }
 0x114   : > { %v4948_v30 = vpop.permute.xlu0 %4947  ;;  %v1159_v59 = vsel %vm5309_vm9, %v1143_v39, 0.0  ;;  %v6795_v23 = vsel %vm5487_vm7, 4294967295, %v6794_v23 }
 0x115   : > { %v5429_v31 = vpop.eup %5087  ;;  %v4950_v41 = vunpack.i.h.bf16 %v4948_v30  ;;  %v4949_v42 = vunpack.i.l.bf16 %v4948_v30 }
 0x116   : > { %6784 = vst [vmem:[#allocation9_spill] sm:$0xff] %v5429_v31  ;;  %v5431_v33 = vpop.eup %5089 }
 0x117   : > { %6785 = vst [vmem:[#allocation10_spill] sm:$0xff] %v5431_v33  ;;  %v5433_v36 = vpop.eup %5091  ;;  %v807_v44 = vcombine.low %v5429_v31, %v5431_v33  ;;  %v4963_v48 = vpop.permute.xlu1 %4962  ;;  %v1050_v50 = vsel %vm6722_vm2, %v4949_v42, %v4950_v41 }
 0x118   : > { %6786 = vst [vmem:[#allocation11_spill] sm:$0xff] %v5433_v36  ;;  %v5438_v46 = vpop.eup %5093  ;;  %v5446_v49 = vpop.permute.xlu0 %4967  ;;  %v4965_v43 = vunpack.i.h.bf16 %v4963_v48  ;;  %v4964_v51 = vunpack.i.l.bf16 %v4963_v48  ;;  %v1066_v21 = vsel %vm5442_vm4, %v1050_v50, 0.0 }
 0x119   : > { %6787 = vst [vmem:[#allocation12_spill] sm:$0xff] %v5438_v46  ;;  %v6738_v52 = vunpack.i.l.bf16 %v5446_v49  ;;  %813 = vrot.lane.b32.xlu1 %v807_v44, %s5138_s17  ;;  %v808_v57 = vcombine.low %v5433_v36, %v5438_v46  ;;  %v1321_v44 = vsel %vm6721_vm5, %v4954_v56, %v4955_v45 }
 0x11a   : > { %v1144_v62 = vsel %vm6718_vm3, %v4945_v24, %v4964_v51  ;;  %v1145_v40 = vsel %vm6718_vm3, %v4964_v51, %v4965_v43 }
 0x11b   : > { %v1146_v60 = vsel %vm6718_vm3, %v4965_v43, %v6738_v52  ;;  %v1160_v1 = vsel %vm5316_vm10, %v1144_v62, 0.0  ;;  %v1161_v54 = vsel %vm5322_vm11, %v1145_v40, 0.0  ;;  %815 = vrot.lane.b32.xlu0 %v808_v57, %s5138_s17  ;;  %v4973_v2 = vpop.permute.xlu1 %4972  ;;  %vm6720_vm3 = vcmask 523264  }
 0x11c   : > { %v1162_v63 = vsel %vm5328_vm12, %v1146_v60, 0.0  ;;  %v5481_v6 = vpop.permute.xlu0 %4977  ;;  %v4867_v8 = vpack.c.bf16 %v1160_v1, %v1159_v59  ;;  %v4975_v18 = vunpack.i.h.bf16 %v4973_v2  ;;  %v4974_v22 = vunpack.i.l.bf16 %v4973_v2 }
 0x11d   : > { %v4868_v10 = vpack.c.bf16 %v1162_v63, %v1161_v54  ;;  %v6737_v24 = vunpack.i.l.bf16 %v5481_v6  ;;  %v4960_v59 = vunpack.i.h.bf16 %v5427_v29  ;;  %v1337_v1 = vsel %vm5442_vm4, %v1321_v44, 0.0 }
 0x11e   : > { %v1195_v27 = vrot.slane %v4867_v8, 6  ;;  %v1051_v39 = vsel %vm6722_vm2, %v4950_v41, %v4974_v22  ;;  %v1052_v42 = vsel %vm6722_vm2, %v4974_v22, %v4975_v18  ;;  %v4959_v41 = vunpack.i.l.bf16 %v5427_v29 }
 0x11f   : > { %v1196_v30 = vrot.slane %v4868_v10, 6  ;;  %v1067_v48 = vsel %vm5452_vm0, %v1051_v39, 0.0  ;;  %v1068_v55 = vsel %vm5463_vm6, %v1052_v42, 0.0  ;;  %v1053_v0 = vsel %vm6722_vm2, %v4975_v18, %v6737_v24  ;;  %v5502_v43 = vpop.permute.xlu1 %4987 }
 0x120   : > { %v4983_v51 = vpop.permute.xlu0 %4982  ;;  %1203 = vst [vmem:[#allocation4 + $0x20] sm:$0xcc] %v1195_v27  ;;  %v4863_v57 = vpack.c.bf16 %v1067_v48, %v1066_v21  ;;  %v1069_v50 = vsel %vm5487_vm7, %v1053_v0, 0.0  ;;  %v6735_v40 = vunpack.i.l.bf16 %v5502_v43  ;;  %v1418_v10 = vsel %vm6720_vm3, %v4959_v41, %v4960_v59 }
 0x121   : > { %1204 = vst [vmem:[#allocation4 + $0x28] sm:$0xcc] %v1196_v30  ;;  %v4864_v62 = vpack.c.bf16 %v1069_v50, %v1068_v55  ;;  %v4985_v60 = vunpack.i.h.bf16 %v4983_v51  ;;  %v4984_v56 = vunpack.i.l.bf16 %v4983_v51  ;;  %v1434_v44 = vsel %vm5309_vm9, %v1418_v10, 0.0 }
 0x122   : > { %1106 = vst [vmem:[#allocation4 + $0x20] sm:$0x33] %v4863_v57  ;;  %vm6805_vm4 = vcmask 265216  }
 0x123   : > { %1107 = vst [vmem:[#allocation4 + $0x28] sm:$0x33] %v4864_v62  ;;  %v1324_v29 = vsel %vm6721_vm5, %v4985_v60, %v6735_v40  ;;  %v1322_v54 = vsel %vm6721_vm5, %v4955_v45, %v4984_v56  ;;  %v1323_v63 = vsel %vm6721_vm5, %v4984_v56, %v4985_v60  ;;  %v5516_v2 = vpop.permute.xlu1 %4997  ;;  %vm6796_vm5 = vcmask 1043456  }
 0x124   : > { %v4993_v8 = vpop.permute.xlu0 %4992  ;;  %v1340_v18 = vsel %vm5487_vm7, %v1324_v29, 0.0  ;;  %v1338_v22 = vsel %vm5452_vm0, %v1322_v54, 0.0  ;;  %v1339_v21 = vsel %vm5463_vm6, %v1323_v63, 0.0  ;;  %v6731_v45 = vunpack.i.l.bf16 %v5516_v2  ;;  %vm6797_vm2 = vmmov %vm6796_vm5 }
 0x125   : > { %v4876_v27 = vpack.c.bf16 %v1338_v22, %v1337_v1  ;;  %v4877_v30 = vpack.c.bf16 %v1340_v18, %v1339_v21  ;;  %v4995_v39 = vunpack.i.h.bf16 %v4993_v8  ;;  %v4994_v42 = vunpack.i.l.bf16 %v4993_v8  ;;  %vm6799_vm6 = vmmov %vm6797_vm2 }
 0x126   : > { %vm6728_vm7 = vcmask 1039360  }
 0x127   : > { %v1373_v48 = vrot.slane %v4876_v27, 6  ;;  %v1374_v55 = vrot.slane %v4877_v30, 6  ;;  %v1259_v0 = vpop.permute.xlu1 %1258  ;;  %v1421_v41 = vsel %vm6720_vm3, %v4995_v39, %v6731_v45  ;;  %v1419_v57 = vsel %vm6720_vm3, %v4960_v59, %v4994_v42 }
 0x128   : > { %v1257_v51 = vpop.permute.xlu0 %1256  ;;  %v1420_v50 = vsel %vm6720_vm3, %v4994_v42, %v4995_v39  ;;  %v1437_v62 = vsel %vm5328_vm12, %v1421_v41, 0.0  ;;  %v1435_v60 = vsel %vm5316_vm10, %v1419_v57, 0.0  ;;  %v1267_v54 = vrot.slane %v1259_v0, 4 }
 0x129   : > { %1381 = vst [vmem:[#allocation4 + $0x40] sm:$0xcc] %v1373_v48  ;;  %1382 = vst [vmem:[#allocation4 + $0x48] sm:$0xcc] %v1374_v55  ;;  %v1436_v56 = vsel %vm5322_vm11, %v1420_v50, 0.0  ;;  %v4880_v1 = vpack.c.bf16 %v1435_v60, %v1434_v44  ;;  %v1266_v63 = vrot.slane %v1257_v51, 4 }
 0x12a   : > { %v4881_v29 = vpack.c.bf16 %v1437_v62, %v1436_v56  ;;  %vm6727_vm3 = vcmask 777216  }
 0x12b   : > { %v969_v59 = vpop.permute.xlu1 %968  ;;  %1474 = vst [vmem:[#allocation4 + $0x60] sm:$0x33] %v4880_v1  ;;  %v1271_v10 = vsel %vm6796_vm5, %v1266_v63, %v1267_v54  ;;  %vm6798_vm5 = vmmov %vm6797_vm2 }
 0x12c   : > { %v5539_v8 = vpop.permute.xlu0 %1260  ;;  %1475 = vst [vmem:[#allocation4 + $0x68] sm:$0x33] %v4881_v29  ;;  %v1273_v22 = vsel %vm6727_vm3, %v1257_v51, %v1271_v10  ;;  %v978_v27 = vrot.slane %v969_v59, 4 }
 0x12d   : > { %v6732_v18 = vrot.slane %v5539_v8, 4  ;;  %1284 = vst [vmem:[#allocation4 + $0x40] sm:$0x33] %v1273_v22 }
 0x12f   : > { %v1274_v21 = vsel %vm6797_vm2, %v1267_v54, %v6732_v18  ;;  %v5548_v42 = vpop.permute.xlu1 %972  ;;  %vm6800_vm2 = vcmask 269312  }
 0x130   : > { %v1275_v30 = vsel %vm6727_vm3, %v1259_v0, %v1274_v21  ;;  %v971_v39 = vpop.permute.xlu0 %970  ;;  %v6736_v48 = vrot.slane %v5548_v42, 4  ;;  %vm6801_vm3 = vmmov %vm6800_vm2 }
 0x131   : > { %1285 = vst [vmem:[#allocation4 + $0x48] sm:$0x33] %v1275_v30  ;;  %v979_v44 = vrot.slane %v971_v39, 4  ;;  %v5568_v30 = vsub.s32 0, %v5217_v7 }
 0x133   : > { %v984_v55 = vsel %vm6798_vm5, %v978_v27, %v979_v44  ;;  %v987_v51 = vsel %vm6799_vm6, %v979_v44, %v6736_v48  ;;  %vm6802_vm6 = vmmov %vm6798_vm5 }
 0x134   : > { %v986_v41 = vsel %vm6728_vm7, %v969_v59, %v984_v55  ;;  %v988_v57 = vsel %vm6728_vm7, %v971_v39, %v987_v51  ;;  %vm6803_vm7 = vmmov %vm6800_vm2 }
 0x135   : > { %997 = vst [vmem:[#allocation4] sm:$0xcc] %v986_v41  ;;  %998 = vst [vmem:[#allocation4 + $0x8] sm:$0xcc] %v988_v57 }
 0x183   : > { %v810_v0 = vpop.permute.xlu0 %809 }
 0x184   : > { %v817_v50 = vrot.slane %v810_v0, 4 }
 0x185   : > { %v812_v60 = vpop.permute.xlu1 %811 }
 0x186   : > { %v821_v62 = vsel %vm6800_vm2, %v817_v50, %v810_v0  ;;  %v818_v56 = vrot.slane %v812_v60, 4  ;;  %vm6804_vm2 = vmmov %vm6798_vm5 }
 0x187   : > { %833 = vst.msk [vmem:[#allocation3] sm:$0xff] %vm5249_vm8, %v821_v62  ;;  %vm6806_vm8 = vmmov %vm6801_vm3 }
 0x188   : > { %v822_v1 = vsel %vm6798_vm5, %v817_v50, %v818_v56  ;;  %vm6809_vm5 = vcmask 777216  }
 0x189   : > { %v823_v29 = vsel %vm6801_vm3, %v822_v1, %v812_v60  ;;  %vm6807_vm3 = vcmask 1039360  }
 0x18a   : > { %834 = vst [vmem:[#allocation3 + $0x8] sm:$0xff] %v823_v29 }
 0x18b   : > { %v814_v54 = vpop.permute.xlu1 %813 }
 0x18c   : > { %v819_v63 = vrot.slane %v814_v54, 4 }
 0x18d   : > { %v816_v10 = vpop.permute.xlu0 %815 }
 0x18e   : > { %v824_v59 = vsel %vm6802_vm6, %v818_v56, %v819_v63  ;;  %v820_v21 = vrot.slane %v816_v10, 4  ;;  %vm6810_vm6 = vmmov %vm6809_vm5 }
 0x18f   : > { %v825_v22 = vsel %vm6803_vm7, %v824_v59, %v814_v54  ;;  %vm1780_vm7 = vcmask 1046528  }
 0x190   : > { %835 = vst [vmem:[#allocation3 + $0x10] sm:$0xff] %v825_v22  ;;  %v826_v27 = vsel %vm6804_vm2, %v819_v63, %v820_v21  ;;  %837 = vst.msk [vmem:[#allocation3 + $0x20] sm:$0xf] %vm6805_vm4, %v820_v21 }
 0x191   : > { %v827_v37 = vsel %vm6806_vm8, %v826_v27, %v816_v10  ;;  %vm6808_vm4 = vmmov %vm6807_vm3 }
 0x192   : > { %836 = vst [vmem:[#allocation3 + $0x18] sm:$0xff] %v827_v37  ;;  %vm6811_vm2 = vmmov %vm6809_vm5 }
 0x193   : > { %vm6812_vm8 = vmmov %vm6811_vm2 }
 0x197   : > { %v1771_v39 = vld [vmem:[#allocation3 + $0x22] ss:$4 sm:$0x1]  ;;  %v1985_v44 = vld [vmem:[#allocation3 + $0x23] ss:$4 sm:$0x1] }
 0x198   : > { %1776 = vrot.lane.b32.xlu1 %v1771_v39, %s5144_s25  ;;  %v2023_v55 = vrot.slane %v1985_v44, %v5568_v30  ;;  %v2367_v51 = vld [vmem:[#allocation3 + $0x20] ss:$4 sm:$0x1]  ;;  %v1790_v41 = vld [vmem:[#allocation3 + $0x23] ss:$4 sm:$0x1] }
 0x199   : > { %v2405_v57 = vrot.slane %v2367_v51, %v5568_v30  ;;  %v2685_v0 = vld [vmem:[#allocation3 + $0x21] ss:$4 sm:$0x1]  ;;  %v1952_v50 = vld [vmem:[#allocation3 + $0x20] ss:$4 sm:$0x1] }
 0x19a   : > { %2040 = vrot.lane.b32.xlu0 %v2023_v55, %s5140_s21  ;;  %v2723_v62 = vrot.slane %v2685_v0, %v5568_v30  ;;  %v3035_v60 = vld [vmem:[#allocation3 + $0x21] ss:$4 sm:$0x1]  ;;  %v2128_v29 = vld [vmem:[#allocation3 + $0x22] ss:$4 sm:$0x1] }
 0x19b   : > { %v1969_v56 = vld [vmem:[#allocation3 + $0x21] ss:$4 sm:$0x1]  ;;  %v3073_v1 = vrot.slane %v3035_v60, %v5568_v30  ;;  %v1769_v54 = vld [vmem:[#allocation3 + $0x2] ss:$4 sm:$0xff]  ;;  %v5603_v60 = vsub.s32 5, %v5217_v7 }
 0x19c   : > { %1795 = vrot.lane.b32.xlu1 %v1790_v41, %s5144_s25  ;;  %v2144_v63 = vld [vmem:[#allocation3 + $0x23] ss:$4 sm:$0x1]  ;;  %v2160_v10 = vld [vmem:[#allocation3 + $0x22] ss:$4 sm:$0x1] }
 0x19d   : > { %v1788_v59 = vld [vmem:[#allocation3 + $0x3] ss:$4 sm:$0xff]  ;;  %v1950_v22 = vld [vmem:[#allocation3] ss:$4 sm:$0xff]  ;;  %v1968_v27 = vld [vmem:[#allocation3 + $0x1] ss:$4 sm:$0xff] }
 0x19e   : > { %2422 = vrot.lane.b32.xlu0 %v2405_v57, %s5139_s20  ;;  %v2176_v21 = vld [vmem:[#allocation3 + $0x23] ss:$4 sm:$0x1]  ;;  %v2335_v37 = vld [vmem:[#allocation3 + $0x20] ss:$4 sm:$0x1] }
 0x19f   : > { %v2127_v39 = vld [vmem:[#allocation3 + $0x2] ss:$4 sm:$0xff]  ;;  %v2351_v44 = vld [vmem:[#allocation3 + $0x21] ss:$4 sm:$0x1] }
 0x1a0   : > { %1957 = vrot.lane.b32.xlu1 %v1952_v50, %s5143_s24  ;;  %v2143_v55 = vld [vmem:[#allocation3 + $0x3] ss:$4 sm:$0xff]  ;;  %v2510_v51 = vld [vmem:[#allocation3 + $0x22] ss:$4 sm:$0x1]  ;;  %v5596_v50 = vsub.s32 4, %v5217_v7 }
 0x1a1   : > { %v5145_v41 = vmov 1966171168   ;;  %v2159_v0 = vld [vmem:[#allocation3 + $0x2] ss:$4 sm:$0xff] }
 0x1a2   : > { %2740 = vrot.lane.b32.xlu0 %v2723_v62, %s5140_s21  ;;  %v1721_v57 = vunpack.c.l.s4 %v5145_v41  ;;  %v5599_v62 = vsub.s32 7, %v5217_v7  ;;  %v2334_v41 = vld [vmem:[#allocation3] ss:$4 sm:$0xff] }
 0x1a4   : > { %1974 = vrot.lane.b32.xlu1 %v1969_v56, %s5143_s24  ;;  %v5606_v56 = vsub.s32 6, %v5217_v7 }
 0x1a6   : > { %3090 = vrot.lane.b32.xlu0 %v3073_v1, %s5141_s22  ;;  %v1658_v1 = vld [vmem:[#allocation3 + $0x3] ss:$4 sm:$0xff] }
 0x1a8   : > { %2133 = vrot.lane.b32.xlu1 %v2128_v29, %s5143_s24  ;;  %v2526_v29 = vld [vmem:[#allocation3 + $0x23] ss:$4 sm:$0x1] }
 0x1aa   : > { %1774 = vrot.lane.b32.xlu0 %v1769_v54, %s5144_s25  ;;  %v1722_v54 = vunpack.c.0.s8 %v1721_v57  ;;  %v5628_v57 = vsub.s32 1, %v5217_v7 }
 0x1ac   : > { %2149 = vrot.lane.b32.xlu1 %v2144_v63, %s5143_s24  ;;  %v2175_v63 = vld [vmem:[#allocation3 + $0x3] ss:$4 sm:$0xff] }
 0x1ae   : > { %1793 = vrot.lane.b32.xlu0 %v1788_v59, %s5144_s25  ;;  %v1691_v59 = vrot.slane %v1658_v1, %v5599_v62 }
 0x1b0   : > { %2165 = vrot.lane.b32.xlu1 %v2160_v10, %s5144_s25  ;;  %v1679_v10 = vrot.slane %v1658_v1, %v5596_v50 }
 0x1b2   : > { %1955 = vrot.lane.b32.xlu0 %v1950_v22, %s5143_s24  ;;  %v1683_v22 = vrot.slane %v1658_v1, %v5603_v60 }
 0x1b4   : > { %2181 = vrot.lane.b32.xlu1 %v2176_v21, %s5144_s25  ;;  %v1687_v21 = vrot.slane %v1658_v1, %v5606_v56 }
 0x1b6   : > { %1972 = vrot.lane.b32.xlu0 %v1968_v27, %s5143_s24  ;;  %v2828_v27 = vld [vmem:[#allocation3 + $0x20] ss:$4 sm:$0x1] }
 0x1b8   : > { %2340 = vrot.lane.b32.xlu1 %v2335_v37, %s5143_s24  ;;  %v1704_v37 = vsel %vm5341_vm13, %v1679_v10, 0.0 }
 0x1ba   : > { %2131 = vrot.lane.b32.xlu0 %v2127_v39, %s5143_s24  ;;  %v1707_v39 = vsel %vm5383_vm1, %v1691_v59, 0.0  ;;  %v2844_v59 = vld [vmem:[#allocation3 + $0x21] ss:$4 sm:$0x1] }
 0x1bc   : > { %2356 = vrot.lane.b32.xlu1 %v2351_v44, %s5143_s24  ;;  %v1705_v44 = vsel %vm5358_vm14, %v1683_v22, 0.0  ;;  %v2350_v22 = vld [vmem:[#allocation3 + $0x1] ss:$4 sm:$0xff] }
 0x1be   : > { %2147 = vrot.lane.b32.xlu0 %v2143_v55, %s5143_s24  ;;  %v1706_v55 = vsel %vm5377_vm15, %v1687_v21, 0.0  ;;  %v1667_v21 = vrot.slane %v1658_v1, %v5628_v57 }
 0x1bf   : > { %v1719_v10 = vcombine.low %v1706_v55, %v1707_v39 }
 0x1c0   : > { %2515 = vrot.lane.b32.xlu1 %v2510_v51, %s5143_s24  ;;  %v5624_v51 = vsub.s32 %v1722_v54, %v5217_v7  ;;  %v1663_v54 = vrot.slane %v1658_v1, %v5568_v30 }
 0x1c2   : > { %2163 = vrot.lane.b32.xlu0 %v2159_v0, %s5144_s25  ;;  %v5631_v0 = vsub.s32 3, %v5217_v7  ;;  %v1747_v39 = vrot.slane %v1719_v10, %v5624_v51 }
 0x1c4   : > { %2531 = vrot.lane.b32.xlu1 %v2526_v29, %s5143_s24  ;;  %v5634_v29 = vsub.s32 2, %v5217_v7  ;;  %v3003_v7 = vld [vmem:[#allocation3 + $0x22] ss:$4 sm:$0x1] }
 0x1c6   : > { %2179 = vrot.lane.b32.xlu0 %v2175_v63, %s5144_s25  ;;  %v1718_v63 = vcombine.low %v1704_v37, %v1705_v44  ;;  %v1700_v37 = vsel %vm5309_vm9, %v1663_v54, 0.0  ;;  %v1701_v44 = vsel %vm5316_vm10, %v1667_v21, 0.0  ;;  %v3019_v54 = vld [vmem:[#allocation3 + $0x23] ss:$4 sm:$0x1] }
 0x1c8   : > { %2833 = vrot.lane.b32.xlu1 %v2828_v27, %s5143_s24  ;;  %v1671_v27 = vrot.slane %v1658_v1, %v5634_v29  ;;  %v1740_v45 = vrot.slane %v1718_v63, %v5624_v51  ;;  %v1716_v63 = vcombine.low %v1700_v37, %v1701_v44  ;;  %v2827_v44 = vld [vmem:[#allocation3] ss:$4 sm:$0xff] }
 0x1ca   : > { %2338 = vrot.lane.b32.xlu0 %v2334_v41, %s5143_s24  ;;  %v1675_v41 = vrot.slane %v1658_v1, %v5631_v0  ;;  %v1702_v55 = vsel %vm5322_vm11, %v1671_v27, 0.0  ;;  %v2509_v1 = vld [vmem:[#allocation3 + $0x2] ss:$4 sm:$0xff]  ;;  %v1749_v4 = vcombine.low %v1740_v45, %v1747_v39  ;;  %v1726_v10 = vrot.slane %v1716_v63, %v5624_v51  ;;  %v2525_v45 = vld [vmem:[#allocation3 + $0x3] ss:$4 sm:$0xff] }
 0x1cb   : > { %v3402_v63 = vld [vmem:[#allocation3 + $0x23] ss:$4 sm:$0x1] }
 0x1cc   : > { %2849 = vrot.lane.b32.xlu1 %v2844_v59, %s5143_s24  ;;  %v1703_v59 = vsel %vm5328_vm12, %v1675_v41, 0.0  ;;  %v1763_v40 = vrot.slane %v1749_v4, %v5624_v51  ;;  %v3178_v41 = vld [vmem:[#allocation3 + $0x20] ss:$4 sm:$0x1] }
 0x1cd   : > { %v1717_v18 = vcombine.low %v1702_v55, %v1703_v59  ;;  %v3211_v4 = vld [vmem:[#allocation3 + $0x20] ss:$4 sm:$0x1]  ;;  %v2843_v55 = vld [vmem:[#allocation3 + $0x1] ss:$4 sm:$0xff] }
 0x1ce   : > { %2354 = vrot.lane.b32.xlu0 %v2350_v22, %s5143_s24  ;;  %v3418_v22 = vld [vmem:[#allocation3 + $0x22] ss:$4 sm:$0x1]  ;;  %v3227_v59 = vld [vmem:[#allocation3 + $0x21] ss:$4 sm:$0x1] }
 0x1cf   : > { %v3456_v21 = vrot.slane %v3418_v22, %v5568_v30  ;;  %v3018_v22 = vld [vmem:[#allocation3 + $0x3] ss:$4 sm:$0xff] }
 0x1d0   : > { %3008 = vrot.lane.b32.xlu1 %v3003_v7, %s5143_s24  ;;  %v1733_v7 = vrot.slane %v1717_v18, %v5624_v51  ;;  %v3195_v18 = vld [vmem:[#allocation3 + $0x21] ss:$4 sm:$0x1] }
 0x1d2   : > { %2513 = vrot.lane.b32.xlu0 %v2509_v1, %s5143_s24  ;;  %v1748_v27 = vcombine.low %v1726_v10, %v1733_v7  ;;  %v3386_v1 = vld [vmem:[#allocation3 + $0x22] ss:$4 sm:$0x1]  ;;  %v3561_v10 = vld [vmem:[#allocation3 + $0x20] ss:$4 sm:$0x1] }
 0x1d3   : > { %v3194_v7 = vld [vmem:[#allocation3 + $0x1] ss:$4 sm:$0xff] }
 0x1d4   : > { %3024 = vrot.lane.b32.xlu1 %v3019_v54, %s5143_s24  ;;  %v1756_v37 = vrot.slane %v1748_v27, %v5624_v51  ;;  %v3177_v54 = vld [vmem:[#allocation3] ss:$4 sm:$0xff]  ;;  %v1808_v27 = vld [vmem:[#allocation3 + $0x21] ss:$4 sm:$0x1] }
 0x1d6   : > { %3473 = vrot.lane.b32.xlu0 %v3456_v21, %s5139_s20  ;;  %v1764_v39 = vcombine.low %v1756_v37, %v1763_v40  ;;  %v3002_v40 = vld [vmem:[#allocation3 + $0x2] ss:$4 sm:$0xff]  ;;  %v3577_v21 = vld [vmem:[#allocation3 + $0x21] ss:$4 sm:$0x1]  ;;  %v1846_v37 = vrot.slane %v1808_v27, %v5568_v30 }
 0x1d8   : > { %3183 = vrot.lane.b32.xlu1 %v3178_v41, %s5146_s26  ;;  %1766 = vst [vmem:[#allocation5] ss:$8 sm:$0xf] %v1764_v39  ;;  %1767 = vst [vmem:[#allocation5] ss:$8 sm:$0xf0] %v1764_v39 }
 0x1d9   : > { %v3210_v41 = vld [vmem:[#allocation3] ss:$4 sm:$0xff]  ;;  %v3226_v39 = vld [vmem:[#allocation3 + $0x1] ss:$4 sm:$0xff] }
 0x1da   : > { %2529 = vrot.lane.b32.xlu0 %v2525_v45, %s5143_s24  ;;  %v2192_v45 = vld [vmem:[#allocation3 + $0x22] ss:$4 sm:$0x1] }
 0x1dc   : > { %3200 = vrot.lane.b32.xlu1 %v3195_v18, %s5146_s26  ;;  %v2230_v18 = vrot.slane %v2192_v45, %v5568_v30 }
 0x1de   : > { %2831 = vrot.lane.b32.xlu0 %v2827_v44, %s5143_s24  ;;  %v2542_v44 = vld [vmem:[#allocation3 + $0x22] ss:$4 sm:$0x1] }
 0x1e0   : > { %3216 = vrot.lane.b32.xlu1 %v3211_v4, %s5143_s24  ;;  %v3385_v4 = vld [vmem:[#allocation3 + $0x2] ss:$4 sm:$0xff] }
 0x1e2   : > { %2847 = vrot.lane.b32.xlu0 %v2843_v55, %s5143_s24  ;;  %v2580_v55 = vrot.slane %v2542_v44, %v5568_v30 }
 0x1e4   : > { %3232 = vrot.lane.b32.xlu1 %v3227_v59, %s5143_s24  ;;  %v2860_v59 = vld [vmem:[#allocation3 + $0x23] ss:$4 sm:$0x1] }
 0x1e6   : > { %3006 = vrot.lane.b32.xlu0 %v3002_v40, %s5143_s24  ;;  %v3401_v40 = vld [vmem:[#allocation3 + $0x3] ss:$4 sm:$0xff] }
 0x1e8   : > { %3391 = vrot.lane.b32.xlu1 %v3386_v1, %s5143_s24  ;;  %v2898_v1 = vrot.slane %v2860_v59, %v5568_v30 }
 0x1ea   : > { %3022 = vrot.lane.b32.xlu0 %v3018_v22, %s5143_s24  ;;  %v3243_v22 = vld [vmem:[#allocation3 + $0x20] ss:$4 sm:$0x1] }
 0x1ec   : > { %3407 = vrot.lane.b32.xlu1 %v3402_v63, %s5143_s24  ;;  %v3560_v63 = vld [vmem:[#allocation3] ss:$4 sm:$0xff] }
 0x1ee   : > { %3181 = vrot.lane.b32.xlu0 %v3177_v54, %s5146_s26  ;;  %v3281_v54 = vrot.slane %v3243_v22, %v5568_v30 }
 0x1f0   : > { %3566 = vrot.lane.b32.xlu1 %v3561_v10, %s5146_s26  ;;  %v3593_v10 = vld [vmem:[#allocation3 + $0x20] ss:$4 sm:$0x1] }
 0x1f2   : > { %3198 = vrot.lane.b32.xlu0 %v3194_v7, %s5146_s26  ;;  %v3576_v7 = vld [vmem:[#allocation3 + $0x1] ss:$4 sm:$0xff] }
 0x1f4   : > { %3582 = vrot.lane.b32.xlu1 %v3577_v21, %s5146_s26  ;;  %v1806_v21 = vld [vmem:[#allocation3 + $0x1] ss:$4 sm:$0xff] }
 0x1f5   : > { %v1818_v45 = vrot.slane %v1806_v21, %v5628_v57  ;;  %v1822_v59 = vrot.slane %v1806_v21, %v5634_v29 }
 0x1f6   : > { %3214 = vrot.lane.b32.xlu0 %v3210_v41, %s5143_s24  ;;  %v3631_v41 = vrot.slane %v3593_v10, %v5568_v30  ;;  %v1842_v10 = vrot.slane %v1806_v21, %v5599_v62 }
 0x1f8   : > { %1863 = vrot.lane.b32.xlu1 %v1846_v37, %s5140_s21 }
 0x1fa   : > { %3230 = vrot.lane.b32.xlu0 %v3226_v39, %s5143_s24 }
 0x1fc   : > { %2247 = vrot.lane.b32.xlu1 %v2230_v18, %s5142_s23  ;;  %v1814_v18 = vrot.slane %v1806_v21, %v5568_v30 }
 0x1fe   : > { %3389 = vrot.lane.b32.xlu0 %v3385_v4, %s5143_s24  ;;  %v1826_v4 = vrot.slane %v1806_v21, %v5631_v0 }
 0x200   : > { %2597 = vrot.lane.b32.xlu1 %v2580_v55, %s5139_s20 }
 0x202   : > { %3405 = vrot.lane.b32.xlu0 %v3401_v40, %s5143_s24 }
 0x204   : > { %2915 = vrot.lane.b32.xlu1 %v2898_v1, %s5140_s21  ;;  %v1834_v1 = vrot.slane %v1806_v21, %v5603_v60 }
 0x206   : > { %3564 = vrot.lane.b32.xlu0 %v3560_v63, %s5146_s26  ;;  %v1830_v63 = vrot.slane %v1806_v21, %v5596_v50 }
 0x208   : > { %3298 = vrot.lane.b32.xlu1 %v3281_v54, %s5139_s20 }
 0x20a   : > { %3580 = vrot.lane.b32.xlu0 %v3576_v7, %s5146_s26  ;;  %v1777_v27 = vpop.permute.xlu1 %1776  ;;  %v1984_v7 = vld [vmem:[#allocation3 + $0x3] ss:$4 sm:$0xff] }
 0x20b   : > { %v2003_v9 = vrot.slane %v1984_v7, %v5631_v0 }
 0x20c   : > { %v5693_v37 = vpop.permute.xlu0 %2040  ;;  %3648 = vrot.lane.b32.xlu1 %v3631_v41, %s5147_s27 }
 0x20e   : > { %1849 = vrot.lane.b32.xlu0 %v1818_v45, %s5140_s21  ;;  %v1796_v39 = vpop.permute.xlu1 %1795  ;;  %v1838_v45 = vrot.slane %v1806_v21, %v5606_v56 }
 0x20f   : > { %v1798_v52 = vrot.slane %v1796_v39, 1 }
 0x210   : > { %v5699_v44 = vpop.permute.xlu0 %2422  ;;  %1847 = vrot.lane.b32.xlu1 %v1814_v18, %s5140_s21 }
 0x212   : > { %1853 = vrot.lane.b32.xlu0 %v1826_v4, %s5140_s21  ;;  %v1958_v55 = vpop.permute.xlu1 %1957  ;;  %v1991_v4 = vrot.slane %v1984_v7, %v5568_v30 }
 0x214   : > { %v5705_v40 = vpop.permute.xlu0 %2740  ;;  %1851 = vrot.lane.b32.xlu1 %v1822_v59, %s5140_s21  ;;  %v1779_v59 = vrot.slane %v1777_v27, 1 }
 0x216   : > { %1857 = vrot.lane.b32.xlu0 %v1834_v1, %s5140_s21  ;;  %v1975_v22 = vpop.permute.xlu1 %1974 }
 0x218   : > { %v5711_v54 = vpop.permute.xlu0 %3090  ;;  %1855 = vrot.lane.b32.xlu1 %v1830_v63, %s5140_s21  ;;  %v1995_v63 = vrot.slane %v1984_v7, %v5628_v57 }
 0x21a   : > { %1861 = vrot.lane.b32.xlu0 %v1842_v10, %s5140_s21  ;;  %v2134_v41 = vpop.permute.xlu1 %2133 }
 0x21c   : > { %1859 = vrot.lane.b32.xlu1 %v1838_v45, %s5140_s21  ;;  %v1775_v18 = vpop.permute.xlu0 %1774  ;;  %v1999_v45 = vrot.slane %v1984_v7, %v5634_v29 }
 0x21d   : > { %v1778_v1 = vrot.slane %v1775_v18, 1 }
 0x21e   : > { %2024 = vrot.lane.b32.xlu0 %v1991_v4, %s5140_s21  ;;  %v5720_v48 = vpop.permute.xlu1 %2149 }
 0x21f   : > { %v1781_v24 = vsel %vm1780_vm7, %v1778_v1, %v1779_v59  ;;  %v1960_v1 = vrot.slane %v1958_v55, 1 }
 0x220   : > { %v1783_v10 = vsel %vm6807_vm3, %v1775_v18, %v1781_v24  ;;  %2026 = vrot.lane.b32.xlu1 %v1995_v63, %s5140_s21  ;;  %v1794_v21 = vpop.permute.xlu0 %1793  ;;  %v2007_v18 = vrot.slane %v1984_v7, %v5596_v50 }
 0x221   : > { %1786 = vst [vmem:[#allocation5 + $0x1] ss:$8 sm:$0xf] %v1783_v10  ;;  %1787 = vst [vmem:[#allocation5 + $0x1] ss:$8 sm:$0xf0] %v1783_v10  ;;  %v2011_v10 = vrot.slane %v1984_v7, %v5603_v60 }
 0x222   : > { %v1797_v27 = vrot.slane %v1794_v21, 1  ;;  %2028 = vrot.lane.b32.xlu0 %v1999_v45, %s5140_s21  ;;  %v5728_v4 = vpop.permute.xlu1 %2165 }
 0x224   : > { %v1799_v32 = vsel %vm1780_vm7, %v1797_v27, %v1798_v52  ;;  %2030 = vrot.lane.b32.xlu1 %v2003_v9, %s5140_s21  ;;  %v1956_v24 = vpop.permute.xlu0 %1955  ;;  %v2191_v27 = vld [vmem:[#allocation3 + $0x2] ss:$4 sm:$0xff] }
 0x225   : > { %v1800_v59 = vsel %vm6808_vm4, %v1794_v21, %v1799_v32  ;;  %v1959_v39 = vrot.slane %v1956_v24, 1  ;;  %v2015_v32 = vrot.slane %v1984_v7, %v5606_v56  ;;  %v1977_v21 = vrot.slane %v1975_v22, 1  ;;  %vm6813_vm4 = vmmov %vm6807_vm3 }
 0x226   : > { %1803 = vst [vmem:[#allocation5 + $0x2] ss:$8 sm:$0xf] %v1800_v59  ;;  %1804 = vst [vmem:[#allocation5 + $0x2] ss:$8 sm:$0xf0] %v1800_v59  ;;  %2032 = vrot.lane.b32.xlu0 %v2007_v18, %s5140_s21  ;;  %v5736_v63 = vpop.permute.xlu1 %2181  ;;  %v2019_v18 = vrot.slane %v1984_v7, %v5599_v62 }
 0x227   : > { %v1961_v45 = vsel %vm1780_vm7, %v1959_v39, %v1960_v1  ;;  %v2136_v22 = vrot.slane %v2134_v41, 1  ;;  %v2152_v41 = vrot.slane %v5720_v48, 1  ;;  %v2168_v48 = vrot.slane %v5728_v4, 1 }
 0x228   : > { %v1963_v52 = vsel %vm6809_vm5, %v1956_v24, %v1961_v45  ;;  %2034 = vrot.lane.b32.xlu1 %v2011_v10, %s5140_s21  ;;  %v1973_v9 = vpop.permute.xlu0 %1972  ;;  %v2202_v10 = vrot.slane %v2191_v27, %v5628_v57  ;;  %v2184_v4 = vrot.slane %v5736_v63, 1  ;;  %vm6814_vm5 = vmmov %vm6811_vm2 }
 0x229   : > { %1966 = vst [vmem:[#allocation5 + $0x4] ss:$8 sm:$0xf] %v1963_v52  ;;  %1967 = vst [vmem:[#allocation5 + $0x4] ss:$8 sm:$0xf0] %v1963_v52 }
 0x22a   : > { %v1976_v55 = vrot.slane %v1973_v9, 1  ;;  %2036 = vrot.lane.b32.xlu0 %v2015_v32, %s5140_s21  ;;  %v5744_v59 = vpop.permute.xlu1 %2340  ;;  %v2198_v32 = vrot.slane %v2191_v27, %v5568_v30 }
 0x22b   : > { %v2343_v63 = vrot.slane %v5744_v59, 1 }
 0x22c   : > { %v1978_v1 = vsel %vm1780_vm7, %v1976_v55, %v1977_v21  ;;  %2038 = vrot.lane.b32.xlu1 %v2019_v18, %s5140_s21  ;;  %v2132_v39 = vpop.permute.xlu0 %2131  ;;  %v2210_v55 = vrot.slane %v2191_v27, %v5631_v0 }
 0x22d   : > { %v1979_v24 = vsel %vm6810_vm6, %v1973_v9, %v1978_v1  ;;  %v2135_v45 = vrot.slane %v2132_v39, 1  ;;  %vm6815_vm6 = vmmov %vm6811_vm2 }
 0x22e   : > { %1982 = vst [vmem:[#allocation5 + $0x5] ss:$8 sm:$0xf] %v1979_v24  ;;  %1983 = vst [vmem:[#allocation5 + $0x5] ss:$8 sm:$0xf0] %v1979_v24  ;;  %2233 = vrot.lane.b32.xlu0 %v2202_v10, %s5142_s23  ;;  %v5752_v52 = vpop.permute.xlu1 %2356  ;;  %v2206_v24 = vrot.slane %v2191_v27, %v5634_v29 }
 0x22f   : > { %v2137_v7 = vsel %vm1780_vm7, %v2135_v45, %v2136_v22  ;;  %v2218_v45 = vrot.slane %v2191_v27, %v5603_v60  ;;  %v2359_v59 = vrot.slane %v5752_v52, 1 }
 0x230   : > { %v2138_v21 = vsel %vm6811_vm2, %v2132_v39, %v2137_v7  ;;  %2231 = vrot.lane.b32.xlu1 %v2198_v32, %s5142_s23  ;;  %v2148_v9 = vpop.permute.xlu0 %2147 }
 0x231   : > { %2141 = vst [vmem:[#allocation5 + $0x7] ss:$8 sm:$0xf] %v2138_v21  ;;  %2142 = vst [vmem:[#allocation5 + $0x7] ss:$8 sm:$0xf0] %v2138_v21  ;;  %v2214_v21 = vrot.slane %v2191_v27, %v5596_v50 }
 0x232   : > { %v2151_v18 = vrot.slane %v2148_v9, 1  ;;  %2237 = vrot.lane.b32.xlu0 %v2210_v55, %s5142_s23  ;;  %v5761_v1 = vpop.permute.xlu1 %2515 }
 0x233   : > { %v2518_v52 = vrot.slane %v5761_v1, 1  ;;  %v2541_v1 = vld [vmem:[#allocation3 + $0x2] ss:$4 sm:$0xff] }
 0x234   : > { %v2153_v10 = vsel %vm1780_vm7, %v2151_v18, %v2152_v41  ;;  %2235 = vrot.lane.b32.xlu1 %v2206_v24, %s5142_s23  ;;  %v2164_v22 = vpop.permute.xlu0 %2163  ;;  %v2226_v18 = vrot.slane %v2191_v27, %v5599_v62  ;;  %v2556_v17 = vrot.slane %v2541_v1, %v5634_v29  ;;  %v2572_v34 = vrot.slane %v2541_v1, %v5606_v56 }
 0x235   : > { %v2154_v39 = vsel %vm6812_vm8, %v2148_v9, %v2153_v10  ;;  %v2167_v32 = vrot.slane %v2164_v22, 1  ;;  %v2366_v10 = vld [vmem:[#allocation3] ss:$4 sm:$0xff]  ;;  %vm6816_vm8 = vmmov %vm6811_vm2 }
 0x236   : > { %2157 = vst [vmem:[#allocation5 + $0x40] ss:$8 sm:$0xf] %v2154_v39  ;;  %2158 = vst [vmem:[#allocation5 + $0x40] ss:$8 sm:$0xf0] %v2154_v39  ;;  %2241 = vrot.lane.b32.xlu0 %v2218_v45, %s5142_s23  ;;  %v5770_v7 = vpop.permute.xlu1 %2531  ;;  %v2222_v45 = vrot.slane %v2191_v27, %v5606_v56  ;;  %v2377_v27 = vrot.slane %v2366_v10, %v5628_v57 }
 0x237   : > { %v2169_v55 = vsel %vm1780_vm7, %v2167_v32, %v2168_v48 }
 0x238   : > { %v2170_v9 = vsel %vm6807_vm3, %v2164_v22, %v2169_v55  ;;  %2239 = vrot.lane.b32.xlu1 %v2214_v21, %s5142_s23  ;;  %v2180_v41 = vpop.permute.xlu0 %2179  ;;  %v2373_v21 = vrot.slane %v2366_v10, %v5568_v30  ;;  %vm6817_vm3 = vmmov %vm6811_vm2 }
 0x239   : > { %2173 = vst [vmem:[#allocation5 + $0x41] ss:$8 sm:$0xf] %v2170_v9  ;;  %2174 = vst [vmem:[#allocation5 + $0x41] ss:$8 sm:$0xf0] %v2170_v9 }
 0x23a   : > { %v2183_v24 = vrot.slane %v2180_v41, 1  ;;  %2245 = vrot.lane.b32.xlu0 %v2226_v18, %s5142_s23  ;;  %v5779_v39 = vpop.permute.xlu1 %2833 }
 0x23c   : > { %v2185_v48 = vsel %vm1780_vm7, %v2183_v24, %v2184_v4  ;;  %2243 = vrot.lane.b32.xlu1 %v2222_v45, %s5142_s23  ;;  %v2339_v32 = vpop.permute.xlu0 %2338  ;;  %v2381_v24 = vrot.slane %v2366_v10, %v5634_v29 }
 0x23d   : > { %v2186_v22 = vsel %vm6813_vm4, %v2180_v41, %v2185_v48  ;;  %v2342_v55 = vrot.slane %v2339_v32, 1  ;;  %vm6818_vm4 = vmmov %vm6811_vm2 }
 0x23e   : > { %2189 = vst [vmem:[#allocation5 + $0x42] ss:$8 sm:$0xf] %v2186_v22  ;;  %2190 = vst [vmem:[#allocation5 + $0x42] ss:$8 sm:$0xf0] %v2186_v22  ;;  %2406 = vrot.lane.b32.xlu0 %v2373_v21, %s5139_s20  ;;  %v5788_v9 = vpop.permute.xlu1 %2849  ;;  %v2385_v22 = vrot.slane %v2366_v10, %v5631_v0 }
 0x23f   : > { %v2344_v18 = vsel %vm1780_vm7, %v2342_v55, %v2343_v63  ;;  %v2389_v55 = vrot.slane %v2366_v10, %v5596_v50 }
 0x240   : > { %v2345_v41 = vsel %vm6814_vm5, %v2339_v32, %v2344_v18  ;;  %2408 = vrot.lane.b32.xlu1 %v2377_v27, %s5139_s20  ;;  %v2355_v4 = vpop.permute.xlu0 %2354  ;;  %vm6819_vm5 = vmmov %vm6811_vm2 }
 0x241   : > { %2348 = vst [vmem:[#allocation5 + $0x44] ss:$8 sm:$0xf] %v2345_v41  ;;  %2349 = vst [vmem:[#allocation5 + $0x44] ss:$8 sm:$0xf0] %v2345_v41  ;;  %v2393_v41 = vrot.slane %v2366_v10, %v5603_v60 }
 0x242   : > { %v2358_v45 = vrot.slane %v2355_v4, 1  ;;  %2410 = vrot.lane.b32.xlu0 %v2381_v24, %s5139_s20  ;;  %v5797_v48 = vpop.permute.xlu1 %3008 }
 0x244   : > { %v2360_v21 = vsel %vm1780_vm7, %v2358_v45, %v2359_v59  ;;  %2412 = vrot.lane.b32.xlu1 %v2385_v22, %s5139_s20  ;;  %v2514_v63 = vpop.permute.xlu0 %2513  ;;  %v2397_v45 = vrot.slane %v2366_v10, %v5606_v56 }
 0x245   : > { %v2361_v32 = vsel %vm6815_vm6, %v2355_v4, %v2360_v21  ;;  %v2517_v27 = vrot.slane %v2514_v63, 1  ;;  %v2401_v21 = vrot.slane %v2366_v10, %v5599_v62  ;;  %vm6820_vm6 = vmmov %vm6811_vm2 }
 0x246   : > { %2364 = vst [vmem:[#allocation5 + $0x45] ss:$8 sm:$0xf] %v2361_v32  ;;  %2365 = vst [vmem:[#allocation5 + $0x45] ss:$8 sm:$0xf0] %v2361_v32  ;;  %2414 = vrot.lane.b32.xlu0 %v2389_v55, %s5139_s20  ;;  %v5806_v18 = vpop.permute.xlu1 %3024 }
 0x247   : > { %v2519_v24 = vsel %vm1780_vm7, %v2517_v27, %v2518_v52  ;;  %v2534_v55 = vrot.slane %v5770_v7, 1 }
 0x248   : > { %v2520_v4 = vsel %vm6811_vm2, %v2514_v63, %v2519_v24  ;;  %2416 = vrot.lane.b32.xlu1 %v2393_v41, %s5139_s20  ;;  %v5812_v59 = vpop.permute.xlu0 %3473  ;;  %v2552_v63 = vrot.slane %v2541_v1, %v5628_v57  ;;  %v2548_v41 = vrot.slane %v2541_v1, %v5568_v30  ;;  %vm6748_vm2 = vcmask 515072  }
 0x249   : > { %2523 = vst [vmem:[#allocation5 + $0x47] ss:$8 sm:$0xf] %v2520_v4  ;;  %2524 = vst [vmem:[#allocation5 + $0x47] ss:$8 sm:$0xf0] %v2520_v4 }
 0x24a   : > { %2418 = vrot.lane.b32.xlu0 %v2397_v45, %s5139_s20  ;;  %v5816_v22 = vpop.permute.xlu1 %3183  ;;  %v2560_v45 = vrot.slane %v2541_v1, %v5631_v0 }
 0x24c   : > { %2420 = vrot.lane.b32.xlu1 %v2401_v21, %s5139_s20  ;;  %v2530_v32 = vpop.permute.xlu0 %2529  ;;  %v2836_v21 = vrot.slane %v5779_v39, 1  ;;  %v2852_v39 = vrot.slane %v5788_v9, 1  ;;  %v3011_v9 = vrot.slane %v5797_v48, 1  ;;  %v3027_v48 = vrot.slane %v5806_v18, 1 }
 0x24d   : > { %v2533_v52 = vrot.slane %v2530_v32, 1  ;;  %v3186_v18 = vrot.slane %v5816_v22, 1 }
 0x24e   : > { %2583 = vrot.lane.b32.xlu0 %v2552_v63, %s5139_s20  ;;  %v5823_v27 = vpop.permute.xlu1 %3200 }
 0x24f   : > { %v2535_v24 = vsel %vm1780_vm7, %v2533_v52, %v2534_v55  ;;  %v3203_v22 = vrot.slane %v5823_v27, 1 }
 0x250   : > { %v2536_v4 = vsel %vm6816_vm8, %v2530_v32, %v2535_v24  ;;  %2581 = vrot.lane.b32.xlu1 %v2548_v41, %s5139_s20  ;;  %v2832_v10 = vpop.permute.xlu0 %2831  ;;  %v2568_v41 = vrot.slane %v2541_v1, %v5603_v60  ;;  %vm6821_vm8 = vmmov %vm6817_vm3 }
 0x251   : > { %2539 = vst [vmem:[#allocation5 + $0x80] ss:$8 sm:$0xf] %v2536_v4  ;;  %2540 = vst [vmem:[#allocation5 + $0x80] ss:$8 sm:$0xf0] %v2536_v4 }
 0x252   : > { %v2835_v7 = vrot.slane %v2832_v10, 1  ;;  %2587 = vrot.lane.b32.xlu0 %v2560_v45, %s5139_s20  ;;  %v5832_v63 = vpop.permute.xlu1 %3216  ;;  %v2564_v45 = vrot.slane %v2541_v1, %v5596_v50 }
 0x253   : > { %v3219_v27 = vrot.slane %v5832_v63, 1 }
 0x254   : > { %v2837_v55 = vsel %vm1780_vm7, %v2835_v7, %v2836_v21  ;;  %2585 = vrot.lane.b32.xlu1 %v2556_v17, %s5139_s20  ;;  %v2848_v52 = vpop.permute.xlu0 %2847  ;;  %v2576_v7 = vrot.slane %v2541_v1, %v5599_v62 }
 0x255   : > { %v2838_v32 = vsel %vm6817_vm3, %v2832_v10, %v2837_v55  ;;  %v2851_v24 = vrot.slane %v2848_v52, 1 }
 0x256   : > { %2841 = vst [vmem:[#allocation5 + $0x83] ss:$8 sm:$0xf] %v2838_v32  ;;  %2842 = vst [vmem:[#allocation5 + $0x83] ss:$8 sm:$0xf0] %v2838_v32  ;;  %2591 = vrot.lane.b32.xlu0 %v2568_v41, %s5139_s20  ;;  %v5841_v4 = vpop.permute.xlu1 %3232 }
 0x257   : > { %v2853_v21 = vsel %vm1780_vm7, %v2851_v24, %v2852_v39  ;;  %v2684_v32 = vld [vmem:[#allocation3 + $0x1] ss:$4 sm:$0xff]  ;;  %v3235_v63 = vrot.slane %v5841_v4, 1 }
 0x258   : > { %v2854_v10 = vsel %vm6818_vm4, %v2848_v52, %v2853_v21  ;;  %2589 = vrot.lane.b32.xlu1 %v2564_v45, %s5139_s20  ;;  %v3007_v17 = vpop.permute.xlu0 %3006  ;;  %v2691_v45 = vrot.slane %v2684_v32, %v5568_v30  ;;  %v2695_v1 = vrot.slane %v2684_v32, %v5628_v57  ;;  %vm6822_vm4 = vmmov %vm6817_vm3 }
 0x259   : > { %2857 = vst [vmem:[#allocation5 + $0x84] ss:$8 sm:$0xf] %v2854_v10  ;;  %2858 = vst [vmem:[#allocation5 + $0x84] ss:$8 sm:$0xf0] %v2854_v10 }
 0x25a   : > { %v3010_v55 = vrot.slane %v3007_v17, 1  ;;  %2595 = vrot.lane.b32.xlu0 %v2576_v7, %s5139_s20  ;;  %v5850_v41 = vpop.permute.xlu1 %3391 }
 0x25b   : > { %v3394_v4 = vrot.slane %v5850_v41, 1 }
 0x25c   : > { %v3012_v39 = vsel %vm1780_vm7, %v3010_v55, %v3011_v9  ;;  %v3023_v24 = vpop.permute.xlu0 %3022  ;;  %2593 = vrot.lane.b32.xlu1 %v2572_v34, %s5139_s20  ;;  %v2699_v34 = vrot.slane %v2684_v32, %v5634_v29 }
 0x25d   : > { %v3013_v52 = vsel %vm6819_vm5, %v3007_v17, %v3012_v39  ;;  %v3026_v21 = vrot.slane %v3023_v24, 1  ;;  %vm6823_vm5 = vmmov %vm6817_vm3 }
 0x25e   : > { %3016 = vst [vmem:[#allocation5 + $0x86] ss:$8 sm:$0xf] %v3013_v52  ;;  %3017 = vst [vmem:[#allocation5 + $0x86] ss:$8 sm:$0xf0] %v3013_v52  ;;  %2724 = vrot.lane.b32.xlu0 %v2691_v45, %s5140_s21  ;;  %v5859_v10 = vpop.permute.xlu1 %3407  ;;  %v2703_v52 = vrot.slane %v2684_v32, %v5631_v0 }
 0x25f   : > { %v3028_v7 = vsel %vm1780_vm7, %v3026_v21, %v3027_v48  ;;  %v2707_v21 = vrot.slane %v2684_v32, %v5596_v50  ;;  %v3410_v41 = vrot.slane %v5859_v10, 1 }
 0x260   : > { %v3029_v17 = vsel %vm6820_vm6, %v3023_v24, %v3028_v7  ;;  %v3182_v9 = vpop.permute.xlu0 %3181  ;;  %2726 = vrot.lane.b32.xlu1 %v2695_v1, %s5140_s21 }
 0x261   : > { %3032 = vst [vmem:[#allocation5 + $0x87] ss:$8 sm:$0xf] %v3029_v17  ;;  %3033 = vst [vmem:[#allocation5 + $0x87] ss:$8 sm:$0xf0] %v3029_v17  ;;  %v2711_v17 = vrot.slane %v2684_v32, %v5603_v60 }
 0x262   : > { %v3185_v55 = vrot.slane %v3182_v9, 1  ;;  %2728 = vrot.lane.b32.xlu0 %v2699_v34, %s5140_s21  ;;  %v5868_v39 = vpop.permute.xlu1 %3566 }
 0x263   : > { %v3569_v10 = vrot.slane %v5868_v39, 1 }
 0x264   : > { %v3187_v45 = vsel %vm1780_vm7, %v3185_v55, %v3186_v18  ;;  %v3199_v48 = vpop.permute.xlu0 %3198  ;;  %2730 = vrot.lane.b32.xlu1 %v2703_v52, %s5140_s21  ;;  %v2715_v55 = vrot.slane %v2684_v32, %v5606_v56 }
 0x265   : > { %v3189_v24 = vsel %vm6748_vm2, %v3182_v9, %v3187_v45  ;;  %v3202_v1 = vrot.slane %v3199_v48, 1  ;;  %v2859_v45 = vld [vmem:[#allocation3 + $0x3] ss:$4 sm:$0xff] }
 0x266   : > { %3192 = vst [vmem:[#allocation5 + $0xc1] ss:$8 sm:$0xf] %v3189_v24  ;;  %3193 = vst [vmem:[#allocation5 + $0xc1] ss:$8 sm:$0xf0] %v3189_v24  ;;  %2732 = vrot.lane.b32.xlu0 %v2707_v21, %s5140_s21  ;;  %v5877_v7 = vpop.permute.xlu1 %3582  ;;  %v2719_v21 = vrot.slane %v2684_v32, %v5599_v62  ;;  %v2866_v32 = vrot.slane %v2859_v45, %v5568_v30 }
 0x267   : > { %v3204_v34 = vsel %vm1780_vm7, %v3202_v1, %v3203_v22  ;;  %v3585_v39 = vrot.slane %v5877_v7, 1 }
 0x268   : > { %v3205_v9 = vsel %vm6748_vm2, %v3199_v48, %v3204_v34  ;;  %v3215_v18 = vpop.permute.xlu0 %3214  ;;  %2734 = vrot.lane.b32.xlu1 %v2711_v17, %s5140_s21  ;;  %v2870_v17 = vrot.slane %v2859_v45, %v5628_v57 }
 0x269   : > { %3208 = vst [vmem:[#allocation5 + $0xc2] ss:$8 sm:$0xf] %v3205_v9  ;;  %3209 = vst [vmem:[#allocation5 + $0xc2] ss:$8 sm:$0xf0] %v3205_v9 }
 0x26a   : > { %v3218_v52 = vrot.slane %v3215_v18, 1  ;;  %2736 = vrot.lane.b32.xlu0 %v2715_v55, %s5140_s21  ;;  %v5886_v24 = vpop.permute.xlu1 %1863 }
 0x26c   : > { %v3220_v22 = vsel %vm1780_vm7, %v3218_v52, %v3219_v27  ;;  %v3231_v1 = vpop.permute.xlu0 %3230  ;;  %2738 = vrot.lane.b32.xlu1 %v2719_v21, %s5140_s21  ;;  %v2878_v52 = vrot.slane %v2859_v45, %v5631_v0 }
 0x26d   : > { %v3221_v48 = vsel %vm6821_vm8, %v3215_v18, %v3220_v22  ;;  %v3234_v34 = vrot.slane %v3231_v1, 1 }
 0x26e   : > { %3224 = vst [vmem:[#allocation5 + $0xc3] ss:$8 sm:$0xf] %v3221_v48  ;;  %3225 = vst [vmem:[#allocation5 + $0xc3] ss:$8 sm:$0xf0] %v3221_v48  ;;  %2901 = vrot.lane.b32.xlu0 %v2870_v17, %s5140_s21  ;;  %v5895_v9 = vpop.permute.xlu1 %2247  ;;  %v2874_v48 = vrot.slane %v2859_v45, %v5634_v29 }
 0x26f   : > { %v3236_v55 = vsel %vm1780_vm7, %v3234_v34, %v3235_v63  ;;  %v2886_v34 = vrot.slane %v2859_v45, %v5603_v60 }
 0x270   : > { %v3237_v18 = vsel %vm6817_vm3, %v3231_v1, %v3236_v55  ;;  %v3390_v27 = vpop.permute.xlu0 %3389  ;;  %2899 = vrot.lane.b32.xlu1 %v2866_v32, %s5140_s21 }
 0x271   : > { %3240 = vst [vmem:[#allocation5 + $0xc4] ss:$8 sm:$0xf] %v3237_v18  ;;  %3241 = vst [vmem:[#allocation5 + $0xc4] ss:$8 sm:$0xf0] %v3237_v18  ;;  %v2882_v18 = vrot.slane %v2859_v45, %v5596_v50 }
 0x272   : > { %v3393_v21 = vrot.slane %v3390_v27, 1  ;;  %2905 = vrot.lane.b32.xlu0 %v2878_v52, %s5140_s21  ;;  %v5904_v22 = vpop.permute.xlu1 %2597 }
 0x274   : > { %v3395_v17 = vsel %vm1780_vm7, %v3393_v21, %v3394_v4  ;;  %v3406_v63 = vpop.permute.xlu0 %3405  ;;  %2903 = vrot.lane.b32.xlu1 %v2874_v48, %s5140_s21  ;;  %v2894_v21 = vrot.slane %v2859_v45, %v5599_v62 }
 0x275   : > { %v3396_v1 = vsel %vm6822_vm4, %v3390_v27, %v3395_v17  ;;  %v3409_v32 = vrot.slane %v3406_v63, 1  ;;  %v3034_v17 = vld [vmem:[#allocation3 + $0x1] ss:$4 sm:$0xff] }
 0x276   : > { %3399 = vst [vmem:[#allocation5 + $0xc6] ss:$8 sm:$0xf] %v3396_v1  ;;  %3400 = vst [vmem:[#allocation5 + $0xc6] ss:$8 sm:$0xf0] %v3396_v1  ;;  %2909 = vrot.lane.b32.xlu0 %v2886_v34, %s5140_s21  ;;  %v5913_v55 = vpop.permute.xlu1 %2915  ;;  %v2890_v34 = vrot.slane %v2859_v45, %v5606_v56  ;;  %v3045_v45 = vrot.slane %v3034_v17, %v5628_v57  ;;  %v3069_v46 = vrot.slane %v3034_v17, %v5599_v62 }
 0x277   : > { %v3411_v52 = vsel %vm1780_vm7, %v3409_v32, %v3410_v41 }
 0x278   : > { %v3412_v27 = vsel %vm6823_vm5, %v3406_v63, %v3411_v52  ;;  %v3565_v4 = vpop.permute.xlu0 %3564  ;;  %2907 = vrot.lane.b32.xlu1 %v2882_v18, %s5140_s21  ;;  %v3041_v18 = vrot.slane %v3034_v17, %v5568_v30 }
 0x279   : > { %3415 = vst [vmem:[#allocation5 + $0xc7] ss:$8 sm:$0xf] %v3412_v27  ;;  %3416 = vst [vmem:[#allocation5 + $0xc7] ss:$8 sm:$0xf0] %v3412_v27 }
 0x27a   : > { %v3568_v48 = vrot.slane %v3565_v4, 1  ;;  %2913 = vrot.lane.b32.xlu0 %v2894_v21, %s5140_s21  ;;  %v5922_v1 = vpop.permute.xlu1 %3298 }
 0x27c   : > { %v3570_v41 = vsel %vm1780_vm7, %v3568_v48, %v3569_v10  ;;  %v3581_v32 = vpop.permute.xlu0 %3580  ;;  %2911 = vrot.lane.b32.xlu1 %v2890_v34, %s5140_s21  ;;  %v3049_v48 = vrot.slane %v3034_v17, %v5634_v29  ;;  %v3053_v34 = vrot.slane %v3034_v17, %v5631_v0 }
 0x27d   : > { %v3571_v63 = vsel %vm6748_vm2, %v3565_v4, %v3570_v41  ;;  %v3584_v52 = vrot.slane %v3581_v32, 1 }
 0x27e   : > { %3574 = vst [vmem:[#allocation5 + $0x101] ss:$8 sm:$0xf] %v3571_v63  ;;  %3575 = vst [vmem:[#allocation5 + $0x101] ss:$8 sm:$0xf0] %v3571_v63  ;;  %3074 = vrot.lane.b32.xlu0 %v3041_v18, %s5141_s22  ;;  %v5931_v27 = vpop.permute.xlu1 %3648  ;;  %v3057_v63 = vrot.slane %v3034_v17, %v5596_v50  ;;  %v3061_v18 = vrot.slane %v3034_v17, %v5603_v60 }
 0x27f   : > { %v3586_v21 = vsel %vm1780_vm7, %v3584_v52, %v3585_v39  ;;  %vm6824_vm7 = vcmask 785408  }
 0x280   : > { %v3587_v4 = vsel %vm6748_vm2, %v3581_v32, %v3586_v21  ;;  %v1850_v10 = vpop.permute.xlu0 %1849  ;;  %3076 = vrot.lane.b32.xlu1 %v3045_v45, %s5141_s22  ;;  %v3065_v45 = vrot.slane %v3034_v17, %v5606_v56  ;;  %vm6825_vm6 = vmmov %vm6824_vm7  ;;  %vm6854_vm2 = vcmask 1031168  }
 0x281   : > { %3590 = vst [vmem:[#allocation5 + $0x102] ss:$8 sm:$0xf] %v3587_v4  ;;  %3591 = vst [vmem:[#allocation5 + $0x102] ss:$8 sm:$0xf0] %v3587_v4 }
 0x282   : > { %3078 = vrot.lane.b32.xlu0 %v3049_v48, %s5141_s22  ;;  %v1848_v7 = vpop.permute.xlu1 %1847  ;;  %vm6826_vm8 = vmmov %vm6825_vm6  ;;  %v5949_v48 = vld [vmem:[#allocation3] ss:$4 sm:$0xff] }
 0x283   : > { %v1865_v21 = vsel %vm6825_vm6, %v1848_v7, %v1850_v10  ;;  %vm6827_vm3 = vmmov %vm6825_vm6 }
 0x284   : > { %v1854_v41 = vpop.permute.xlu0 %1853  ;;  %3080 = vrot.lane.b32.xlu1 %v3053_v34, %s5141_s22  ;;  %vm6828_vm4 = vmmov %vm6827_vm3 }
 0x285   : > { %vm6829_vm5 = vmmov %vm6827_vm3 }
 0x286   : > { %3082 = vrot.lane.b32.xlu0 %v3057_v63, %s5141_s22  ;;  %v1852_v32 = vpop.permute.xlu1 %1851  ;;  %vm6831_vm6 = vmmov %vm6827_vm3 }
 0x287   : > { %v1866_v39 = vsel %vm6824_vm7, %v1850_v10, %v1852_v32  ;;  %v1867_v4 = vsel %vm6826_vm8, %v1852_v32, %v1854_v41  ;;  %vm6830_vm7 = vmmov %vm6827_vm3 }
 0x288   : > { %v1858_v52 = vpop.permute.xlu0 %1857  ;;  %3084 = vrot.lane.b32.xlu1 %v3061_v18, %s5141_s22  ;;  %v1882_v34 = vsel %vm5316_vm10, %v1866_v39, 0.0  ;;  %v1881_v18 = vsel %vm5309_vm9, %v1865_v21, 0.0  ;;  %v1883_v10 = vsel %vm5322_vm11, %v1867_v4, 0.0  ;;  %v3253_v39 = vrot.slane %v5949_v48, %v5628_v57  ;;  %vm6832_vm8 = vmmov %vm6827_vm3 }
 0x289   : > { %v3249_v4 = vrot.slane %v5949_v48, %v5568_v30 }
 0x28a   : > { %3086 = vrot.lane.b32.xlu0 %v3065_v45, %s5141_s22  ;;  %v1856_v63 = vpop.permute.xlu1 %1855  ;;  %v1897_v45 = vcombine.low %v1881_v18, %v1882_v34  ;;  %v3261_v34 = vrot.slane %v5949_v48, %v5631_v0 }
 0x28b   : > { %v1868_v36 = vsel %vm6827_vm3, %v1854_v41, %v1856_v63  ;;  %v1869_v17 = vsel %vm6828_vm4, %v1856_v63, %v1858_v52  ;;  %vm6833_vm4 = vmmov %vm6827_vm3 }
 0x28c   : > { %v1884_v7 = vsel %vm5328_vm12, %v1868_v36, 0.0  ;;  %v1862_v32 = vpop.permute.xlu0 %1861  ;;  %3088 = vrot.lane.b32.xlu1 %v3069_v46, %s5141_s22  ;;  %v1885_v63 = vsel %vm5341_vm13, %v1869_v17, 0.0  ;;  %v3257_v17 = vrot.slane %v5949_v48, %v5634_v29 }
 0x28d   : > { %v1898_v33 = vcombine.low %v1883_v10, %v1884_v7  ;;  %v1872_v41 = vsel %vm6829_vm5, %v1862_v32, %v5886_v24  ;;  %vm6834_vm5 = vmmov %vm6827_vm3 }
 0x28e   : > { %3284 = vrot.lane.b32.xlu0 %v3253_v39, %s5139_s20  ;;  %v1860_v21 = vpop.permute.xlu1 %1859  ;;  %v1888_v24 = vsel %vm5383_vm1, %v1872_v41, 0.0 }
 0x28f   : > { %v1914_v36 = vrot.slane %v1898_v33, %v5624_v51  ;;  %v1870_v46 = vsel %vm6830_vm7, %v1858_v52, %v1860_v21  ;;  %v1871_v31 = vsel %vm6831_vm6, %v1860_v21, %v1862_v32  ;;  %v1907_v52 = vrot.slane %v1897_v45, %v5624_v51  ;;  %vm6835_vm7 = vmmov %vm6827_vm3 }
 0x290   : > { %v1886_v18 = vsel %vm5358_vm14, %v1870_v46, 0.0  ;;  %v1887_v10 = vsel %vm5377_vm15, %v1871_v31, 0.0  ;;  %v2025_v33 = vpop.permute.xlu0 %2024  ;;  %3282 = vrot.lane.b32.xlu1 %v3249_v4, %s5139_s20  ;;  %v3269_v31 = vrot.slane %v5949_v48, %v5603_v60  ;;  %vm6836_vm6 = vmmov %vm6827_vm3 }
 0x291   : > { %v1899_v7 = vcombine.low %v1885_v63, %v1886_v18  ;;  %v1900_v32 = vcombine.low %v1887_v10, %v1888_v24  ;;  %v1929_v41 = vcombine.low %v1907_v52, %v1914_v36  ;;  %v3277_v52 = vrot.slane %v5949_v48, %v5599_v62 }
 0x292   : > { %3288 = vrot.lane.b32.xlu0 %v3261_v34, %s5139_s20  ;;  %v2027_v39 = vpop.permute.xlu1 %2026  ;;  %v3265_v34 = vrot.slane %v5949_v48, %v5596_v50 }
 0x293   : > { %v1921_v21 = vrot.slane %v1899_v7, %v5624_v51  ;;  %v1928_v46 = vrot.slane %v1900_v32, %v5624_v51  ;;  %v1937_v63 = vrot.slane %v1929_v41, %v5624_v51  ;;  %v2042_v32 = vsel %vm6833_vm4, %v2025_v33, %v2027_v39 }
 0x294   : > { %v2029_v20 = vpop.permute.xlu0 %2028  ;;  %3286 = vrot.lane.b32.xlu1 %v3257_v17, %s5139_s20  ;;  %vm6838_vm4 = vcmask 1031168  }
 0x295   : > { %v1930_v45 = vcombine.low %v1921_v21, %v1928_v46  ;;  %v2043_v24 = vsel %vm6832_vm8, %v2027_v39, %v2029_v20  ;;  %v6006_v21 = vld [vmem:[#allocation3 + $0x2] ss:$4 sm:$0xff]  ;;  %vm6837_vm8 = vmmov %vm6827_vm3 }
 0x296   : > { %3292 = vrot.lane.b32.xlu0 %v3269_v31, %s5139_s20  ;;  %v2031_v4 = vpop.permute.xlu1 %2030  ;;  %v2059_v41 = vsel %vm5316_vm10, %v2043_v24, 0.0 }
 0x297   : > { %v1944_v36 = vrot.slane %v1930_v45, %v5624_v51  ;;  %v2044_v18 = vsel %vm6827_vm3, %v2029_v20, %v2031_v4  ;;  %v3273_v45 = vrot.slane %v5949_v48, %v5606_v56 }
 0x298   : > { %v2033_v10 = vpop.permute.xlu0 %2032  ;;  %3290 = vrot.lane.b32.xlu1 %v3265_v34, %s5139_s20  ;;  %v2060_v46 = vsel %vm5322_vm11, %v2044_v18, 0.0 }
 0x299   : > { %v1945_v7 = vcombine.low %v1937_v63, %v1944_v36  ;;  %v2045_v17 = vsel %vm6834_vm5, %v2031_v4, %v2033_v10  ;;  %v2058_v4 = vsel %vm5309_vm9, %v2042_v32, 0.0  ;;  %v3424_v63 = vrot.slane %v6006_v21, %v5568_v30  ;;  %vm6839_vm5 = vmmov %vm6838_vm4 }
 0x29a   : > { %v2061_v20 = vsel %vm5328_vm12, %v2045_v17, 0.0  ;;  %3296 = vrot.lane.b32.xlu0 %v3277_v52, %s5139_s20  ;;  %v2035_v31 = vpop.permute.xlu1 %2034  ;;  %v2074_v36 = vcombine.low %v2058_v4, %v2059_v41  ;;  %v3428_v52 = vrot.slane %v6006_v21, %v5628_v57 }
 0x29b   : > { %1948 = vst [vmem:[#allocation5 + $0x3] ss:$8 sm:$0xf] %v1945_v7  ;;  %1949 = vst [vmem:[#allocation5 + $0x3] ss:$8 sm:$0xf0] %v1945_v7  ;;  %v2075_v33 = vcombine.low %v2060_v46, %v2061_v20  ;;  %v2046_v39 = vsel %vm6835_vm7, %v2033_v10, %v2035_v31 }
 0x29c   : > { %v2037_v34 = vpop.permute.xlu0 %2036  ;;  %3294 = vrot.lane.b32.xlu1 %v3273_v45, %s5139_s20  ;;  %v2062_v48 = vsel %vm5341_vm13, %v2046_v39, 0.0  ;;  %v3432_v45 = vrot.slane %v6006_v21, %v5634_v29  ;;  %vm6840_vm7 = vmmov %vm6838_vm4 }
 0x29d   : > { %v2047_v24 = vsel %vm6836_vm6, %v2035_v31, %v2037_v34  ;;  %v2091_v7 = vrot.slane %v2075_v33, %v5624_v51  ;;  %v2084_v33 = vrot.slane %v2074_v36, %v5624_v51  ;;  %vm6841_vm6 = vmmov %vm6838_vm4 }
 0x29e   : > { %v2063_v18 = vsel %vm5358_vm14, %v2047_v24, 0.0  ;;  %3457 = vrot.lane.b32.xlu0 %v3424_v63, %s5139_s20  ;;  %v2039_v10 = vpop.permute.xlu1 %2038 }
 0x29f   : > { %v2076_v32 = vcombine.low %v2062_v48, %v2063_v18  ;;  %v2048_v17 = vsel %vm6837_vm8, %v2037_v34, %v2039_v10  ;;  %v2049_v41 = vsel %vm6827_vm3, %v2039_v10, %v5693_v37  ;;  %v3436_v37 = vrot.slane %v6006_v21, %v5631_v0 }
 0x2a0   : > { %v2064_v46 = vsel %vm5377_vm15, %v2048_v17, 0.0  ;;  %v2065_v20 = vsel %vm5383_vm1, %v2049_v41, 0.0  ;;  %v2234_v31 = vpop.permute.xlu0 %2233  ;;  %3459 = vrot.lane.b32.xlu1 %v3428_v52, %s5139_s20  ;;  %v2106_v34 = vcombine.low %v2084_v33, %v2091_v7  ;;  %v3440_v18 = vrot.slane %v6006_v21, %v5596_v50  ;;  %vm6855_vm1 = vmmov %vm6854_vm2 }
 0x2a1   : > { %v2077_v39 = vcombine.low %v2064_v46, %v2065_v20  ;;  %v2098_v63 = vrot.slane %v2076_v32, %v5624_v51  ;;  %v3444_v52 = vrot.slane %v6006_v21, %v5603_v60  ;;  %v3448_v46 = vrot.slane %v6006_v21, %v5606_v56  ;;  %v6060_v20 = vld [vmem:[#allocation3] ss:$4 sm:$0xff]  ;;  %vm6859_vm14 = vmmov %vm6855_vm1 }
 0x2a2   : > { %3461 = vrot.lane.b32.xlu0 %v3432_v45, %s5139_s20  ;;  %v2232_v4 = vpop.permute.xlu1 %2231  ;;  %v2114_v17 = vrot.slane %v2106_v34, %v5624_v51 }
 0x2a3   : > { %v2105_v24 = vrot.slane %v2077_v39, %v5624_v51  ;;  %v2249_v33 = vsel %vm6839_vm5, %v2232_v4, %v2234_v31  ;;  %v6845_v4 = vand.u32 31, %v5305_v3  ;;  %vm6849_vm5 = vnez %v6793_v58 }
 0x2a4   : > { %v2238_v48 = vpop.permute.xlu0 %2237  ;;  %3463 = vrot.lane.b32.xlu1 %v3436_v37, %s5139_s20  ;;  %v6852_v3 = vmov 0 }
 0x2a5   : > { %v2107_v10 = vcombine.low %v2098_v63, %v2105_v24  ;;  %v3452_v63 = vrot.slane %v6006_v21, %v5599_v62  ;;  %vm6080_vm3 = vcmp.ne.s32.totalorder %v6845_v4, 31 }
 0x2a6   : > { %3465 = vrot.lane.b32.xlu0 %v3440_v18, %s5139_s20  ;;  %v2236_v36 = vpop.permute.xlu1 %2235  ;;  %v6842_v18 = vand.u32 31, %v5363_v28 }
 0x2a7   : > { %v2121_v7 = vrot.slane %v2107_v10, %v5624_v51  ;;  %v2250_v32 = vsel %vm6838_vm4, %v2234_v31, %v2236_v36  ;;  %v2251_v39 = vsel %vm6840_vm7, %v2236_v36, %v2238_v48  ;;  %v6843_v10 = vmov 0 }
 0x2a8   : > { %v2242_v41 = vpop.permute.xlu0 %2241  ;;  %3467 = vrot.lane.b32.xlu1 %v3444_v52, %s5139_s20  ;;  %v2266_v37 = vsel %vm5452_vm0, %v2250_v32, 0.0  ;;  %vm6072_vm8 = vcmp.ne.s32.totalorder %v6842_v18, 31  ;;  %v3603_v31 = vrot.slane %v6060_v20, %v5628_v57  ;;  %v6846_v36 = vmov 0 }
 0x2a9   : > { %v2122_v45 = vcombine.low %v2114_v17, %v2121_v7  ;;  %v6844_v10 = vsel %vm6072_vm8, 4294967295, %v6843_v10  ;;  %v6847_v36 = vsel %vm6080_vm3, 4294967295, %v6846_v36  ;;  %vm6848_vm4 = vnez %v6789_v47 }
 0x2aa   : > { %3469 = vrot.lane.b32.xlu0 %v3448_v46, %s5139_s20  ;;  %v2240_v34 = vpop.permute.xlu1 %2239  ;;  %v2265_v21 = vsel %vm6848_vm4, %v2249_v33, 0.0  ;;  %vm6850_vm7 = vnez %v6795_v23  ;;  %v6851_v57 = vand.u32 31, %v5354_v25  ;;  %v6857_v33 = vmov 0 }
 0x2ab   : > { %2125 = vst [vmem:[#allocation5 + $0x6] ss:$8 sm:$0xf] %v2122_v45  ;;  %2126 = vst [vmem:[#allocation5 + $0x6] ss:$8 sm:$0xf0] %v2122_v45  ;;  %v2252_v24 = vsel %vm6841_vm6, %v2238_v48, %v2240_v34  ;;  %v2281_v17 = vcombine.low %v2265_v21, %v2266_v37  ;;  %v2253_v7 = vsel %vm6854_vm2, %v2240_v34, %v2242_v41 }
 0x2ac   : > { %v2267_v48 = vsel %vm6849_vm5, %v2251_v39, 0.0  ;;  %v2268_v28 = vsel %vm6850_vm7, %v2252_v24, 0.0  ;;  %v2246_v52 = vpop.permute.xlu0 %2245  ;;  %3471 = vrot.lane.b32.xlu1 %v3452_v63, %s5139_s20  ;;  %vm6093_vm6 = vcmp.ne.s32.totalorder %v6851_v57, 31  ;;  %v6856_v45 = vand.u32 31, %v5293_v61  ;;  %vm6860_vm2 = vmmov %vm6855_vm1 }
 0x2ad   : > { %v6853_v3 = vsel %vm6093_vm6, 4294967295, %v6852_v3  ;;  %v2282_v32 = vcombine.low %v2267_v48, %v2268_v28  ;;  %v2256_v46 = vsel %vm6855_vm1, %v2246_v52, %v5895_v9  ;;  %v3599_v39 = vrot.slane %v6060_v20, %v5568_v30 }
 0x2ae   : > { %vm6102_vm15 = vcmp.ne.s32.totalorder %v6856_v45, 31  ;;  %3634 = vrot.lane.b32.xlu0 %v3603_v31, %s5147_s27  ;;  %v2244_v25 = vpop.permute.xlu1 %2243  ;;  %v3611_v9 = vrot.slane %v6060_v20, %v5631_v0  ;;  %v2272_v24 = vsel %vm6072_vm8, %v2256_v46, 0.0  ;;  %v6124_v0 = vld [vmem:[#allocation2] sm:$0xff]  ;;  %v3607_v28 = vrot.slane %v6060_v20, %v5634_v29 }
 0x2af   : > { %v6858_v33 = vsel %vm6102_vm15, 4294967295, %v6857_v33  ;;  %v2298_v37 = vrot.slane %v2282_v32, %v5624_v51  ;;  %v2254_v34 = vsel %vm6859_vm14, %v2242_v41, %v2244_v25  ;;  %v2255_v63 = vsel %vm6860_vm2, %v2244_v25, %v2246_v52  ;;  %v6129_v52 = vld [vmem:[#allocation2 + $0x8] sm:$0xff] }
 0x2b0   : > { %v2269_v61 = vsel %vm6102_vm15, %v2253_v7, 0.0  ;;  %v2270_v18 = vsel %vm6080_vm3, %v2254_v34, 0.0  ;;  %v2271_v30 = vsel %vm6093_vm6, %v2255_v63, 0.0  ;;  %v2407_v31 = vpop.permute.xlu0 %2406  ;;  %3632 = vrot.lane.b32.xlu1 %v3599_v39, %s5147_s27  ;;  %v2291_v41 = vrot.slane %v2281_v17, %v5624_v51  ;;  %v6142_v39 = vld [vmem:[#allocation2 + $0x10] sm:$0xff] }
 0x2b1   : > { %v2283_v4 = vcombine.low %v2269_v61, %v2270_v18  ;;  %v2284_v21 = vcombine.low %v2271_v30, %v2272_v24  ;;  %v3619_v17 = vrot.slane %v6060_v20, %v5603_v60  ;;  %v1487_v45 = vcombine.high %v6124_v0, %v6124_v0 }
 0x2b2   : > { %3638 = vrot.lane.b32.xlu0 %v3611_v9, %s5147_s27  ;;  %v2409_v48 = vpop.permute.xlu1 %2408  ;;  %v2313_v57 = vcombine.low %v2291_v41, %v2298_v37  ;;  %v6140_v29 = vcombine.high %v6129_v52, %v6129_v52  ;;  %v3615_v34 = vrot.slane %v6060_v20, %v5596_v50  ;;  %vm6861_vm14 = vcmask 769024  }
 0x2b3   : > { %v2305_v7 = vrot.slane %v2283_v4, %v5624_v51  ;;  %v2312_v32 = vrot.slane %v2284_v21, %v5624_v51  ;;  %vm6862_vm1 = vmmov %vm6861_vm14  ;;  %v3627_v18 = vrot.slane %v6060_v20, %v5599_v62  ;;  %v4884_v30 = vpack.c.bf16 %v1487_v45, %v6124_v0 }
 0x2b4   : > { %v2411_v46 = vpop.permute.xlu0 %2410  ;;  %3636 = vrot.lane.b32.xlu1 %v3607_v28, %s5147_s27  ;;  %v2321_v63 = vrot.slane %v2313_v57, %v5624_v51  ;;  %v6157_v41 = vcombine.high %v6142_v39, %v6142_v39  ;;  %vm6863_vm2 = vmmov %vm6862_vm1  ;;  %v4885_v28 = vpack.c.bf16 %v6140_v29, %v6129_v52 }
 0x2b5   : > { %v2314_v25 = vcombine.low %v2305_v7, %v2312_v32  ;;  %v2425_v9 = vsel %vm6861_vm14, %v2409_v48, %v2411_v46  ;;  %v2424_v4 = vsel %vm6863_vm2, %v2407_v31, %v2409_v48  ;;  %vm6864_vm13 = vmmov %vm6862_vm1  ;;  %v3623_v31 = vrot.slane %v6060_v20, %v5606_v56 }
 0x2b6   : > { %3642 = vrot.lane.b32.xlu0 %v3619_v17, %s5147_s27  ;;  %v2413_v37 = vpop.permute.xlu1 %2412  ;;  %v2441_v57 = vsel %vm5452_vm0, %v2425_v9, 0.0  ;;  %v2440_v17 = vsel %vm6848_vm4, %v2424_v4, 0.0  ;;  %vm6866_vm14 = vmmov %vm6862_vm1 }
 0x2b7   : > { %v2328_v60 = vrot.slane %v2314_v25, %v5624_v51  ;;  %v2426_v61 = vsel %vm6862_vm1, %v2411_v46, %v2413_v37  ;;  %vm6867_vm2 = vmmov %vm6862_vm1 }
 0x2b8   : > { %v2415_v24 = vpop.permute.xlu0 %2414  ;;  %3640 = vrot.lane.b32.xlu1 %v3615_v34, %s5147_s27  ;;  %v2442_v62 = vsel %vm6849_vm5, %v2426_v61, 0.0  ;;  %v4886_v34 = vpack.c.bf16 %v6157_v41, %v6142_v39  ;;  %v1528_v61 = vrot.slane %v4885_v28, 6 }
 0x2b9   : > { %v2329_v50 = vcombine.low %v2321_v63, %v2328_v60  ;;  %v2427_v21 = vsel %vm6864_vm13, %v2413_v37, %v2415_v24  ;;  %vm6865_vm13 = vmmov %vm6862_vm1  ;;  %v1527_v37 = vrot.slane %v4884_v30, 6  ;;  %v2456_v63 = vcombine.low %v2440_v17, %v2441_v57  ;;  %v6198_v17 = vld [vmem:[#allocation2 + $0x18] sm:$0xff] }
 0x2ba   : > { %v2443_v7 = vsel %vm6850_vm7, %v2427_v21, 0.0  ;;  %3646 = vrot.lane.b32.xlu0 %v3627_v18, %s5147_s27  ;;  %v2417_v32 = vpop.permute.xlu1 %2416 }
 0x2bb   : > { %2332 = vst [vmem:[#allocation5 + $0x43] ss:$8 sm:$0xf] %v2329_v50  ;;  %2333 = vst [vmem:[#allocation5 + $0x43] ss:$8 sm:$0xf0] %v2329_v50  ;;  %v2457_v48 = vcombine.low %v2442_v62, %v2443_v7  ;;  %v2428_v46 = vsel %vm6865_vm13, %v2415_v24, %v2417_v32  ;;  %v2466_v28 = vrot.slane %v2456_v63, %v5624_v51 }
 0x2bc   : > { %v2419_v25 = vpop.permute.xlu0 %2418  ;;  %3644 = vrot.lane.b32.xlu1 %v3623_v31, %s5147_s27  ;;  %v2444_v56 = vsel %vm6102_vm15, %v2428_v46, 0.0  ;;  %v1529_v62 = vrot.slane %v4886_v34, 6  ;;  %v5001_v31 = vpack.i.bf16 %v1487_v45, %v6124_v0  ;;  %v6205_v34 = vcombine.high %v6198_v17, %v6198_v17  ;;  %vm6868_vm13 = vmmov %vm6862_vm1 }
 0x2bd   : > { %v2429_v60 = vsel %vm6866_vm14, %v2417_v32, %v2419_v25  ;;  %v2473_v24 = vrot.slane %v2457_v48, %v5624_v51  ;;  %vm6869_vm14 = vmmov %vm6862_vm1 }
 0x2be   : > { %v2445_v20 = vsel %vm6080_vm3, %v2429_v60, 0.0  ;;  %1532 = vrot.lane.b32.xlu0 %v1527_v37, %s5146_s26  ;;  %v2421_v9 = vpop.permute.xlu1 %2420  ;;  %v5006_v37 = vpack.i.bf16 %v6140_v29, %v6129_v52 }
 0x2bf   : > { %v2458_v18 = vcombine.low %v2444_v56, %v2445_v20  ;;  %v2430_v30 = vsel %vm6862_vm1, %v2419_v25, %v2421_v9  ;;  %v2431_v50 = vsel %vm6867_vm2, %v2421_v9, %v5699_v44  ;;  %v2488_v48 = vcombine.low %v2466_v28, %v2473_v24  ;;  %v918_v9 = vld [vmem:[#allocation2 + $0x20] sm:$0xf]  ;;  %vm6870_vm2 = vmmov %vm6862_vm1 }
 0x2c0   : > { %v2446_v4 = vsel %vm6093_vm6, %v2430_v30, 0.0  ;;  %v2447_v21 = vsel %vm6072_vm8, %v2431_v50, 0.0  ;;  %v2584_v57 = vpop.permute.xlu0 %2583  ;;  %1534 = vrot.lane.b32.xlu1 %v1528_v61, %s5146_s26  ;;  %v6218_v61 = vpack.i.bf16 %v6205_v34, %v6198_v17  ;;  %v6222_v24 = vpack.c.bf16 %v6205_v34, %v6198_v17 }
 0x2c1   : > { %v2459_v7 = vcombine.low %v2446_v4, %v2447_v21  ;;  %v2480_v44 = vrot.slane %v2458_v18, %v5624_v51  ;;  %v2496_v45 = vrot.slane %v2488_v48, %v5624_v51  ;;  %v4862_v21 = vpack.c.bf16 %v918_v9, %v918_v9 }
 0x2c2   : > { %1536 = vrot.lane.b32.xlu0 %v1529_v62, %s5146_s26  ;;  %v2582_v32 = vpop.permute.xlu1 %2581  ;;  %v1114_v62 = vld [vmem:[#allocation2 + $0x20] sm:$0xf] }
 0x2c3   : > { %v2487_v46 = vrot.slane %v2459_v7, %v5624_v51  ;;  %v2599_v56 = vsel %vm6868_vm13, %v2582_v32, %v2584_v57  ;;  %vm6871_vm13 = vmmov %vm6862_vm1 }
 0x2c4   : > { %v2588_v25 = vpop.permute.xlu0 %2587  ;;  %5002 = vrot.lane.b32.xlu1 %v5001_v31, %s5147_s27  ;;  %v2615_v50 = vsel %vm6848_vm4, %v2599_v56, 0.0  ;;  %v966_v31 = vrot.slane %v6222_v24, 6 }
 0x2c5   : > { %v2489_v63 = vcombine.low %v2480_v44, %v2487_v46 }
 0x2c6   : > { %5007 = vrot.lane.b32.xlu0 %v5006_v37, %s5147_s27  ;;  %v2586_v0 = vpop.permute.xlu1 %2585  ;;  %v967_v37 = vrot.slane %v4862_v21, 6 }
 0x2c7   : > { %v2503_v60 = vrot.slane %v2489_v63, %v5624_v51  ;;  %v2600_v20 = vsel %vm6869_vm14, %v2584_v57, %v2586_v0  ;;  %v2601_v30 = vsel %vm6862_vm1, %v2586_v0, %v2588_v25  ;;  %vm6872_vm14 = vmmov %vm6862_vm1 }
 0x2c8   : > { %v2616_v52 = vsel %vm5452_vm0, %v2600_v20, 0.0  ;;  %v2592_v29 = vpop.permute.xlu0 %2591  ;;  %1586 = vrot.lane.b32.xlu1 %v6142_v39, %s5147_s27  ;;  %v2617_v28 = vsel %vm6849_vm5, %v2601_v30, 0.0 }
 0x2c9   : > { %v2504_v18 = vcombine.low %v2496_v45, %v2503_v60  ;;  %v2631_v39 = vcombine.low %v2615_v50, %v2616_v52  ;;  %v3760_v50 = vld [vmem:[#allocation5 + $0x8] sm:$0xff] }
 0x2ca   : > { %5012 = vrot.lane.b32.xlu0 %v6218_v61, %s5140_s21  ;;  %v2590_v4 = vpop.permute.xlu1 %2589 }
 0x2cb   : > { %2507 = vst [vmem:[#allocation5 + $0x46] ss:$8 sm:$0xf] %v2504_v18  ;;  %2508 = vst [vmem:[#allocation5 + $0x46] ss:$8 sm:$0xf0] %v2504_v18  ;;  %v2602_v57 = vsel %vm6870_vm2, %v2588_v25, %v2590_v4  ;;  %v2603_v48 = vsel %vm6871_vm13, %v2590_v4, %v2592_v29  ;;  %v2641_v63 = vrot.slane %v2631_v39, %v5624_v51 }
 0x2cc   : > { %v2618_v7 = vsel %vm6850_vm7, %v2602_v57, 0.0  ;;  %v2596_v32 = vpop.permute.xlu0 %2595  ;;  %1140 = vrot.lane.b32.xlu1 %v1114_v62, %s5140_s21  ;;  %vm6873_vm2 = vmmov %vm6862_vm1  ;;  %v2619_v56 = vsel %vm6102_vm15, %v2603_v48, 0.0  ;;  %v3759_v48 = vld [vmem:[#allocation5] sm:$0xff]  ;;  %vm6874_vm13 = vcmask 785408   ;;  %s4853_s21 = sshll.u32 %s6975_s14, 5 }
 0x2cd   : > { %v2632_v44 = vcombine.low %v2617_v28, %v2618_v7  ;;  %v2606_v46 = vsel %vm6872_vm14, %v2596_v32, %v5904_v22  ;;  %vm6875_vm14 = vmmov %vm6874_vm13 }
 0x2ce   : > { %974 = vrot.lane.b32.xlu0 %v966_v31, %s5144_s25  ;;  %v2594_v25 = vpop.permute.xlu1 %2593  ;;  %v2622_v22 = vsel %vm6072_vm8, %v2606_v46, 0.0 }
 0x2cf   : > { %v2648_v0 = vrot.slane %v2632_v44, %v5624_v51  ;;  %v2604_v45 = vsel %vm6862_vm1, %v2592_v29, %v2594_v25  ;;  %v2605_v60 = vsel %vm6873_vm2, %v2594_v25, %v2596_v32  ;;  %v1005_v29 = vld [vmem:[#allocation2 + $0x20] sm:$0xf]  ;;  %vm6876_vm1 = vmmov %vm6874_vm13 }
 0x2d0   : > { %v2620_v20 = vsel %vm6080_vm3, %v2604_v45, 0.0  ;;  %v2621_v9 = vsel %vm6093_vm6, %v2605_v60, 0.0  ;;  %v2725_v52 = vpop.permute.xlu0 %2724  ;;  %976 = vrot.lane.b32.xlu1 %v967_v37, %s5144_s25  ;;  %v3762_v32 = vld [vmem:[#allocation5 + $0x18] sm:$0xff]  ;;  %vm6877_vm2 = vmmov %vm6876_vm1  ;;  %vm6884_vm3 = vnez %v6782_v38 }
 0x2d1   : > { %v2633_v18 = vcombine.low %v2619_v56, %v2620_v20  ;;  %v2634_v30 = vcombine.low %v2621_v9, %v2622_v22  ;;  %v2663_v4 = vcombine.low %v2641_v63, %v2648_v0  ;;  %v3761_v0 = vld [vmem:[#allocation5 + $0x10] sm:$0xff] }
 0x2d2   : > { %5017 = vrot.lane.b32.xlu0 %v6218_v61, %s5142_s23  ;;  %v2727_v21 = vpop.permute.xlu1 %2726  ;;  %v3768_v39 = vld [vmem:[#allocation5 + $0x48] sm:$0xff]  ;;  %v3770_v57 = vld [vmem:[#allocation5 + $0x58] sm:$0xff]  ;;  %v3767_v62 = vld [vmem:[#allocation5 + $0x40] sm:$0xff] }
 0x2d3   : > { %v2655_v28 = vrot.slane %v2633_v18, %v5624_v51  ;;  %v2662_v7 = vrot.slane %v2634_v30, %v5624_v51  ;;  %v3769_v44 = vld [vmem:[#allocation5 + $0x50] sm:$0xff]  ;;  %v3800_v25 = vpack.c.bf16 %v3768_v39, %v3760_v50  ;;  %v3802_v37 = vpack.c.bf16 %v3770_v57, %v3762_v32  ;;  %v1292_v30 = vld [vmem:[#allocation2 + $0x20] sm:$0xf] }
 0x2d4   : > { %v2729_v46 = vpop.permute.xlu0 %2728  ;;  %1047 = vrot.lane.b32.xlu1 %v1005_v29, %s5142_s23  ;;  %v3799_v63 = vpack.c.bf16 %v3767_v62, %v3759_v48  ;;  %v3801_v60 = vpack.c.bf16 %v3769_v44, %v3761_v0  ;;  %v2671_v56 = vrot.slane %v2663_v4, %v5624_v51  ;;  %v1211_v29 = vld [vmem:[#allocation2 + $0x20] sm:$0xf]  ;;  %v2742_v39 = vsel %vm6876_vm1, %v2725_v52, %v2727_v21 }
 0x2d5   : > { %v2664_v45 = vcombine.low %v2655_v28, %v2662_v7  ;;  %3856 = vmatprep.subr.bf16.mxu0 %v3800_v25  ;;  %3899 = vmatprep.subr.bf16.mxu1 %v3802_v37  ;;  %v2743_v9 = vsel %vm6874_vm13, %v2727_v21, %v2729_v46  ;;  %v4875_v48 = vpack.c.bf16 %v1211_v29, %v1211_v29  ;;  %vm6878_vm13 = vmmov %vm6876_vm1  ;;  %v1482_v21 = vld [vmem:[#allocation2 + $0x20] sm:$0xf] }
 0x2d6   : > { %v2731_v22 = vpop.permute.xlu1 %2730  ;;  %5022 = vrot.lane.b32.xlu0 %v6218_v61, %s5139_s20  ;;  %3857 = vmatpush1.bf16.msra.mxu0 %v3799_v63  ;;  %v2759_v62 = vsel %vm5316_vm10, %v2743_v9, 0.0  ;;  %vm6882_vm6 = vmmov %vm6878_vm13 }
 0x2d7   : > { %v2678_v20 = vrot.slane %v2664_v45, %v5624_v51  ;;  %v2744_v18 = vsel %vm6875_vm14, %v2729_v46, %v2731_v22  ;;  %3900 = vmatpush1.bf16.msra.mxu1 %v3801_v60  ;;  %v2758_v46 = vsel %vm5309_vm9, %v2742_v39, 0.0  ;;  %vm6879_vm14 = vmmov %vm6876_vm1  ;;  %vm6880_vm1 = vnez %v6776_v19 }
 0x2d8   : > { %v2733_v50 = vpop.permute.xlu0 %2732  ;;  %1318 = vrot.lane.b32.xlu1 %v1292_v30, %s5139_s20  ;;  %v2760_v28 = vsel %vm5322_vm11, %v2744_v18, 0.0  ;;  %v2774_v37 = vcombine.low %v2758_v46, %v2759_v62  ;;  %v1389_v30 = vld [vmem:[#allocation2 + $0x20] sm:$0xf]  ;;  %vm6886_vm8 = vmmov %vm6882_vm6 }
 0x2d9   : > { %v2679_v4 = vcombine.low %v2671_v56, %v2678_v20  ;;  %v2745_v57 = vsel %vm6877_vm2, %v2731_v22, %v2733_v50  ;;  %vm6881_vm2 = vnez %v6778_v26  ;;  %v4888_v56 = vpack.c.bf16 %v1482_v21, %v1482_v21  ;;  %vm6889_vm15 = vmmov %vm6882_vm6 }
 0x2da   : > { %v2761_v7 = vsel %vm5328_vm12, %v2745_v57, 0.0  ;;  %v2735_v32 = vpop.permute.xlu1 %2734  ;;  %1262 = vrot.lane.b32.xlu0 %v6222_v24, %s5143_s24  ;;  %v2784_v39 = vrot.slane %v2774_v37, %v5624_v51 }
 0x2db   : > { %2682 = vst [vmem:[#allocation5 + $0x81] ss:$8 sm:$0xf] %v2679_v4  ;;  %2683 = vst [vmem:[#allocation5 + $0x81] ss:$8 sm:$0xf0] %v2679_v4  ;;  %v2775_v44 = vcombine.low %v2760_v28, %v2761_v7  ;;  %v2746_v52 = vsel %vm6878_vm13, %v2733_v50, %v2735_v32 }
 0x2dc   : > { %v2737_v25 = vpop.permute.xlu0 %2736  ;;  %1264 = vrot.lane.b32.xlu1 %v4875_v48, %s5143_s24  ;;  %v2762_v0 = vsel %vm6880_vm1, %v2746_v52, 0.0  ;;  %s336_s24 = scalar_lea.vmem %s6713_s9, %s4853_s21 }
 0x2dd   : > { %v2747_v63 = vsel %vm6879_vm14, %v2735_v32, %v2737_v25  ;;  %v2791_v22 = vrot.slane %v2775_v44, %v5624_v51  ;;  %vm6883_vm14 = vnez %v6780_v35  ;;  %v1568_v32 = vld [vmem:[#allocation2 + $0x20] sm:$0xf]  ;;  %v5031_v44 = vpack.i.bf16 %v6198_v17, %v6157_v41 }
 0x2de   : > { %v2763_v45 = vsel %vm6881_vm2, %v2747_v63, 0.0  ;;  %v2739_v60 = vpop.permute.xlu1 %2738  ;;  %5027 = vrot.lane.b32.xlu0 %v6218_v61, %s5141_s22  ;;  %v1531_v61 = vrot.slane %v4888_v56, 6  ;;  %v5036_v46 = vpack.i.bf16 %v1568_v32, %v6205_v34  ;;  %v4332_v63 = vld [vmem:[%s6710_s5] sm:$0xff] }
 0x2df   : > { %v2776_v20 = vcombine.low %v2762_v0, %v2763_v45  ;;  %v2748_v9 = vsel %vm6878_vm13, %v2737_v25, %v2739_v60  ;;  %v2749_v18 = vsel %vm6882_vm6, %v2739_v60, %v5705_v40  ;;  %v2806_v28 = vcombine.low %v2784_v39, %v2791_v22  ;;  %vm6885_vm13 = vmmov %vm6882_vm6 }
 0x2e0   : > { %v2764_v29 = vsel %vm6883_vm14, %v2748_v9, 0.0  ;;  %v2765_v50 = vsel %vm6884_vm3, %v2749_v18, 0.0  ;;  %v2902_v4 = vpop.permute.xlu0 %2901  ;;  %1415 = vrot.lane.b32.xlu1 %v1389_v30, %s5141_s22  ;;  %v4360_v18 = vld [vmem:[%s6711_s6] sm:$0xff] }
 0x2e1   : > { %v2777_v57 = vcombine.low %v2764_v29, %v2765_v50  ;;  %v2798_v7 = vrot.slane %v2776_v20, %v5624_v51  ;;  %v2814_v25 = vrot.slane %v2806_v28, %v5624_v51 }
 0x2e2   : > { %v2900_v62 = vpop.permute.xlu1 %2899  ;;  %1538 = vrot.lane.b32.xlu0 %v966_v31, %s5146_s26 }
 0x2e3   : > { %v2805_v40 = vrot.slane %v2777_v57, %v5624_v51  ;;  %v2917_v17 = vsel %vm6885_vm13, %v2900_v62, %v2902_v4  ;;  %vm6888_vm13 = vmmov %vm6882_vm6 }
 0x2e4   : > { %v2906_v48 = vpop.permute.xlu0 %2905  ;;  %1540 = vrot.lane.b32.xlu1 %v1531_v61, %s5146_s26  ;;  %v2933_v56 = vsel %vm5309_vm9, %v2917_v17, 0.0  ;;  %v4361_v17 = vld [vmem:[%s6711_s6 + $0x8] sm:$0xff] }
 0x2e5   : > { %v2807_v52 = vcombine.low %v2798_v7, %v2805_v40 }
 0x2e6   : > { %v2904_v21 = vpop.permute.xlu1 %2903  ;;  %5032 = vrot.lane.b32.xlu0 %v5031_v44, %s5147_s27 }
 0x2e7   : > { %v2821_v37 = vrot.slane %v2807_v52, %v5624_v51  ;;  %v2918_v24 = vsel %vm6882_vm6, %v2902_v4, %v2904_v21  ;;  %v2919_v34 = vsel %vm6886_vm8, %v2904_v21, %v2906_v48  ;;  %vm6887_vm8 = vmmov %vm6882_vm6 }
 0x2e8   : > { %v2910_v31 = vpop.permute.xlu0 %2909  ;;  %5037 = vrot.lane.b32.xlu1 %v5036_v46, %s5147_s27  ;;  %v2934_v0 = vsel %vm5316_vm10, %v2918_v24, 0.0  ;;  %v2935_v22 = vsel %vm5322_vm11, %v2919_v34, 0.0 }
 0x2e9   : > { %v2822_v41 = vcombine.low %v2814_v25, %v2821_v37  ;;  %v2949_v30 = vcombine.low %v2933_v56, %v2934_v0  ;;  %v4333_v25 = vld [vmem:[%s6710_s5 + $0x8] sm:$0xff] }
 0x2ea   : > { %v2908_v45 = vpop.permute.xlu1 %2907  ;;  %4336 = vperm.xlu0 %4930, %v4332_v63  }
 0x2eb   : > { %2825 = vst [vmem:[#allocation5 + $0x82] ss:$8 sm:$0xf] %v2822_v41  ;;  %2826 = vst [vmem:[#allocation5 + $0x82] ss:$8 sm:$0xf0] %v2822_v41  ;;  %v2920_v60 = vsel %vm6882_vm6, %v2906_v48, %v2908_v45  ;;  %v2921_v29 = vsel %vm6887_vm8, %v2908_v45, %v2910_v31  ;;  %v2959_v44 = vrot.slane %v2949_v30, %v5624_v51 }
 0x2ec   : > { %v2936_v20 = vsel %vm5328_vm12, %v2920_v60, 0.0  ;;  %v2914_v9 = vpop.permute.xlu0 %2913  ;;  %v2937_v28 = vsel %vm6880_vm1, %v2921_v29, 0.0  ;;  %v4837_v48 = vld [vmem:[#allocation7] ss:$0 sm:$0xff]  ;;  %4341 = vperm.xlu1 %5041, %v4333_v25  }
 0x2ed   : > { %v2950_v50 = vcombine.low %v2935_v22, %v2936_v20  ;;  %v2924_v4 = vsel %vm6888_vm13, %v2914_v9, %v5913_v55 }
 0x2ee   : > { %v2912_v39 = vpop.permute.xlu1 %2911  ;;  %4364 = vperm.xlu0 %4930, %v4360_v18   ;;  %v2940_v7 = vsel %vm6884_vm3, %v2924_v4, 0.0 }
 0x2ef   : > { %v2966_v57 = vrot.slane %v2950_v50, %v5624_v51  ;;  %v2922_v62 = vsel %vm6882_vm6, %v2910_v31, %v2912_v39  ;;  %v2923_v61 = vsel %vm6889_vm15, %v2912_v39, %v2914_v9  ;;  %vm6890_vm15 = vcmask 523264  }
 0x2f0   : > { %v2938_v40 = vsel %vm6881_vm2, %v2922_v62, 0.0  ;;  %v2939_v55 = vsel %vm6883_vm14, %v2923_v61, 0.0  ;;  %v3075_v32 = vpop.permute.xlu0 %3074  ;;  %vm6891_vm8 = vmmov %vm6890_vm15  ;;  %4369 = vperm.xlu1 %5041, %v4361_v17  }
 0x2f1   : > { %v2951_v52 = vcombine.low %v2937_v28, %v2938_v40  ;;  %v2952_v21 = vcombine.low %v2939_v55, %v2940_v7  ;;  %v2981_v37 = vcombine.low %v2959_v44, %v2966_v57  ;;  %vm6892_vm13 = vmmov %vm6891_vm8 }
 0x2f2   : > { %v3077_v46 = vpop.permute.xlu1 %3076  ;;  %4420 = vperm.xlu0 %4930, %v4837_v48   ;;  %vm6893_vm6 = vmmov %vm6891_vm8 }
 0x2f3   : > { %v2973_v24 = vrot.slane %v2951_v52, %v5624_v51  ;;  %v2980_v31 = vrot.slane %v2952_v21, %v5624_v51  ;;  %v2989_v0 = vrot.slane %v2981_v37, %v5624_v51  ;;  %v3092_v9 = vsel %vm6892_vm13, %v3075_v32, %v3077_v46 }
 0x2f4   : > { %v3079_v63 = vpop.permute.xlu0 %3078  ;;  %v3108_v62 = vsel %vm5309_vm9, %v3092_v9, 0.0  ;;  %vm6898_vm9 = vcmask 769024  }
 0x2f5   : > { %v2982_v41 = vcombine.low %v2973_v24, %v2980_v31  ;;  %v3093_v60 = vsel %vm6890_vm15, %v3077_v46, %v3079_v63  ;;  %vm6894_vm15 = vmmov %vm6893_vm6 }
 0x2f6   : > { %v3081_v34 = vpop.permute.xlu1 %3080  ;;  %v3109_v30 = vsel %vm5316_vm10, %v3093_v60, 0.0  ;;  %vm6896_vm10 = vmmov %vm6893_vm6 }
 0x2f7   : > { %v2996_v45 = vrot.slane %v2982_v41, %v5624_v51  ;;  %v3094_v56 = vsel %vm6891_vm8, %v3079_v63, %v3081_v34  ;;  %v3124_v28 = vcombine.low %v3108_v62, %v3109_v30  ;;  %vm6895_vm8 = vmmov %vm6893_vm6 }
 0x2f8   : > { %v3083_v22 = vpop.permute.xlu0 %3082  ;;  %v3110_v29 = vsel %vm5322_vm11, %v3094_v56, 0.0  ;;  %vm6897_vm11 = vmmov %vm6893_vm6 }
 0x2f9   : > { %v2997_v20 = vcombine.low %v2989_v0, %v2996_v45  ;;  %v3095_v18 = vsel %vm6893_vm6, %v3081_v34, %v3083_v22  ;;  %v3134_v21 = vrot.slane %v3124_v28, %v5624_v51  ;;  %vm6900_vm13 = vmmov %vm6898_vm9 }
 0x2fa   : > { %v3111_v50 = vsel %vm5328_vm12, %v3095_v18, 0.0  ;;  %v3085_v4 = vpop.permute.xlu1 %3084  ;;  %vm6899_vm12 = vmmov %vm6898_vm9 }
 0x2fb   : > { %3000 = vst [vmem:[#allocation5 + $0x85] ss:$8 sm:$0xf] %v2997_v20  ;;  %3001 = vst [vmem:[#allocation5 + $0x85] ss:$8 sm:$0xf0] %v2997_v20  ;;  %v3125_v39 = vcombine.low %v3110_v29, %v3111_v50  ;;  %v3096_v57 = vsel %vm6894_vm15, %v3083_v22, %v3085_v4 }
 0x2fc   : > { %v3087_v61 = vpop.permute.xlu0 %3086  ;;  %v3112_v12 = vsel %vm6880_vm1, %v3096_v57, 0.0  ;;  %vm6901_vm6 = vmmov %vm6898_vm9 }
 0x2fd   : > { %v3097_v11 = vsel %vm6895_vm8, %v3085_v4, %v3087_v61  ;;  %v3141_v40 = vrot.slane %v3125_v39, %v5624_v51  ;;  %vm6902_vm15 = vmmov %vm6901_vm6 }
 0x2fe   : > { %v3113_v13 = vsel %vm6881_vm2, %v3097_v11, 0.0  ;;  %v3089_v7 = vpop.permute.xlu1 %3088  ;;  %vm6903_vm8 = vmmov %vm6901_vm6 }
 0x2ff   : > { %v3126_v55 = vcombine.low %v3112_v12, %v3113_v13  ;;  %v3098_v32 = vsel %vm6896_vm10, %v3087_v61, %v3089_v7  ;;  %v3099_v5 = vsel %vm6897_vm11, %v3089_v7, %v5711_v54  ;;  %v3156_v37 = vcombine.low %v3134_v21, %v3141_v40  ;;  %vm6904_vm10 = vmmov %vm6901_vm6 }
 0x300   : > { %v3114_v48 = vsel %vm6883_vm14, %v3098_v32, 0.0  ;;  %v3115_v44 = vsel %vm6884_vm3, %v3099_v5, 0.0  ;;  %v3285_v52 = vpop.permute.xlu0 %3284  ;;  %vm6905_vm11 = vmmov %vm6901_vm6 }
 0x301   : > { %v3127_v46 = vcombine.low %v3114_v48, %v3115_v44  ;;  %v3148_v24 = vrot.slane %v3126_v55, %v5624_v51  ;;  %v3164_v54 = vrot.slane %v3156_v37, %v5624_v51 }
 0x302   : > { %v3283_v25 = vpop.permute.xlu1 %3282 }
 0x303   : > { %v3155_v31 = vrot.slane %v3127_v46, %v5624_v51  ;;  %v3300_v56 = vsel %vm6899_vm12, %v3283_v25, %v3285_v52  ;;  %vm6907_vm12 = vnez %v6844_v10 }
 0x304   : > { %v3289_v63 = vpop.permute.xlu0 %3288  ;;  %v3316_v30 = vsel %vm6848_vm4, %v3300_v56, 0.0 }
 0x305   : > { %v3157_v41 = vcombine.low %v3148_v24, %v3155_v31 }
 0x306   : > { %v3287_v17 = vpop.permute.xlu1 %3286 }
 0x307   : > { %v3171_v34 = vrot.slane %v3157_v41, %v5624_v51  ;;  %v3301_v0 = vsel %vm6898_vm9, %v3285_v52, %v3287_v17  ;;  %v3302_v22 = vsel %vm6900_vm13, %v3287_v17, %v3289_v63  ;;  %vm6906_vm9 = vnez %v6858_v33 }
 0x308   : > { %v3293_v45 = vpop.permute.xlu0 %3292  ;;  %v3317_v20 = vsel %vm5452_vm0, %v3301_v0, 0.0  ;;  %v3318_v29 = vsel %vm6849_vm5, %v3302_v22, 0.0  ;;  %vm6908_vm13 = vnez %v6847_v36  ;;  %v5058_v36 = vld [vmem:[%s6708_s3] sm:$0xff]  }
 0x309   : > { %v3172_v60 = vcombine.low %v3164_v54, %v3171_v34  ;;  %v3332_v39 = vcombine.low %v3316_v30, %v3317_v20 }
 0x30a   : > { %v3291_v9 = vpop.permute.xlu1 %3290 }
 0x30b   : > { %3175 = vst [vmem:[#allocation5 + $0xc0] ss:$8 sm:$0xf] %v3172_v60  ;;  %3176 = vst [vmem:[#allocation5 + $0xc0] ss:$8 sm:$0xf0] %v3172_v60  ;;  %v3303_v18 = vsel %vm6901_vm6, %v3289_v63, %v3291_v9  ;;  %v3304_v57 = vsel %vm6902_vm15, %v3291_v9, %v3293_v45  ;;  %vm6909_vm6 = vnez %v6853_v3  ;;  %v3342_v5 = vrot.slane %v3332_v39, %v5624_v51 }
 0x30c   : > { %v3319_v50 = vsel %vm6850_vm7, %v3303_v18, 0.0  ;;  %v3297_v4 = vpop.permute.xlu0 %3296  ;;  %v3320_v7 = vsel %vm6906_vm9, %v3304_v57, 0.0  ;;  %vm6910_vm15 = vmmov %vm6903_vm8 }
 0x30d   : > { %v3333_v62 = vcombine.low %v3318_v29, %v3319_v50  ;;  %v3307_v61 = vsel %vm6903_vm8, %v3297_v4, %v5922_v1 }
 0x30e   : > { %v3295_v28 = vpop.permute.xlu1 %3294  ;;  %v3323_v40 = vsel %vm6907_vm12, %v3307_v61, 0.0 }
 0x30f   : > { %v3349_v11 = vrot.slane %v3333_v62, %v5624_v51  ;;  %v3305_v12 = vsel %vm6904_vm10, %v3293_v45, %v3295_v28  ;;  %v3306_v13 = vsel %vm6905_vm11, %v3295_v28, %v3297_v4  ;;  %vm6911_vm10 = vmmov %vm6903_vm8 }
 0x310   : > { %v3321_v55 = vsel %vm6908_vm13, %v3305_v12, 0.0  ;;  %v3322_v32 = vsel %vm6909_vm6, %v3306_v13, 0.0  ;;  %v3458_v1 = vpop.permute.xlu0 %3457  ;;  %vm6912_vm11 = vmmov %vm6903_vm8 }
 0x311   : > { %v3334_v48 = vcombine.low %v3320_v7, %v3321_v55  ;;  %v3335_v44 = vcombine.low %v3322_v32, %v3323_v40  ;;  %v3364_v21 = vcombine.low %v3342_v5, %v3349_v11  ;;  %v3776_v5 = vld [vmem:[#allocation5 + $0x88] sm:$0xff] }
 0x312   : > { %v3460_v52 = vpop.permute.xlu1 %3459 }
 0x313   : > { %v3356_v46 = vrot.slane %v3334_v48, %v5624_v51  ;;  %v3363_v25 = vrot.slane %v3335_v44, %v5624_v51  ;;  %v3372_v41 = vrot.slane %v3364_v21, %v5624_v51  ;;  %v3475_v34 = vsel %vm6911_vm10, %v3458_v1, %v3460_v52  ;;  %vm6914_vm10 = vmmov %vm6903_vm8  ;;  %v3778_v48 = vld [vmem:[#allocation5 + $0x98] sm:$0xff] }
 0x314   : > { %v3462_v37 = vpop.permute.xlu0 %3461  ;;  %v3491_v18 = vsel %vm6848_vm4, %v3475_v34, 0.0 }
 0x315   : > { %v3365_v24 = vcombine.low %v3356_v46, %v3363_v25  ;;  %v3476_v31 = vsel %vm6910_vm15, %v3460_v52, %v3462_v37  ;;  %vm6913_vm15 = vmmov %vm6903_vm8 }
 0x316   : > { %v3464_v63 = vpop.permute.xlu1 %3463  ;;  %v3492_v60 = vsel %vm5452_vm0, %v3476_v31, 0.0 }
 0x317   : > { %v3379_v17 = vrot.slane %v3365_v24, %v5624_v51  ;;  %v3477_v54 = vsel %vm6903_vm8, %v3462_v37, %v3464_v63  ;;  %v3507_v50 = vcombine.low %v3491_v18, %v3492_v60 }
 0x318   : > { %v3466_v0 = vpop.permute.xlu0 %3465  ;;  %v3493_v22 = vsel %vm6849_vm5, %v3477_v54, 0.0 }
 0x319   : > { %v3380_v45 = vcombine.low %v3372_v41, %v3379_v17  ;;  %v3478_v56 = vsel %vm6912_vm11, %v3464_v63, %v3466_v0  ;;  %vm6915_vm11 = vmmov %vm6903_vm8  ;;  %v3517_v7 = vrot.slane %v3507_v50, %v5624_v51  ;;  %v3775_v63 = vld [vmem:[#allocation5 + $0x80] sm:$0xff]  ;;  %v3777_v41 = vld [vmem:[#allocation5 + $0x90] sm:$0xff] }
 0x31a   : > { %v3494_v20 = vsel %vm6850_vm7, %v3478_v56, 0.0  ;;  %v3468_v9 = vpop.permute.xlu1 %3467 }
 0x31b   : > { %3383 = vst [vmem:[#allocation5 + $0xc5] ss:$8 sm:$0xf] %v3380_v45  ;;  %3384 = vst [vmem:[#allocation5 + $0xc5] ss:$8 sm:$0xf0] %v3380_v45  ;;  %v3508_v30 = vcombine.low %v3493_v22, %v3494_v20  ;;  %v3479_v29 = vsel %vm6913_vm15, %v3466_v0, %v3468_v9 }
 0x31c   : > { %v3470_v4 = vpop.permute.xlu0 %3469  ;;  %v3495_v62 = vsel %vm6906_vm9, %v3479_v29, 0.0  ;;  %vm1596_vm15 = vcmask 506880  }
 0x31d   : > { %v3480_v39 = vsel %vm6903_vm8, %v3468_v9, %v3470_v4  ;;  %v3524_v57 = vrot.slane %v3508_v30, %v5624_v51  ;;  %vm6916_vm8 = vcmask 1043456  }
 0x31e   : > { %v3496_v61 = vsel %vm6908_vm13, %v3480_v39, 0.0  ;;  %v3472_v28 = vpop.permute.xlu1 %3471 }
 0x31f   : > { %v3509_v11 = vcombine.low %v3495_v62, %v3496_v61  ;;  %v3481_v12 = vsel %vm6914_vm10, %v3470_v4, %v3472_v28  ;;  %v3482_v13 = vsel %vm6915_vm11, %v3472_v28, %v5812_v59  ;;  %v3539_v44 = vcombine.low %v3517_v7, %v3524_v57  ;;  %vm6918_vm11 = vmmov %vm6916_vm8 }
 0x320   : > { %v3497_v40 = vsel %vm6909_vm6, %v3481_v12, 0.0  ;;  %v3498_v55 = vsel %vm6907_vm12, %v3482_v13, 0.0  ;;  %v3635_v32 = vpop.permute.xlu0 %3634  ;;  %vm6917_vm10 = vcmask 515072  }
 0x321   : > { %v3510_v1 = vcombine.low %v3497_v40, %v3498_v55  ;;  %v3531_v37 = vrot.slane %v3509_v11, %v5624_v51  ;;  %v3547_v56 = vrot.slane %v3539_v44, %v5624_v51 }
 0x322   : > { %v3633_v52 = vpop.permute.xlu1 %3632  ;;  %v3784_v21 = vld [vmem:[#allocation5 + $0xc8] sm:$0xff]  ;;  %v3786_v46 = vld [vmem:[#allocation5 + $0xd8] sm:$0xff]  ;;  %v3783_v25 = vld [vmem:[#allocation5 + $0xc0] sm:$0xff] }
 0x323   : > { %v3538_v59 = vrot.slane %v3510_v1, %v5624_v51  ;;  %v3808_v24 = vpack.c.bf16 %v3784_v21, %v3776_v5  ;;  %v3810_v31 = vpack.c.bf16 %v3786_v46, %v3778_v48  ;;  %v3785_v17 = vld [vmem:[#allocation5 + $0xd0] sm:$0xff]  ;;  %v3807_v34 = vpack.c.bf16 %v3783_v25, %v3775_v63 }
 0x324   : > { %v3639_v54 = vpop.permute.xlu0 %3638  ;;  %v3809_v0 = vpack.c.bf16 %v3785_v17, %v3777_v41  ;;  %v3650_v20 = vsel %vm1596_vm15, %v3633_v52, %v3635_v32 }
 0x325   : > { %v3540_v45 = vcombine.low %v3531_v37, %v3538_v59  ;;  %3858 = vmatprep.subr.bf16.mxu0 %v3808_v24  ;;  %3901 = vmatprep.subr.bf16.mxu1 %v3810_v31  ;;  %v3666_v4 = vsel %vm6848_vm4, %v3650_v20, 0.0 }
 0x326   : > { %3859 = vmatpush1.bf16.msra.mxu0 %v3807_v34  ;;  %3902 = vmatpush1.bf16.msra.mxu1 %v3809_v0  ;;  %v3637_v60 = vpop.permute.xlu1 %3636 }
 0x327   : > { %v3554_v22 = vrot.slane %v3540_v45, %v5624_v51  ;;  %v3651_v9 = vsel %vm1596_vm15, %v3635_v32, %v3637_v60  ;;  %v3652_v50 = vsel %vm1596_vm15, %v3637_v60, %v3639_v54  ;;  %v4970_v45 = vunpack.i.h.bf16 %v5446_v49 }
 0x328   : > { %v3667_v18 = vsel %vm5452_vm0, %v3651_v9, 0.0  ;;  %v3643_v30 = vpop.permute.xlu0 %3642  ;;  %v3668_v61 = vsel %vm6849_vm5, %v3652_v50, 0.0  ;;  %v4980_v60 = vunpack.i.h.bf16 %v5481_v6 }
 0x329   : > { %v3555_v29 = vcombine.low %v3547_v56, %v3554_v22  ;;  %v3682_v57 = vcombine.low %v3666_v4, %v3667_v18 }
 0x32a   : > { %v3641_v39 = vpop.permute.xlu1 %3640 }
 0x32b   : > { %3558 = vst [vmem:[#allocation5 + $0x100] ss:$8 sm:$0xf] %v3555_v29  ;;  %3559 = vst [vmem:[#allocation5 + $0x100] ss:$8 sm:$0xf0] %v3555_v29  ;;  %v3653_v62 = vsel %vm1596_vm15, %v3639_v54, %v3641_v39  ;;  %v3654_v12 = vsel %vm1596_vm15, %v3641_v39, %v3643_v30  ;;  %v3692_v55 = vrot.slane %v3682_v57, %v5624_v51 }
 0x32c   : > { %v3669_v28 = vsel %vm6850_vm7, %v3653_v62, 0.0  ;;  %v3647_v11 = vpop.permute.xlu0 %3646  ;;  %v3670_v48 = vsel %vm6906_vm9, %v3654_v12, 0.0  ;;  %v6922_v12 = vunpack.i.l.bf16 %v5481_v6 }
 0x32d   : > { %v3683_v13 = vcombine.low %v3668_v61, %v3669_v28  ;;  %v3657_v7 = vsel %vm1596_vm15, %v3647_v11, %v5931_v27  ;;  %v6920_v28 = vunpack.i.l.bf16 %v5446_v49 }
 0x32e   : > { %v3645_v40 = vpop.permute.xlu1 %3644  ;;  %v3673_v44 = vsel %vm6907_vm12, %v3657_v7, 0.0 }
 0x32f   : > { %v3699_v32 = vrot.slane %v3683_v13, %v5624_v51  ;;  %v3655_v1 = vsel %vm1596_vm15, %v3643_v30, %v3645_v40  ;;  %v3656_v5 = vsel %vm1596_vm15, %v3645_v40, %v3647_v11 }
 0x330   : > { %v3671_v52 = vsel %vm6908_vm13, %v3655_v1, 0.0  ;;  %v3672_v27 = vsel %vm6909_vm6, %v3656_v5, 0.0  ;;  %v1533_v21 = vpop.permute.xlu0 %1532 }
 0x331   : > { %v3684_v46 = vcombine.low %v3670_v48, %v3671_v52  ;;  %v3685_v25 = vcombine.low %v3672_v27, %v3673_v44  ;;  %v3714_v37 = vcombine.low %v3692_v55, %v3699_v32  ;;  %v1542_v63 = vrot.slane %v1533_v21, 4 }
 0x332   : > { %v1535_v59 = vpop.permute.xlu1 %1534 }
 0x333   : > { %v3706_v24 = vrot.slane %v3684_v46, %v5624_v51  ;;  %v3713_v31 = vrot.slane %v3685_v25, %v5624_v51  ;;  %v1543_v41 = vrot.slane %v1535_v59, 4  ;;  %v3722_v56 = vrot.slane %v3714_v37, %v5624_v51 }
 0x334   : > { %v6476_v17 = vpop.permute.xlu0 %1536 }
 0x335   : > { %v3715_v54 = vcombine.low %v3706_v24, %v3713_v31  ;;  %v1547_v34 = vsel %vm6916_vm8, %v1542_v63, %v1543_v41  ;;  %v1544_v0 = vrot.slane %v6476_v17, 4  ;;  %vm6919_vm8 = vmmov %vm6917_vm10 }
 0x336   : > { %v1549_v22 = vsel %vm6917_vm10, %v1533_v21, %v1547_v34  ;;  %v5003_v20 = vpop.permute.xlu1 %5002  ;;  %vm6921_vm10 = vcmask 785408   ;;  %v3772_v34 = vld [vmem:[#allocation5 + $0x68] sm:$0xff] }
 0x337   : > { %v3729_v9 = vrot.slane %v3715_v54, %v5624_v51  ;;  %1560 = vst [vmem:[#allocation4 + $0x60] sm:$0xcc] %v1549_v22  ;;  %v1550_v18 = vsel %vm6918_vm11, %v1543_v41, %v1544_v0  ;;  %v5005_v30 = vunpack.i.h.bf16 %v5003_v20  ;;  %v5004_v29 = vunpack.i.l.bf16 %v5003_v20 }
 0x338   : > { %v1551_v50 = vsel %vm6919_vm8, %v1535_v59, %v1550_v18  ;;  %v5008_v4 = vpop.permute.xlu0 %5007  ;;  %v1147_v51 = vsel %vm6921_vm10, %v6920_v28, %v4970_v45  ;;  %vm6923_vm11 = vcmask 1031168  }
 0x339   : > { %v3730_v39 = vcombine.low %v3722_v56, %v3729_v9  ;;  %1561 = vst [vmem:[#allocation4 + $0x68] sm:$0xcc] %v1551_v50  ;;  %v1597_v57 = vsel %vm1596_vm15, %v5004_v29, %v5005_v30  ;;  %v5010_v62 = vunpack.i.h.bf16 %v5008_v4  ;;  %v5009_v61 = vunpack.i.l.bf16 %v5008_v4 }
 0x33a   : > { %v6493_v11 = vpop.permute.xlu1 %1586  ;;  %v6500_v13 = vsel %vm6923_vm11, %v6922_v12, %v4980_v60  ;;  %v1613_v55 = vsel %vm6848_vm4, %v1597_v57, 0.0  ;;  %v1163_v25 = vsel %vm6880_vm1, %v1147_v51, 0.0  ;;  %vm6924_vm4 = vmmov %vm6921_vm10  ;;  %v6927_v29 = vrot.slane %v5548_v42, 4  ;;  %v3774_v57 = vld [vmem:[#allocation5 + $0x78] sm:$0xff] }
 0x33b   : > { %3733 = vst [vmem:[#allocation5 + $0x103] ss:$8 sm:$0xf] %v3730_v39  ;;  %3734 = vst [vmem:[#allocation5 + $0x103] ss:$8 sm:$0xf0] %v3730_v39  ;;  %v1598_v7 = vsel %vm1596_vm15, %v5005_v30, %v5009_v61  ;;  %v1599_v40 = vsel %vm1596_vm15, %v5009_v61, %v5010_v62  ;;  %v1600_v49 = vsel %vm1596_vm15, %v5010_v62, %v6493_v11 }
 0x33c   : > { %v1614_v32 = vsel %vm5452_vm0, %v1598_v7, 0.0  ;;  %v1615_v1 = vsel %vm6849_vm5, %v1599_v40, 0.0  ;;  %v1616_v5 = vsel %vm6850_vm7, %v1600_v49, 0.0  ;;  %v5013_v48 = vpop.permute.xlu0 %5012  ;;  %vm6925_vm0 = vmmov %vm6924_vm4  ;;  %v1070_v23 = vsel %vm6906_vm9, %v6500_v13, 0.0 }
 0x33d   : > { %v4889_v44 = vpack.c.bf16 %v1614_v32, %v1613_v55  ;;  %v4890_v52 = vpack.c.bf16 %v1616_v5, %v1615_v1  ;;  %v5015_v27 = vunpack.i.h.bf16 %v5013_v48  ;;  %v5014_v21 = vunpack.i.l.bf16 %v5013_v48  ;;  %vm6926_vm8 = vmmov %vm6925_vm0  ;;  %v3764_v55 = vld [vmem:[#allocation5 + $0x28] sm:$0xff]  ;;  %v3766_v32 = vld [vmem:[#allocation5 + $0x38] sm:$0xff] }
 0x33e   : > { %v1141_v46 = vpop.permute.xlu1 %1140  ;;  %vm3828_vm5 = vcmask 293888   ;;  %vm6928_vm7 = vcmask 1043456   ;;  %vm6929_vm10 = vcmask 1039360   ;;  %v3804_v48 = vpack.c.bf16 %v3772_v34, %v3764_v55 }
 0x33f   : > { %1653 = vst [vmem:[#allocation4 + $0x80] sm:$0x33] %v4889_v44  ;;  %1654 = vst [vmem:[#allocation4 + $0x88] sm:$0x33] %v4890_v52  ;;  %v1148_v47 = vsel %vm6924_vm4, %v4970_v45, %v5014_v21  ;;  %v1149_v53 = vsel %vm6925_vm0, %v5014_v21, %v5015_v27  ;;  %v1150_v58 = vsel %vm6926_vm8, %v5015_v27, %v1141_v46  ;;  %v4990_v45 = vunpack.i.h.bf16 %v5502_v43  ;;  %v6542_v52 = vld [vmem:[%s6709_s4] sm:$0xff]   ;;  %v3771_v27 = vld [vmem:[#allocation5 + $0x60] sm:$0xff] }
 0x340   : > { %v1164_v37 = vsel %vm6881_vm2, %v1148_v47, 0.0  ;;  %v1165_v59 = vsel %vm6883_vm14, %v1149_v53, 0.0  ;;  %v1166_v24 = vsel %vm6884_vm3, %v1150_v58, 0.0  ;;  %v975_v31 = vpop.permute.xlu0 %974  ;;  %vm6930_vm11 = vmmov %vm6928_vm7  ;;  %vm6932_vm0 = vcmask 1041408   ;;  %v3763_v53 = vld [vmem:[#allocation5 + $0x20] sm:$0xff]  ;;  %v3773_v58 = vld [vmem:[#allocation5 + $0x70] sm:$0xff] }
 0x341   : > { %v4869_v63 = vpack.c.bf16 %v1164_v37, %v1163_v25  ;;  %v4870_v41 = vpack.c.bf16 %v1166_v24, %v1165_v59  ;;  %v981_v54 = vrot.slane %v975_v31, 4  ;;  %vm6931_vm4 = vmmov %vm6929_vm10  ;;  %v3806_v44 = vpack.c.bf16 %v3774_v57, %v3766_v32  ;;  %v3788_v37 = vld [vmem:[#allocation5 + $0xe8] sm:$0xff] }
 0x342   : > { %v977_v56 = vpop.permute.xlu1 %976  ;;  %v3792_v22 = vld [vmem:[#allocation5 + $0x108] sm:$0xf]  ;;  %v3794_v20 = vld [vmem:[#allocation5 + $0x118] sm:$0xf]  ;;  %v3791_v9 = vld [vmem:[#allocation5 + $0x100] sm:$0xf]  ;;  %v6939_v59 = vunpack.i.l.bf16 %v5502_v43 }
 0x343   : > { %v1197_v18 = vrot.slane %v4869_v63, 6  ;;  %v1198_v30 = vrot.slane %v4870_v41, 6  ;;  %v989_v50 = vsel %vm6928_vm7, %v6927_v29, %v981_v54  ;;  %v982_v4 = vrot.slane %v977_v56, 4  ;;  %v3793_v39 = vld [vmem:[#allocation5 + $0x110] sm:$0xf]  ;;  %vm6933_vm8 = vmmov %vm6932_vm0  ;;  %v3790_v63 = vld [vmem:[#allocation5 + $0xf8] sm:$0xff] }
 0x344   : > { %v990_v62 = vsel %vm6929_vm10, %v5548_v42, %v989_v50  ;;  %v5018_v61 = vpop.permute.xlu0 %5017  ;;  %v3816_v28 = vpack.c.bf16 %v3792_v22, %v3792_v22  ;;  %v3818_v51 = vpack.c.bf16 %v3794_v20, %v3794_v20  ;;  %v3815_v12 = vpack.c.bf16 %v3791_v9, %v3791_v9  ;;  %vm6934_vm7 = vmmov %vm6932_vm0  ;;  %v3787_v41 = vld [vmem:[#allocation5 + $0xe0] sm:$0xff]  ;;  %v3765_v9 = vld [vmem:[#allocation5 + $0x30] sm:$0xff] }
 0x345   : > { %1205 = vst [vmem:[#allocation4 + $0x30] sm:$0xcc] %v1197_v18  ;;  %1206 = vst [vmem:[#allocation4 + $0x38] sm:$0xcc] %v1198_v30  ;;  %v991_v13 = vsel %vm6930_vm11, %v981_v54, %v982_v4  ;;  %v5020_v7 = vunpack.i.h.bf16 %v5018_v61  ;;  %v5019_v40 = vunpack.i.l.bf16 %v5018_v61  ;;  %v3817_v49 = vpack.c.bf16 %v3793_v39, %v3793_v39  ;;  %v3789_v54 = vld [vmem:[#allocation5 + $0xf0] sm:$0xff]  ;;  %v3780_v18 = vld [vmem:[#allocation5 + $0xa8] sm:$0xff] }
 0x346   : > { %999 = vst [vmem:[#allocation4 + $0x10] sm:$0xcc] %v990_v62  ;;  %v992_v1 = vsel %vm6931_vm4, %v975_v31, %v991_v13  ;;  %4796 = vmatprep.subr.msk.bf16.mxu0 %vm6932_vm0, %v3816_v28  ;;  %4798 = vmatprep.subr.msk.bf16.mxu1 %vm6933_vm8, %v3818_v51  ;;  %v3833_v42 = vsel %vm6934_vm7, %v3815_v12, 0  ;;  %v1048_v5 = vpop.permute.xlu1 %1047  ;;  %vm6935_vm10 = vcmask 1031168   ;;  %vm6936_vm11 = vmmov %vm6932_vm0  ;;  %vm6940_vm8 = vcmask 769024   ;;  %v3782_v30 = vld [vmem:[#allocation5 + $0xb8] sm:$0xff] }
 0x347   : > { %1000 = vst [vmem:[#allocation4 + $0x18] sm:$0xcc] %v992_v1  ;;  %v1055_v21 = vsel %vm6935_vm10, %v4980_v60, %v5019_v40  ;;  %3861 = vmatpush1.bf16.msra.mxu0 %v3833_v42  ;;  %v3839_v46 = vsel %vm6936_vm11, %v3817_v49, 0  ;;  %vm6937_vm4 = vmmov %vm6935_vm10  ;;  %v1325_v24 = vsel %vm6940_vm8, %v6939_v59, %v4990_v45  ;;  %v3803_v20 = vpack.c.bf16 %v3771_v27, %v3763_v53  ;;  %v3779_v62 = vld [vmem:[#allocation5 + $0xa0] sm:$0xff]  ;;  %v3781_v61 = vld [vmem:[#allocation5 + $0xb0] sm:$0xff] }
 0x348   : > { %v1056_v25 = vsel %vm6937_vm4, %v5019_v40, %v5020_v7  ;;  %vm6938_vm0 = vmmov %vm6937_vm4  ;;  %v1071_v6 = vsel %vm6908_vm13, %v1055_v21, 0.0  ;;  %3904 = vmatpush1.bf16.msra.mxu1 %v3839_v46  ;;  %3942 = vmatprep.subr.bf16.mxu0 %v3804_v48  ;;  %v5023_v22 = vpop.permute.xlu0 %5022  ;;  %v3805_v4 = vpack.c.bf16 %v3773_v58, %v3765_v9  ;;  %v3812_v57 = vpack.c.bf16 %v3788_v37, %v3780_v18  ;;  %v3796_v28 = vld [vmem:[#allocation5 + $0x128] sm:$0xf]  ;;  %v3798_v1 = vld [vmem:[#allocation5 + $0x138] sm:$0xf] }
 0x349   : > { %v1057_v47 = vsel %vm6938_vm0, %v5020_v7, %v1048_v5  ;;  %v1072_v60 = vsel %vm6909_vm6, %v1056_v25, 0.0  ;;  %v4865_v34 = vpack.c.bf16 %v1071_v6, %v1070_v23  ;;  %3985 = vmatprep.subr.bf16.mxu1 %v3806_v44  ;;  %v5025_v29 = vunpack.i.h.bf16 %v5023_v22  ;;  %v3795_v7 = vld [vmem:[#allocation5 + $0x120] sm:$0xf]  ;;  %vm6941_vm7 = vmmov %vm6940_vm8  ;;  %v3797_v42 = vld [vmem:[#allocation5 + $0x130] sm:$0xf] }
 0x34a   : > { %v1073_v31 = vsel %vm6907_vm12, %v1057_v47, 0.0  ;;  %v5024_v50 = vunpack.i.l.bf16 %v5023_v22  ;;  %4797 = vmatmul.mubr.msk.bf16.vlgmr.msra.gmra.mrb[8].mxu0 %vm3828_vm5, %v6542_v52  ;;  %v1319_v39 = vpop.permute.xlu1 %1318  ;;  %v1341_v23 = vsel %vm6906_vm9, %v1325_v24, 0.0  ;;  %v3814_v51 = vpack.c.bf16 %v3790_v63, %v3782_v30  ;;  %vm6942_vm10 = vmmov %vm6941_vm7  ;;  %v3737_v58 = vld [vmem:[#allocation4] sm:$0xff] }
 0x34b   : > { %v4866_v56 = vpack.c.bf16 %v1073_v31, %v1072_v60  ;;  %1108 = vst [vmem:[#allocation4 + $0x30] sm:$0x33] %v4865_v34  ;;  %4799 = vmatmul.mubr.msk.bf16.vlgmr.msra.gmra.mrb[8].mxu1 %vm3828_vm5, %v6542_v52  ;;  %3943 = vmatpush1.bf16.msra.mxu0 %v3803_v20  ;;  %v3811_v12 = vpack.c.bf16 %v3787_v41, %v3779_v62  ;;  %v5000_v40 = vunpack.i.h.bf16 %v5516_v2  ;;  %vm6943_vm11 = vmmov %vm6941_vm7  ;;  %v6944_v27 = vmov 0   ;;  %v3741_v37 = vld [vmem:[#allocation4 + $0x20] sm:$0xff]  ;;  %v3742_v34 = vld [vmem:[#allocation4 + $0x28] sm:$0xff] }
 0x34c   : > { %v3813_v13 = vpack.c.bf16 %v3789_v54, %v3781_v61  ;;  %v1326_v49 = vsel %vm6941_vm7, %v4990_v45, %v5024_v50  ;;  %3986 = vmatpush1.bf16.msra.mxu1 %v3805_v4  ;;  %v1327_v55 = vsel %vm6942_vm10, %v5024_v50, %v5025_v29  ;;  %v1328_v32 = vsel %vm6943_vm11, %v5025_v29, %v1319_v39  ;;  %v1263_v43 = vpop.permute.xlu0 %1262  ;;  %v3738_v54 = vld [vmem:[#allocation4 + $0x8] sm:$0xff]  ;;  %v3749_v61 = vld [vmem:[#allocation4 + $0x60] sm:$0xff] }
 0x34d   : > { %1109 = vst [vmem:[#allocation4 + $0x38] sm:$0x33] %v4866_v56  ;;  %3944 = vmatprep.subr.bf16.mxu0 %v3812_v57  ;;  %v1342_v5 = vsel %vm6908_vm13, %v1326_v49, 0.0  ;;  %v1343_v48 = vsel %vm6909_vm6, %v1327_v55, 0.0  ;;  %v1344_v44 = vsel %vm6907_vm12, %v1328_v32, 0.0  ;;  %3987 = vmatprep.subr.bf16.mxu1 %v3814_v51  ;;  %v3820_v45 = vpack.c.bf16 %v3796_v28, %v3796_v28 }
 0x34e   : > { %3974 = vmatprep.mubr.bf16.mxu0 %v6944_v27  ;;  %v4878_v21 = vpack.c.bf16 %v1342_v5, %v1341_v23  ;;  %v4879_v46 = vpack.c.bf16 %v1344_v44, %v1343_v48  ;;  %v1269_v25 = vrot.slane %v1263_v43, 4  ;;  %v1265_v47 = vpop.permute.xlu1 %1264  ;;  %v3819_v53 = vpack.c.bf16 %v3795_v7, %v3795_v7  ;;  %4017 = vmatprep.mubr.bf16.mxu1 %v6944_v27  ;;  %v3740_v33 = vld [vmem:[#allocation4 + $0x18] sm:$0xff] }
 0x34f   : > { %3945 = vmatpush1.bf16.msra.mxu0 %v3811_v12  ;;  %v1270_v59 = vrot.slane %v1265_v47, 4  ;;  %v3822_v24 = vpack.c.bf16 %v3798_v1, %v3798_v1  ;;  %v3821_v6 = vpack.c.bf16 %v3797_v42, %v3797_v42  ;;  %v6945_v63 = vrot.slane %v5539_v8, 4  ;;  %v3753_v1 = vld [vmem:[#allocation4 + $0x80] sm:$0x33] }
 0x350   : > { %v1375_v60 = vrot.slane %v4878_v21, 6  ;;  %v1376_v31 = vrot.slane %v4879_v46, 6  ;;  %vm6946_vm4 = vcmask 1043456   ;;  %3988 = vmatpush1.bf16.msra.mxu1 %v3813_v13  ;;  %vm6947_vm0 = vcmask 1041408   ;;  %v5028_v18 = vpop.permute.xlu0 %5027  ;;  %v3750_v13 = vld [vmem:[#allocation4 + $0x68] sm:$0xff] }
 0x351   : > { %v1276_v41 = vsel %vm6946_vm4, %v6945_v63, %v1269_v25  ;;  %4800 = vmatprep.subr.msk.bf16.mxu0 %vm6947_vm0, %v3820_v45  ;;  %v6948_v56 = vunpack.i.l.bf16 %v5516_v2  ;;  %vm6949_vm8 = vcmask 523264   ;;  %vm6950_vm7 = vcmask 777216   ;;  %vm6951_vm10 = vmmov %vm6946_vm4  ;;  %v3754_v46 = vld [vmem:[#allocation4 + $0x88] sm:$0x33] }
 0x352   : > { %v1277_v20 = vsel %vm6950_vm7, %v5539_v8, %v1276_v41  ;;  %v1278_v9 = vsel %vm6951_vm10, %v1269_v25, %v1270_v59  ;;  %vm6952_vm11 = vmmov %vm6947_vm0  ;;  %v4806_v30 = vcombine.high %v3737_v58, %v3741_v37  ;;  %1383 = vst [vmem:[#allocation4 + $0x50] sm:$0xcc] %v1375_v60  ;;  %v5030_v50 = vunpack.i.h.bf16 %v5028_v18  ;;  %v1416_v39 = vpop.permute.xlu1 %1415  ;;  %v3743_v41 = vld [vmem:[#allocation4 + $0x30] sm:$0xff] }
 0x353   : > { %v1422_v22 = vsel %vm6949_vm8, %v6948_v56, %v5000_v40  ;;  %4802 = vmatprep.subr.msk.bf16.mxu1 %vm6952_vm11, %v3822_v24  ;;  %1384 = vst [vmem:[#allocation4 + $0x58] sm:$0xcc] %v1376_v31  ;;  %1286 = vst [vmem:[#allocation4 + $0x50] sm:$0x33] %v1277_v20  ;;  %v5029_v4 = vunpack.i.l.bf16 %v5028_v18  ;;  %v3845_v2 = vsel %vm6947_vm0, %v3819_v53, 0  ;;  %v4805_v57 = vcombine.low %v3737_v58, %v3741_v37 }
 0x354   : > { %vm6953_vm4 = vmmov %vm6950_vm7  ;;  %3947 = vmatpush1.bf16.msra.mxu0 %v3845_v2  ;;  %v4808_v62 = vcombine.high %v3738_v54, %v3742_v34  ;;  %v1438_v28 = vsel %vm6880_vm1, %v1422_v22, 0.0  ;;  %vm6955_vm7 = vcmask 523264   ;;  %v4807_v19 = vcombine.low %v3738_v54, %v3742_v34  ;;  %v1539_v32 = vpop.permute.xlu0 %1538  ;;  %v3744_v22 = vld [vmem:[#allocation4 + $0x38] sm:$0xff] }
 0x355   : > { %v1279_v29 = vsel %vm6953_vm4, %v1263_v43, %v1278_v9  ;;  %vm6954_vm8 = vmmov %vm6947_vm0  ;;  %v1423_v23 = vsel %vm6955_vm7, %v5000_v40, %v5029_v4  ;;  %4160 = vmatprep.subr.bf16.mxu0 %v4806_v30  ;;  %v3745_v40 = vld [vmem:[#allocation4 + $0x40] sm:$0xff]  ;;  %v1545_v48 = vrot.slane %v1539_v32, 4  ;;  %v3746_v43 = vld [vmem:[#allocation4 + $0x48] sm:$0xff]  ;;  %v4821_v25 = vcombine.low %v3753_v1, %v3753_v1 }
 0x356   : > { %1287 = vst [vmem:[#allocation4 + $0x58] sm:$0x33] %v1279_v29  ;;  %v3851_v8 = vsel %vm6954_vm8, %v3821_v6, 0  ;;  %vm6956_vm10 = vmmov %vm6955_vm7  ;;  %v1439_v7 = vsel %vm6881_vm2, %v1423_v23, 0.0  ;;  %v1541_v44 = vpop.permute.xlu1 %1540  ;;  %v4814_v26 = vcombine.high %v3745_v40, %v3749_v61  ;;  %v4816_v38 = vcombine.high %v3746_v43, %v3750_v13 }
 0x357   : > { %3990 = vmatpush1.bf16.msra.mxu1 %v3851_v8  ;;  %v1424_v51 = vsel %vm6956_vm10, %v5029_v4, %v5030_v50  ;;  %vm6957_vm11 = vmmov %vm6955_vm7  ;;  %v4882_v42 = vpack.c.bf16 %v1439_v7, %v1438_v28  ;;  %4801 = vmatmul.mubr.msk.bf16.vlgmr.msra.gmra.mrb[12].mxu0 %vm3828_vm5, %v6542_v52  ;;  %v1546_v35 = vrot.slane %v1541_v44, 4  ;;  %v4813_v21 = vcombine.low %v3745_v40, %v3749_v61 }
 0x358   : > { %v1425_v12 = vsel %vm6957_vm11, %v5030_v50, %v1416_v39  ;;  %v1440_v49 = vsel %vm6883_vm14, %v1424_v51, 0.0  ;;  %4203 = vmatprep.subr.bf16.mxu1 %v4808_v62  ;;  %4161 = vmatpush1.bf16.msra.mxu0 %v4805_v57  ;;  %vm6959_vm1 = vcmask 515072   ;;  %v5033_v58 = vpop.permute.xlu0 %5032  ;;  %v4822_v6 = vcombine.high %v3753_v1, %v3753_v1  ;;  %vm6962_vm4 = vmmov %vm6947_vm0 }
 0x359   : > { %v1441_v55 = vsel %vm6884_vm3, %v1425_v12, 0.0  ;;  %1476 = vst [vmem:[#allocation4 + $0x70] sm:$0x33] %v4882_v42  ;;  %vm6958_vm3 = vcmask 1043456   ;;  %4162 = vmatprep.subr.bf16.mxu0 %v4814_v26  ;;  %4192 = vmatprep.mubr.bf16.mxu0 %v6944_v27  ;;  %vm6961_vm14 = vmmov %vm6959_vm1  ;;  %v5035_v59 = vunpack.i.h.bf16 %v5033_v58  ;;  %v4824_v31 = vcombine.high %v3754_v46, %v3754_v46 }
 0x35a   : > { %v4883_v5 = vpack.c.bf16 %v1441_v55, %v1440_v49  ;;  %4803 = vmatmul.mubr.msk.bf16.vlgmr.msra.gmra.mrb[12].mxu1 %vm3828_vm5, %v6542_v52  ;;  %v1552_v45 = vsel %vm6958_vm3, %v1544_v0, %v1545_v48  ;;  %vm6960_vm2 = vmmov %vm6958_vm3  ;;  %v4815_v52 = vcombine.low %v3746_v43, %v3750_v13  ;;  %v5034_v0 = vunpack.i.l.bf16 %v5033_v58  ;;  %v5038_v24 = vpop.permute.xlu1 %5037  ;;  %v3747_v62 = vld [vmem:[#allocation4 + $0x50] sm:$0xff] }
 0x35b   : > { %4204 = vmatpush1.bf16.msra.mxu1 %v4807_v19  ;;  %v1553_v47 = vsel %vm6959_vm1, %v6476_v17, %v1552_v45  ;;  %v1554_v53 = vsel %vm6960_vm2, %v1545_v48, %v1546_v35  ;;  %4235 = vmatprep.mubr.bf16.mxu1 %v6944_v27  ;;  %v5040_v60 = vunpack.i.h.bf16 %v5038_v24  ;;  %v5039_v17 = vunpack.i.l.bf16 %v5038_v24  ;;  %vm6963_vm8 = vmmov %vm6947_vm0 }
 0x35c   : > { %1477 = vst [vmem:[#allocation4 + $0x78] sm:$0x33] %v4883_v5  ;;  %4205 = vmatprep.subr.bf16.mxu1 %v4816_v38  ;;  %1562 = vst [vmem:[#allocation4 + $0x70] sm:$0xcc] %v1553_v47  ;;  %v1555_v37 = vsel %vm6961_vm14, %v1539_v32, %v1554_v53  ;;  %4163 = vmatpush1.bf16.msra.mxu0 %v4813_v21  ;;  %v4823_v63 = vcombine.low %v3754_v46, %v3754_v46  ;;  %v4137_v56 = vsel %vm6947_vm0, %v4821_v25, 0 }
 0x35d   : > { %1563 = vst [vmem:[#allocation4 + $0x78] sm:$0xcc] %v1555_v37  ;;  %v1601_v54 = vsel %vm1596_vm15, %v6493_v11, %v5034_v0  ;;  %v1602_v34 = vsel %vm1596_vm15, %v5034_v0, %v5035_v59  ;;  %4829 = vmatprep.subr.msk.bf16.mxu0 %vm6962_vm4, %v4822_v6  ;;  %v1603_v18 = vsel %vm1596_vm15, %v5035_v59, %v5039_v17  ;;  %v3739_v11 = vld [vmem:[#allocation4 + $0x10] sm:$0xff]  ;;  %v3748_v23 = vld [vmem:[#allocation4 + $0x58] sm:$0xff] }
 0x35e   : > { %v1617_v20 = vsel %vm6906_vm9, %v1601_v54, 0.0  ;;  %v1618_v9 = vsel %vm6908_vm13, %v1602_v34, 0.0  ;;  %v1604_v30 = vsel %vm1596_vm15, %v5039_v17, %v5040_v60  ;;  %v1619_v50 = vsel %vm6909_vm6, %v1603_v18, 0.0  ;;  %vm6964_vm9 = vmmov %vm6947_vm0 }
 0x35f   : > { %4206 = vmatpush1.bf16.msra.mxu1 %v4815_v52  ;;  %v4891_v29 = vpack.c.bf16 %v1618_v9, %v1617_v20  ;;  %v1620_v4 = vsel %vm6907_vm12, %v1604_v30, 0.0  ;;  %v4810_v2 = vcombine.high %v3739_v11, %v3743_v41  ;;  %v4143_v8 = vsel %vm6964_vm9, %v4823_v63, 0  ;;  %vm6965_vm12 = vmmov %vm6947_vm0 }
 0x360   : > { %4831 = vmatprep.subr.msk.bf16.mxu1 %vm6963_vm8, %v4824_v31  ;;  %v4892_v39 = vpack.c.bf16 %v1620_v4, %v1619_v50  ;;  %4165 = vmatpush1.bf16.msra.mxu0 %v4137_v56  ;;  %v4812_v57 = vcombine.high %v3740_v33, %v3744_v22  ;;  %v4809_v3 = vcombine.low %v3739_v11, %v3743_v41  ;;  %vm6966_vm13 = vmmov %vm6947_vm0 }
 0x361   : > { %1655 = vst [vmem:[#allocation4 + $0x90] sm:$0x33] %v4891_v29  ;;  %4246 = vmatprep.subr.bf16.mxu0 %v4810_v2  ;;  %v4811_v61 = vcombine.low %v3740_v33, %v3744_v22  ;;  %vm6967_vm6 = vmmov %vm6947_vm0 }
 0x362   : > { %1656 = vst [vmem:[#allocation4 + $0x98] sm:$0x33] %v4892_v39  ;;  %vm6968_vm15 = vmmov %vm6947_vm0 }
 0x363   : > { %4208 = vmatpush1.bf16.msra.mxu1 %v4143_v8  ;;  %v3751_v10 = vld [vmem:[#allocation4 + $0x70] sm:$0xff]  ;;  %4830 = vmatmul.mubr.msk.bf16.vlgmr.msra.gmra.mrb[8].mxu0 %vm3828_vm5, %v5058_v36 }
 0x364   : > { %4289 = vmatprep.subr.bf16.mxu1 %v4812_v57  ;;  %v4818_v28 = vcombine.high %v3747_v62, %v3751_v10  ;;  %v3752_v51 = vld [vmem:[#allocation4 + $0x78] sm:$0xff]  ;;  %4247 = vmatpush1.bf16.msra.mxu0 %v4809_v3  ;;  %v4817_v7 = vcombine.low %v3747_v62, %v3751_v10 }
 0x365   : > { %v4820_v12 = vcombine.high %v3748_v23, %v3752_v51  ;;  %v4819_v13 = vcombine.low %v3748_v23, %v3752_v51  ;;  %4278 = vmatprep.mubr.bf16.mxu0 %v6944_v27  ;;  %v4404_v10 = vld [vmem:[%s6712_s7] sm:$0x3] }
 0x366   : > { %4832 = vmatmul.mubr.msk.bf16.vlgmr.msra.gmra.mrb[8].mxu1 %vm3828_vm5, %v5058_v36  ;;  %4248 = vmatprep.subr.bf16.mxu0 %v4818_v28 }
 0x367   : > { %4290 = vmatpush1.bf16.msra.mxu1 %v4811_v61  ;;  %4321 = vmatprep.mubr.bf16.mxu1 %v6944_v27 }
 0x368   : > { %4291 = vmatprep.subr.bf16.mxu1 %v4820_v12  ;;  %4249 = vmatpush1.bf16.msra.mxu0 %v4817_v7  ;;  %v3755_v49 = vld [vmem:[#allocation4 + $0x90] sm:$0x33] }
 0x369   : > { %v4826_v55 = vcombine.high %v3755_v49, %v3755_v49  ;;  %v4825_v19 = vcombine.low %v3755_v49, %v3755_v49  ;;  %v3756_v32 = vld [vmem:[#allocation4 + $0x98] sm:$0x33]  ;;  %v4337_v48 = vpop.permute.xlu0 %4336 }
 0x36a   : > { %v4828_v40 = vcombine.high %v3756_v32, %v3756_v32  ;;  %v4827_v1 = vcombine.low %v3756_v32, %v3756_v32 }
 0x36b   : > { %4292 = vmatpush1.bf16.msra.mxu1 %v4819_v13  ;;  %4833 = vmatprep.subr.msk.bf16.mxu0 %vm6965_vm12, %v4826_v55  ;;  %v4149_v42 = vsel %vm6966_vm13, %v4825_v19, 0  ;;  %v6651_v44 = vpop.permute.xlu1 %4341 }
 0x36c   : > { %4251 = vmatpush1.bf16.msra.mxu0 %v4149_v42  ;;  %4835 = vmatprep.subr.msk.bf16.mxu1 %vm6967_vm6, %v4828_v40  ;;  %v4155_v5 = vsel %vm6968_vm15, %v4827_v1, 0 }
 0x36d   : > { %v6653_v26 = vpop.permute.xlu0 %4364 }
 0x36f   : > { %4294 = vmatpush1.bf16.msra.mxu1 %v4155_v5  ;;  %4834 = vmatmul.mubr.msk.bf16.vlgmr.msra.gmra.mrb[12].mxu0 %vm3828_vm5, %v5058_v36  ;;  %v6655_v35 = vpop.permute.xlu1 %4369 }
 0x370   : > { %4459 = vmatprep.mubr.bf16.mxu0 %v6944_v27 }
 0x372   : > { %4836 = vmatmul.mubr.msk.bf16.vlgmr.msra.gmra.mrb[12].mxu1 %vm3828_vm5, %v5058_v36  ;;  %vm4423_vm5 = vcmask 130048  }
 0x373   : > { %4500 = vmatprep.mubr.bf16.mxu1 %v6944_v27 }
 0x436   : > { %v4194_v43 = vpop.f32.mrb[8].mxu0 }
 0x437   : > { %v4344_v45 = vmul.f32 %v4337_v48, %v4194_v43  ;;  %v4196_v21 = vpop.f32.mrb[9].mxu0 }
 0x438   : > { %v4345_v25 = vmul.f32 %v4337_v48, %v4196_v21  ;;  %v4198_v53 = vpop.f32.mrb[10].mxu0 }
 0x439   : > { %v4237_v38 = vpop.f32.mrb[8].mxu1  ;;  %v4372_v52 = vadd.f32 %v6653_v26, %v4344_v45  ;;  %v4352_v37 = vmul.f32 %v6651_v44, %v4198_v53  ;;  %v4200_v0 = vpop.f32.mrb[11].mxu0 }
 0x43a   : > { %v4346_v46 = vmul.f32 %v4337_v48, %v4237_v38  ;;  %v4239_v47 = vpop.f32.mrb[9].mxu1  ;;  %v4373_v6 = vadd.f32 %v6653_v26, %v4345_v25  ;;  %v4353_v17 = vmul.f32 %v6651_v44, %v4200_v0 }
 0x43b   : > { %v4347_v58 = vmul.f32 %v4337_v48, %v4239_v47  ;;  %v4241_v59 = vpop.f32.mrb[10].mxu1  ;;  %v4380_v54 = vadd.f32 %v6655_v35, %v4352_v37  ;;  %v4388_v22 = vmax.f32 %v4372_v52, 0.0 }
 0x43c   : > { %v4374_v24 = vadd.f32 %v6653_v26, %v4346_v46  ;;  %v4354_v60 = vmul.f32 %v6651_v44, %v4241_v59  ;;  %v4243_v31 = vpop.f32.mrb[11].mxu1  ;;  %v4381_v34 = vadd.f32 %v6655_v35, %v4353_v17  ;;  %v4389_v30 = vmax.f32 %v4373_v6, 0.0 }
 0x43d   : > { %v4375_v63 = vadd.f32 %v6653_v26, %v4347_v58  ;;  %v4355_v41 = vmul.f32 %v6651_v44, %v4243_v31  ;;  %v4396_v9 = vmax.f32 %v4380_v54, 0.0 }
 0x43e   : > { %v4382_v56 = vadd.f32 %v6655_v35, %v4354_v60  ;;  %v4390_v18 = vmax.f32 %v4374_v24, 0.0  ;;  %v4397_v11 = vmax.f32 %v4381_v34, 0.0 }
 0x43f   : > { %v4383_v20 = vadd.f32 %v6655_v35, %v4355_v41  ;;  %v4391_v50 = vmax.f32 %v4375_v63, 0.0  ;;  %v4405_v2 = vpack.c.bf16 %v4396_v9, %v4388_v22 }
 0x440   : > { %v4398_v29 = vmax.f32 %v4382_v56, 0.0  ;;  %v4406_v33 = vpack.c.bf16 %v4397_v11, %v4389_v30 }
 0x441   : > { %v4399_v4 = vmax.f32 %v4383_v20, 0.0 }
 0x442   : > { %v4407_v36 = vpack.c.bf16 %v4398_v29, %v4390_v18  ;;  %v4280_v8 = vpop.f32.mrb[12].mxu0  ;;  %4427 = vmatprep.subr.bf16.mxu0 %v4406_v33 }
 0x443   : > { %v4408_v39 = vpack.c.bf16 %v4399_v4, %v4391_v50  ;;  %v4348_v57 = vmul.f32 %v4337_v48, %v4280_v8  ;;  %v4282_v3 = vpop.f32.mrb[13].mxu0  ;;  %4428 = vmatpush1.bf16.msra.mxu0 %v4405_v2 }
 0x444   : > { %v4349_v61 = vmul.f32 %v4337_v48, %v4282_v3  ;;  %v4284_v28 = vpop.f32.mrb[14].mxu0 }
 0x445   : > { %4468 = vmatprep.subr.bf16.mxu1 %v4408_v39  ;;  %v4323_v62 = vpop.f32.mrb[12].mxu1  ;;  %v4376_v12 = vadd.f32 %v6653_v26, %v4348_v57  ;;  %v4356_v13 = vmul.f32 %v6651_v44, %v4284_v28  ;;  %v4286_v7 = vpop.f32.mrb[15].mxu0 }
 0x446   : > { %4469 = vmatpush1.bf16.msra.mxu1 %v4407_v36  ;;  %v4350_v23 = vmul.f32 %v4337_v48, %v4323_v62  ;;  %v4325_v51 = vpop.f32.mrb[13].mxu1  ;;  %v4377_v19 = vadd.f32 %v6653_v26, %v4349_v61  ;;  %v4357_v40 = vmul.f32 %v6651_v44, %v4286_v7  ;;  %4838 = vmatmul.mubr.msk.bf16.vlgmr.msra.gmra.mrb[16].mxu0 %vm4423_vm5, %v4404_v10 }
 0x447   : > { %v4351_v49 = vmul.f32 %v4337_v48, %v4325_v51  ;;  %v4327_v55 = vpop.f32.mrb[14].mxu1  ;;  %v4384_v5 = vadd.f32 %v6655_v35, %v4356_v13  ;;  %4541 = vmatprep.mubr.bf16.mxu0 %v6944_v27  ;;  %v4392_v21 = vmax.f32 %v4376_v12, 0.0 }
 0x448   : > { %v4378_v32 = vadd.f32 %v6653_v26, %v4350_v23  ;;  %v4358_v1 = vmul.f32 %v6651_v44, %v4327_v55  ;;  %v4329_v42 = vpop.f32.mrb[15].mxu1  ;;  %v4385_v38 = vadd.f32 %v6655_v35, %v4357_v40  ;;  %v4393_v47 = vmax.f32 %v4377_v19, 0.0 }
 0x449   : > { %v4379_v43 = vadd.f32 %v6653_v26, %v4351_v49  ;;  %4839 = vmatmul.mubr.msk.bf16.vlgmr.msra.gmra.mrb[16].mxu1 %vm4423_vm5, %v4404_v10  ;;  %v4359_v48 = vmul.f32 %v6651_v44, %v4329_v42  ;;  %v4400_v46 = vmax.f32 %v4384_v5, 0.0 }
 0x44a   : > { %v4386_v45 = vadd.f32 %v6655_v35, %v4358_v1  ;;  %4582 = vmatprep.mubr.bf16.mxu1 %v6944_v27  ;;  %v4394_v53 = vmax.f32 %v4378_v32, 0.0  ;;  %v4401_v52 = vmax.f32 %v4385_v38, 0.0  ;;  %v4421_v27 = vpop.permute.xlu0 %4420 }
 0x44b   : > { %v4387_v25 = vadd.f32 %v6655_v35, %v4359_v48  ;;  %v4409_v58 = vpack.c.bf16 %v4400_v46, %v4392_v21  ;;  %v4395_v37 = vmax.f32 %v4379_v43, 0.0 }
 0x44c   : > { %v4402_v26 = vmax.f32 %v4386_v45, 0.0  ;;  %v4410_v0 = vpack.c.bf16 %v4401_v52, %v4393_v47  ;;  %v6969_v52 = vld [vmem:[#allocation8_spill] sm:$0xff] }
 0x44d   : > { %v4403_v59 = vmax.f32 %v4387_v25, 0.0 }
 0x44e   : > { %v4411_v44 = vpack.c.bf16 %v4402_v26, %v4394_v53  ;;  %4509 = vmatprep.subr.bf16.mxu0 %v4410_v0 }
 0x44f   : > { %v4412_v24 = vpack.c.bf16 %v4403_v59, %v4395_v37  ;;  %4510 = vmatpush1.bf16.msra.mxu0 %v4409_v58 }
 0x451   : > { %4550 = vmatprep.subr.bf16.mxu1 %v4412_v24 }
 0x452   : > { %4551 = vmatpush1.bf16.msra.mxu1 %v4411_v44  ;;  %4840 = vmatmul.mubr.msk.bf16.vlgmr.msra.gmra.mrb[20].mxu0 %vm4423_vm5, %v4404_v10 }
 0x455   : > { %4841 = vmatmul.mubr.msk.bf16.vlgmr.msra.gmra.mrb[20].mxu1 %vm4423_vm5, %v4404_v10 }
 0x519   : > { %v4461_v35 = vpop.f32.mrb[16].mxu0 }
 0x51a   : > { %v4462_v6 = vadd.f32 %v4461_v35, %v4421_v27  ;;  %v4463_v17 = vpop.f32.mrb[17].mxu0  ;;  %v6970_v35 = vld [vmem:[#allocation9_spill] sm:$0xff] }
 0x51b   : > { %v4464_v63 = vadd.f32 %v4463_v17, %v4421_v27  ;;  %v4465_v54 = vpop.f32.mrb[18].mxu0 }
 0x51c   : > { %v4502_v60 = vpop.f32.mrb[16].mxu1  ;;  %v4842_v34 = vmul.f32 -1.442695, %v4462_v6  ;;  %v4466_v20 = vpop.f32.mrb[19].mxu0 }
 0x51d   : > { %v4503_v31 = vadd.f32 %v4502_v60, %v4421_v27  ;;  %v4504_v41 = vpop.f32.mrb[17].mxu1  ;;  %v4843_v18 = vmul.f32 -1.442695, %v4464_v63  ;;  %v6971_v63 = vld [vmem:[#allocation10_spill] sm:$0xff]  ;;  %v6973_v20 = vld [vmem:[#allocation12_spill] sm:$0xff] }
 0x51e   : > { %v4505_v56 = vadd.f32 %v4504_v41, %v4421_v27  ;;  %v4506_v22 = vpop.f32.mrb[18].mxu1  ;;  %5095 = vpow2.f32 %v4842_v34  ;;  %v6972_v34 = vld [vmem:[#allocation11_spill] sm:$0xff] }
 0x51f   : > { %v4844_v9 = vmul.f32 -1.442695, %v4503_v31  ;;  %v4507_v30 = vpop.f32.mrb[19].mxu1 }
 0x520   : > { %v4845_v11 = vmul.f32 -1.442695, %v4505_v56 }
 0x521   : > { %5097 = vpow2.f32 %v4844_v9 }
 0x522   : > { %5099 = vpow2.f32 %v4843_v18 }
 0x523   : > { %5101 = vpow2.f32 %v4845_v11 }
 0x525   : > { %v4543_v29 = vpop.f32.mrb[20].mxu0 }
 0x526   : > { %v4544_v50 = vadd.f32 %v4543_v29, %v4421_v27  ;;  %v4545_v4 = vpop.f32.mrb[21].mxu0 }
 0x527   : > { %v4546_v33 = vadd.f32 %v4545_v4, %v4421_v27  ;;  %v4547_v39 = vpop.f32.mrb[22].mxu0 }
 0x528   : > { %v4584_v2 = vpop.f32.mrb[20].mxu1  ;;  %v5096_v8 = vpop.eup %5095  ;;  %v4846_v57 = vmul.f32 -1.442695, %v4544_v50 }
 0x529   : > { %v4586_v36 = vpop.f32.mrb[21].mxu1  ;;  %v4585_v3 = vadd.f32 %v4584_v2, %v4421_v27  ;;  %v4548_v10 = vpop.f32.mrb[23].mxu0  ;;  %v4615_v28 = vadd.f32 1.0, %v5096_v8  ;;  %v4847_v55 = vmul.f32 -1.442695, %v4546_v33 }
 0x52a   : > { %v4588_v62 = vpop.f32.mrb[22].mxu1  ;;  %v4587_v23 = vadd.f32 %v4586_v36, %v4421_v27  ;;  %5103 = vpow2.f32 %v4846_v57 }
 0x52b   : > { %v5098_v61 = vpop.eup %5097  ;;  %v4589_v51 = vpop.f32.mrb[23].mxu1  ;;  %5105 = vrcp.f32 %v4615_v28  ;;  %v4848_v32 = vmul.f32 -1.442695, %v4585_v3 }
 0x52c   : > { %v5100_v12 = vpop.eup %5099  ;;  %v4617_v13 = vadd.f32 1.0, %v5098_v61  ;;  %v4849_v40 = vmul.f32 -1.442695, %v4587_v23 }
 0x52d   : > { %v5102_v7 = vpop.eup %5101  ;;  %v4616_v49 = vadd.f32 1.0, %v5100_v12 }
 0x52e   : > { %5107 = vrcp.f32 %v4617_v13  ;;  %v4618_v19 = vadd.f32 1.0, %v5102_v7 }
 0x52f   : > { %5109 = vrcp.f32 %v4616_v49 }
 0x530   : > { %5111 = vrcp.f32 %v4618_v19 }
 0x531   : > { %5113 = vpow2.f32 %v4847_v55 }
 0x532   : > { %5115 = vpow2.f32 %v4848_v32 }
 0x533   : > { %5117 = vpow2.f32 %v4849_v40 }
 0x534   : > { %v5104_v1 = vpop.eup %5103 }
 0x535   : > { %v5106_v42 = vpop.eup %5105  ;;  %v4619_v5 = vadd.f32 1.0, %v5104_v1 }
 0x536   : > { %v4639_v48 = vadd.f32 %v5106_v42, %v5411_v14 }
 0x537   : > { %5119 = vrcp.f32 %v4619_v5 }
 0x538   : > { %v5108_v43 = vpop.eup %5107  ;;  %v4647_v46 = vmul.f32 0.5, %v4639_v48 }
 0x539   : > { %v5110_v38 = vpop.eup %5109  ;;  %v4641_v45 = vadd.f32 %v5108_v43, %v5415_v16 }
 0x53a   : > { %v5112_v21 = vpop.eup %5111  ;;  %v4640_v25 = vadd.f32 %v5110_v38, %v5413_v15 }
 0x53b   : > { %v5114_v47 = vpop.eup %5113  ;;  %v4649_v53 = vmul.f32 0.5, %v4641_v45  ;;  %v4642_v26 = vadd.f32 %v5112_v21, %v6969_v52 }
 0x53c   : > { %v5116_v58 = vpop.eup %5115  ;;  %v4648_v37 = vmul.f32 0.5, %v4640_v25  ;;  %v4620_v59 = vadd.f32 1.0, %v5114_v47 }
 0x53d   : > { %v5118_v44 = vpop.eup %5117  ;;  %v4650_v14 = vmul.f32 0.5, %v4642_v26  ;;  %v4621_v16 = vadd.f32 1.0, %v5116_v58 }
 0x53e   : > { %v4663_v0 = vcombine.low %v4647_v46, %v4648_v37  ;;  %5121 = vrcp.f32 %v4620_v59  ;;  %v4622_v24 = vadd.f32 1.0, %v5118_v44 }
 0x53f   : > { %v4664_v27 = vcombine.low %v4649_v53, %v4650_v14  ;;  %5123 = vrcp.f32 %v4621_v16 }
 0x540   : > { %4671 = vst [vmem:[%s336_s24] sm:$0xff] %v4663_v0  ;;  %5125 = vrcp.f32 %v4622_v24 }
 0x541   : > { %4672 = vst [vmem:[%s336_s24 + $0x8] sm:$0xff] %v4664_v27  ;;  %v5120_v15 = vpop.eup %5119 }
 0x542   : > { %v4643_v6 = vadd.f32 %v5120_v15, %v6970_v35 }
 0x544   : > { %v4651_v31 = vmul.f32 0.5, %v4643_v6 }
 0x548   : > { %v5122_v60 = vpop.eup %5121 }
 0x549   : > { %v5124_v17 = vpop.eup %5123  ;;  %v4644_v41 = vadd.f32 %v5122_v60, %v6971_v63 }
 0x54a   : > { %v5126_v54 = vpop.eup %5125  ;;  %v4645_v56 = vadd.f32 %v5124_v17, %v6972_v34 }
 0x54b   : > { %v4652_v22 = vmul.f32 0.5, %v4644_v41  ;;  %v4646_v9 = vadd.f32 %v5126_v54, %v6973_v20 }
 0x54c   : > { %v4653_v18 = vmul.f32 0.5, %v4645_v56 }
 0x54d   : > { %v4665_v30 = vcombine.low %v4651_v31, %v4652_v22  ;;  %v4654_v11 = vmul.f32 0.5, %v4646_v9 }
 0x54f   : > { %4673 = vst [vmem:[%s336_s24 + $0x10] sm:$0xff] %v4665_v30  ;;  %v4666_v29 = vcombine.low %v4653_v18, %v4654_v11 }
 0x551   : > { %4674 = vst [vmem:[%s336_s24 + $0x18] sm:$0xff] %v4666_v29 }
 0x552 PF: > { %s23_s13 = sadd.s32 1, %s5133_s13  }
 0x553   : > { %p20_p4 = scmp.ge.s32.totalorder %s23_s13, 4  }
 0x555   :  { %22 = sbr.rel (!%p20_p4) target bundleno = 3 (0x3), region = 128 }

</bundles_post_ra>
